<compile_context>
chip_gen: v5e
topology: v5e:2x2
jax: 0.10.0
libtpu: 0.0.40
codegen_flags: <defaults>
</compile_context>

<pallas_src>
import jax
import jax.numpy as jnp
from jax.experimental import pallas as pl
from jax.experimental.pallas import tpu as pltpu


def _bmm_kernel(a_ref, b_ref, o_ref):
    # a_ref: (hblk, S, K)   probabilities for hblk heads (bf16 or f32)
    # b_ref: (hblk, K, D)   values for the same heads    (bf16 or f32)
    # o_ref: (hblk, S, D)   f32 output
    o_ref[...] = jnp.einsum(
        "hqk,hkd->hqd",
        a_ref[...],
        b_ref[...],
        preferred_element_type=jnp.float32,
    ).astype(o_ref.dtype)


def _padded_block_bytes(shape, dtype):
    """VMEM footprint of one block, accounting for (sublane, lane) tiling:
    last dim rounded up to 128 lanes, second-to-last to the sublane packing
    (8 rows for 32-bit, 16 for 16-bit)."""
    *lead, sub, lane = shape
    itemsize = jnp.dtype(dtype).itemsize
    packing = max(1, 4 // itemsize)          # 1 for f32, 2 for bf16
    sub_tile = 8 * packing
    sub_p = -(-sub // sub_tile) * sub_tile
    lane_p = -(-lane // 128) * 128
    n = 1
    for d in lead:
        n *= d
    return n * sub_p * lane_p * itemsize


# 2 steps per TensorCore on dual-core v7x; also keeps input DMA / compute /
# writeback overlapped (instead of fully serialized) on single-core chips.
_MIN_GRID_STEPS = 4


def _pick_head_block(bh, s, k, d, a_dtype, b_dtype, o_dtype, vmem_budget_bytes):
    """Largest head-block h that (a) divides BH, (b) leaves at least
    _MIN_GRID_STEPS grid steps (when BH allows), and (c) keeps the
    double-buffered, lane-padded per-step working set under the budget."""
    best = 1
    for h in range(1, bh + 1):
        if bh % h:
            continue
        steps = bh // h
        if steps < min(bh, _MIN_GRID_STEPS):
            continue
        per_step = (
            _padded_block_bytes((h, s, k), a_dtype)
            + _padded_block_bytes((h, k, d), b_dtype)
            + _padded_block_bytes((h, s, d), o_dtype)
        )
        if 2 * per_step <= vmem_budget_bytes:  # inputs + output, double-buffered
            best = h
    return best


def _vmem_budget_bytes():
    """Conservative per-step budget derived from physical VMEM (v5e/v6e:
    128 MiB, v7x: 64 MiB per TC), capped so the default scoped-VMEM limit on
    any generation is never the thing that saves us."""
    try:
        capacity = pltpu.get_tpu_info().vmem_capacity_bytes
    except Exception:
        capacity = 64 * 1024 * 1024
    return min(capacity // 8, 12 * 1024 * 1024)


def batched_matmul(x389, x377, *, head_block=None, cast_inputs_to_bf16=True):
    """torch.matmul(x389, x377) for 4-D inputs [B, H, S, S] @ [B, H, S, D]."""
    B, H, S, K = x389.shape
    Bb, Hb, Kb, D = x377.shape
    assert (B, H, K) == (Bb, Hb, Kb)
    BH = B * H

    a = x389.reshape(BH, S, K)
    b = x377.reshape(BH, K, D)

    if cast_inputs_to_bf16:
        # Halve kernel HBM traffic and use the native bf16 MXU path.
        # Accumulation stays f32 inside the kernel; output stays f32.
        a = a.astype(jnp.bfloat16)
        b = b.astype(jnp.bfloat16)

    out_dtype = jnp.float32

    if head_block is None:
        head_block = _pick_head_block(
            BH, S, K, D, a.dtype, b.dtype, out_dtype, _vmem_budget_bytes()
        )
    assert BH % head_block == 0
    grid = (BH // head_block,)

    a_bytes = jnp.dtype(a.dtype).itemsize * BH * S * K
    b_bytes = jnp.dtype(b.dtype).itemsize * BH * K * D
    o_bytes = jnp.dtype(out_dtype).itemsize * BH * S * D
    cost = pl.CostEstimate(
        flops=2 * BH * S * K * D,
        transcendentals=0,
        bytes_accessed=a_bytes + b_bytes + o_bytes,
    )

    out = pl.pallas_call(
        _bmm_kernel,
        out_shape=jax.ShapeDtypeStruct((BH, S, D), out_dtype),
        grid=grid,
        in_specs=[
            pl.BlockSpec((head_block, S, K), lambda g: (g, 0, 0)),
            pl.BlockSpec((head_block, K, D), lambda g: (g, 0, 0)),
        ],
        out_specs=pl.BlockSpec((head_block, S, D), lambda g: (g, 0, 0)),
        compiler_params=pltpu.CompilerParams(
            dimension_semantics=("parallel",),
            vmem_limit_bytes=32 * 1024 * 1024,
        ),
        cost_estimate=cost,
    )(a, b)

    return out.reshape(B, H, S, D).astype(x389.dtype)


if __name__ == "__main__":
    # Shapes implied by the module's forward: x389 [1,12,384,384], x377 [1,12,384,64].
    B, H, S, D = 1, 12, 384, 64

    key = jax.random.PRNGKey(0)
    k1, k2 = jax.random.split(key)
    x389 = jax.random.normal(k1, (B, H, S, S), dtype=jnp.float32)
    x377 = jax.random.normal(k2, (B, H, S, D), dtype=jnp.float32)

    out = jax.block_until_ready(batched_matmul(x389, x377))
    assert out.shape == (B, H, S, D)
    assert out.dtype == jnp.float32

    # Matched-precision reference: same bf16 input rounding, f32 accumulation.
    ref_bf16 = jnp.matmul(
        x389.astype(jnp.bfloat16),
        x377.astype(jnp.bfloat16),
        preferred_element_type=jnp.float32,
    )
    assert jnp.allclose(out, ref_bf16, atol=2e-2, rtol=2e-2)

    # Coarse sanity check against the original f32 semantics (error comes only
    # from bf16 rounding of the inputs; the K=384 reduction itself is f32).
    ref_f32 = jnp.matmul(x389, x377)
    assert jnp.allclose(out, ref_f32, atol=5e-1, rtol=5e-2)

    print("KERNEL_OK")
</pallas_src>

<mosaic_0001>
module attributes {stable_mosaic.version = 11 : i64} {
  func.func @_bmm_kernel(%arg0: i32, %arg1: memref<3x384x384xbf16, #tpu.memory_space<vmem>>, %arg2: memref<3x384x64xbf16, #tpu.memory_space<vmem>>, %arg3: memref<3x384x64xf32, #tpu.memory_space<vmem>>) attributes {dimension_semantics = [#tpu.dimension_semantics<parallel>], iteration_bounds = array<i64: 4>, scalar_prefetch = 0 : i64, scratch_operands = 0 : i64, tpu.core_type = #tpu.core_type<tc>, window_params = [{transform_indices = @transform_0, window_bounds = array<i64: 3, 384, 384>}, {transform_indices = @transform_1, window_bounds = array<i64: 3, 384, 64>}, {transform_indices = @transform_2, window_bounds = array<i64: 3, 384, 64>}]} {
    %c0 = arith.constant 0 : index
    %c0_0 = arith.constant 0 : index
    %c0_1 = arith.constant 0 : index
    %0 = vector.load %arg1[%c0, %c0_0, %c0_1] : memref<3x384x384xbf16, #tpu.memory_space<vmem>>, vector<3x384x384xbf16>
    %c0_2 = arith.constant 0 : index
    %c0_3 = arith.constant 0 : index
    %c0_4 = arith.constant 0 : index
    %1 = vector.load %arg2[%c0_2, %c0_3, %c0_4] : memref<3x384x64xbf16, #tpu.memory_space<vmem>>, vector<3x384x64xbf16>
    "tpu.trace_start"() <{level = 10 : i32, message = "hqk,hkd->hqd"}> : () -> ()
    %cst = arith.constant dense<0.000000e+00> : vector<3x384x64xf32>
    %2 = tpu.matmul %0, %1, %cst {dimension_numbers = #tpu.dot_dimension_numbers<[2], [1], [1], [2], [0, 0, 0, 1, 1, 2], [0], [0]>} : vector<3x384x384xbf16>, vector<3x384x64xbf16>, vector<3x384x64xf32> -> vector<3x384x64xf32>
    "tpu.trace_stop"() : () -> ()
    %c0_5 = arith.constant 0 : index
    %c0_6 = arith.constant 0 : index
    %c0_7 = arith.constant 0 : index
    %3 = vector.load %arg3[%c0_5, %c0_6, %c0_7] : memref<3x384x64xf32, #tpu.memory_space<vmem>>, vector<3x384x64xf32>
    tpu.vector_store %arg3[%c0_5, %c0_6, %c0_7], %2 {strides = array<i32>} : memref<3x384x64xf32, #tpu.memory_space<vmem>>, vector<3x384x64xf32>,
    return
  }
  func.func @transform_0(%arg0: i32) -> (i32, i32, i32) {
    %c0_i32 = arith.constant 0 : i32
    %c0_i32_0 = arith.constant 0 : i32
    %c0_i32_1 = arith.constant 0 : i32
    return %arg0, %c0_i32, %c0_i32_0 : i32, i32, i32
  }
  func.func @transform_1(%arg0: i32) -> (i32, i32, i32) {
    %c0_i32 = arith.constant 0 : i32
    %c0_i32_0 = arith.constant 0 : i32
    %c0_i32_1 = arith.constant 0 : i32
    return %arg0, %c0_i32, %c0_i32_0 : i32, i32, i32
  }
  func.func @transform_2(%arg0: i32) -> (i32, i32, i32) {
    %c0_i32 = arith.constant 0 : i32
    %c0_i32_0 = arith.constant 0 : i32
    %c0_i32_1 = arith.constant 0 : i32
    return %arg0, %c0_i32, %c0_i32_0 : i32, i32, i32
  }
}

</mosaic_0001>

<bundles_post_ra>
// kernel: tpu_custom_call.1
= control target key start
LH: loop header
LB: loop body
LE: loop exit
PB: predicated region body
PF: predicated region fallthrough
CT: control target
= control target key end

     0   :  { %7 = vsyncpa [#allocation3], 0  ;;  %s6379_s0 = inlined_call_operand.hbm [shape: bf16[12,384,384], index: 0, kind: input, shape index: {}]   ;;  %s6380_s1 = inlined_call_operand.vmem [shape: bf16[12,384,64], index: 1, kind: input, shape index: {}]   ;;  %s6381_s2 = inlined_call_operand.vmem [shape: f32[12,384,64], index: 2, kind: output, shape index: {}]  }
   0x1   :  { %9 = vsyncpa [#allocation3 + $0x1], 0  ;;  %s5203_s9 = smov 0   ;;  %s5205_s10 = smov 0  }
   0x2   :  { %s5207_s11 = smov 0   ;;  %s5209_s12 = smov 0  }
   0x3 LB: > { %s3599_s13 = sadd.s32 4294967295, %s5184_s12   ;;  %s5223_s14 = sadd.s32 1, %s5184_s12   ;;  %s5184_s12 = sphi %s5209_s12, %s6409_s12   ;;  %s5180_s11 = sphi %s5207_s11, %s6408_s11   ;;  %s5176_s10 = sphi %s5205_s10, %s6407_s10   ;;  %s5172_s9 = sphi %s5203_s9, %s6406_s9  }
   0x4   : > { %s19_s15 = ssub.s32 %s5184_s12, %s5223_s14  ;;  %s22_s16 = sadd.s32 1, %s5180_s11 }
   0x5   : > { %p20_p0 = scmp.eq.s32.totalorder %s19_s15, 0  ;;  %p29_p1 = scmp.ne.s32.totalorder %s5180_s11, %s5176_s10 }
   0x6   : > { %p30_p2 = scmp.eq.s32.totalorder %s5184_s12, 0  ;;  %p35_p3 = scmp.ne.s32.totalorder %s5176_s10, %s5172_s9 }
   0x7   : > { %s5233_s17 = scalar_select %p20_p0, %s5180_s11, %s22_s16  }
   0x8   : > { %p31_p4 = por %p30_p2, %p29_p1  ;;  %p36_p5 = scmp.eq.s32.totalorder %s3599_s13, 0 }
   0x9   : > { %p5084_p6 = scmp.lt.s32.totalorder %s5184_s12, 4  ;;  %s111_s19 = sand.u32 1, %s5180_s11  }
   0xa   : > { %p5238_p7 = por %p36_p5, %p35_p3  ;;  %s5073_s20 = smul.u32 1728, %s111_s19 }
   0xb   : > { %p5243_p8 = pnand %p5084_p6, %p31_p4  ;;  %s5085_s22 = smul.u32 1728, %s5184_s12 }
   0xc   : > { %s115_s23 = scalar_lea.vmem [#allocation2], %s5073_s20  ;;  %s112_s29 = scalar_lea.sflag [#allocation3], %s111_s19 }
   0xd   : > { %s124_s24 = sshll.u32 %s115_s23, 4  ;;  %s121_s27 = scalar_lea.hbm %s6379_s0, %s5085_s22  ;;  %s125_s24 = int_to_ptr.vmem [resolvable:$true] %s124_s24 }
   0xe   : > { %s122_s28 = sshll.u32 %s121_s27, 4  ;;  %p5124_p10 = pneg %p5243_p8  ;;  %s123_s28 = int_to_ptr.hbm [resolvable:$true] %s122_s28 }
   0xf   : > { %s5120_s30 = sshra.s32 %s123_s28, 4  ;;  %s5127_s6 = scalar_lea.hbm %s6379_s0, 6912  ;;  %s5121_s30 = int_to_ptr.hbm [resolvable:$true] %s5120_s30 }
  0x10   : > { %s5122_s3 = scalar_lea.hbm %s5121_s30, 1728  ;;  %p5128_p13 = scmp.lt.s32.totalorder %s5121_s30, %s6379_s0 }
  0x11   : > { %p5123_p9 = scmp.ne.s32.totalorder %s5121_s30, %s5122_s3  ;;  %p5129_p0 = scmp.lt.s32.totalorder %s5127_s6, %s5122_s3 }
  0x13   : > { %p5125_p11 = pnand %p5124_p10, %p5123_p9  ;;  %p5130_p1 = por %p5129_p0, %p5128_p13 }
  0x15   : > { %p5126_p12 = pneg %p5125_p11 }
  0x17   : > { %p5131_p2 = pnand %p5130_p1, %p5126_p12 }
  0x19   : > { %5134 = shalt.err (!%p5131_p2)
}
  0x1a   : > { %s5186_s9 = smov 192   ;;  %s5187_s15 = smov 12  }
  0x1b   : > { %5083 = dma.hbm_to_vmem [thread:$0]  (!%p5243_p8), %s123_s28, 27648, %s125_s24, %s112_s29, %s5186_s9, %s5186_s9, %s5187_s15  }
  0x1c   : > { %p3604_p3 = scmp.ge.s32.totalorder %s5184_s12, 1  ;;  %p142_p4 = scmp.lt.s32.totalorder %s5184_s12, 5 }
  0x1e   : > { %p143_p5 = pnand %p3604_p3, %p142_p4 }
  0x20   : > { %146 = sbr.rel (%p143_p5) target bundleno = 1076 (0x434), region = 28 }
  0x25   : > { %s148_s16 = sand.u32 1, %s5176_s10  }
  0x26   : > { %s5075_s19 = smul.u32 1728, %s148_s16  ;;  %s149_s20 = scalar_lea.sflag [#allocation3], %s148_s16 }
  0x28   : > { %s5264_s22 = scalar_lea.vmem [#allocation2], %s5075_s19 }
  0x29   : > { %5167 = dma.done.wait (%p5238_p7), %s149_s20, 27648  }
  0x2a   : > { %5169 = vsyncadd (%p5238_p7), %s149_s20, 4294939648  ;;  %s182_s21 = smul.u32 3, %s3599_s13  ;;  %v3609_v7 = vld [vmem:[%s5264_s22] sm:$0xf]  ;;  %v4762_v8 = vld [vmem:[%s5264_s22 + $0x8] sm:$0xf0] }
  0x2b   : > { %v3681_v9 = vld [vmem:[%s5264_s22 + $0x90] sm:$0xf]  ;;  %v4780_v11 = vld [vmem:[%s5264_s22 + $0x98] sm:$0xf0]  ;;  %v3753_v12 = vld [vmem:[%s5264_s22 + $0x120] sm:$0xf]  ;;  %v3610_v18 = vor.u32 %v4762_v8, %v3609_v7 }
  0x2c   : > { %p183_p6 = scmp.lt.s32.totalorder %s182_s21, 11  ;;  %v4798_v13 = vld [vmem:[%s5264_s22 + $0x128] sm:$0xf0]  ;;  %v3825_v14 = vld [vmem:[%s5264_s22 + $0x1b0] sm:$0xf]  ;;  %v3682_v19 = vor.u32 %v4780_v11, %v3681_v9  ;;  %vm3373_vm0 = vcmask 523264  }
  0x2d   : > { %v4816_v15 = vld [vmem:[%s5264_s22 + $0x1b8] sm:$0xf0]  ;;  %v3754_v20 = vor.u32 %v4798_v13, %v3753_v12  ;;  %v3621_v32 = vld [vmem:[%s5264_s22 + $0x18] sm:$0xf]  ;;  %v4765_v35 = vld [vmem:[%s5264_s22 + $0x20] sm:$0xf0] }
  0x2e   : > { %s6411_s21 = smov (!%p183_p6, %s182_s21), 11  ;;  %v3826_v21 = vor.u32 %v4816_v15, %v3825_v14  ;;  %v3693_v36 = vld [vmem:[%s5264_s22 + $0xa8] sm:$0xf]  ;;  %v4783_v37 = vld [vmem:[%s5264_s22 + $0xb0] sm:$0xf0]  ;;  %v3622_v44 = vor.u32 %v4765_v35, %v3621_v32 }
  0x2f   : > { %s5076_s23 = smul.u32 192, %s6411_s21  ;;  %v3765_v38 = vld [vmem:[%s5264_s22 + $0x138] sm:$0xf]  ;;  %v4801_v39 = vld [vmem:[%s5264_s22 + $0x140] sm:$0xf0]  ;;  %v3694_v45 = vor.u32 %v4783_v37, %v3693_v36 }
  0x30   : > { %v3837_v40 = vld [vmem:[%s5264_s22 + $0x1c8] sm:$0xf]  ;;  %v4819_v41 = vld [vmem:[%s5264_s22 + $0x1d0] sm:$0xf0]  ;;  %v3766_v46 = vor.u32 %v4801_v39, %v3765_v38  ;;  %v3633_v54 = vld [vmem:[%s5264_s22 + $0x30] sm:$0xf] }
  0x31   : > { %s5278_s26 = scalar_lea.vmem %s6380_s1, %s5076_s23  ;;  %v3838_v47 = vor.u32 %v4819_v41, %v3837_v40  ;;  %v4768_v55 = vld [vmem:[%s5264_s22 + $0x38] sm:$0xf0]  ;;  %v3705_v56 = vld [vmem:[%s5264_s22 + $0xc0] sm:$0xf]  ;;  %v4786_v57 = vld [vmem:[%s5264_s22 + $0xc8] sm:$0xf0] }
  0x32   : > { %v4984_v0 = vld [vmem:[%s5278_s26 + $0x38] sm:$0xff]  ;;  %v4983_v1 = vld [vmem:[%s5278_s26 + $0x30] sm:$0xff]  ;;  %v4982_v2 = vld [vmem:[%s5278_s26 + $0x28] sm:$0xff]  ;;  %v3634_v62 = vor.u32 %v4768_v55, %v3633_v54  ;;  %v3706_v63 = vor.u32 %v4786_v57, %v3705_v56  ;;  %s5077_s12 = smul.u32 384, %s6411_s21 }
  0x33   : > { %1156 = vmatpush.bf16.msra.mxu0 %v4984_v0  ;;  %5049 = vmatpush.bf16.msra.mxu1 %v4984_v0  ;;  %v4981_v3 = vld [vmem:[%s5278_s26 + $0x20] sm:$0xff]  ;;  %v4980_v4 = vld [vmem:[%s5278_s26 + $0x18] sm:$0xff]  ;;  %v4979_v5 = vld [vmem:[%s5278_s26 + $0x10] sm:$0xff] }
  0x34   : > { %5050 = vmatpush.bf16.msra.mxu2 %v4984_v0  ;;  %5051 = vmatpush.bf16.msra.mxu3 %v4984_v0  ;;  %v4978_v6 = vld [vmem:[%s5278_s26 + $0x8] sm:$0xff]  ;;  %v4977_v10 = vld [vmem:[%s5278_s26] sm:$0xff]  ;;  %v5000_v16 = vld [vmem:[%s5278_s26 + $0xb8] sm:$0xff]  ;;  %s5557_s27 = scalar_lea.vmem %s6381_s2, %s5077_s12 }
  0x35   : > { %v5008_v17 = vld [vmem:[%s5278_s26 + $0xf8] sm:$0xff]  ;;  %v4999_v24 = vld [vmem:[%s5278_s26 + $0xb0] sm:$0xff]  ;;  %v4998_v28 = vld [vmem:[%s5278_s26 + $0xa8] sm:$0xff] }
  0x36   : > { %v4992_v22 = vld [vmem:[%s5278_s26 + $0x78] sm:$0xff]  ;;  %v5007_v25 = vld [vmem:[%s5278_s26 + $0xf0] sm:$0xff]  ;;  %v5006_v29 = vld [vmem:[%s5278_s26 + $0xe8] sm:$0xff] }
  0x37   : > { %1157 = vmatpush.bf16.msra.mxu0 %v4983_v1  ;;  %5052 = vmatpush.bf16.msra.mxu1 %v4983_v1  ;;  %v5016_v23 = vld [vmem:[%s5278_s26 + $0x138] sm:$0xff]  ;;  %v4991_v26 = vld [vmem:[%s5278_s26 + $0x70] sm:$0xff]  ;;  %v4990_v30 = vld [vmem:[%s5278_s26 + $0x68] sm:$0xff] }
  0x38   : > { %5053 = vmatpush.bf16.msra.mxu2 %v4983_v1  ;;  %5054 = vmatpush.bf16.msra.mxu3 %v4983_v1  ;;  %v5015_v27 = vld [vmem:[%s5278_s26 + $0x130] sm:$0xff]  ;;  %v5014_v31 = vld [vmem:[%s5278_s26 + $0x128] sm:$0xff]  ;;  %v4997_v33 = vld [vmem:[%s5278_s26 + $0xa0] sm:$0xff] }
  0x39   : > { %v5005_v34 = vld [vmem:[%s5278_s26 + $0xe0] sm:$0xff]  ;;  %v4996_v48 = vld [vmem:[%s5278_s26 + $0x98] sm:$0xff]  ;;  %v4995_v52 = vld [vmem:[%s5278_s26 + $0x90] sm:$0xff] }
  0x3a   : > { %v4989_v42 = vld [vmem:[%s5278_s26 + $0x60] sm:$0xff]  ;;  %v5004_v49 = vld [vmem:[%s5278_s26 + $0xd8] sm:$0xff]  ;;  %v5003_v53 = vld [vmem:[%s5278_s26 + $0xd0] sm:$0xff] }
  0x3b   : > { %1158 = vmatpush.bf16.msra.mxu0 %v4982_v2  ;;  %5055 = vmatpush.bf16.msra.mxu1 %v4982_v2  ;;  %v5013_v43 = vld [vmem:[%s5278_s26 + $0x120] sm:$0xff]  ;;  %v4988_v50 = vld [vmem:[%s5278_s26 + $0x58] sm:$0xff]  ;;  %v3777_v58 = vld [vmem:[%s5264_s22 + $0x150] sm:$0xf] }
  0x3c   : > { %5056 = vmatpush.bf16.msra.mxu2 %v4982_v2  ;;  %5057 = vmatpush.bf16.msra.mxu3 %v4982_v2  ;;  %v5012_v51 = vld [vmem:[%s5278_s26 + $0x118] sm:$0xff]  ;;  %v3849_v60 = vld [vmem:[%s5264_s22 + $0x1e0] sm:$0xf]  ;;  %v4822_v61 = vld [vmem:[%s5264_s22 + $0x1e8] sm:$0xf0] }
  0x3d   : > { %v4804_v59 = vld [vmem:[%s5264_s22 + $0x158] sm:$0xf0]  ;;  %v3850_v1 = vor.u32 %v4822_v61, %v3849_v60  ;;  %v4987_v2 = vld [vmem:[%s5278_s26 + $0x50] sm:$0xff]  ;;  %v3717_v8 = vld [vmem:[%s5264_s22 + $0xd8] sm:$0xf] }
  0x3e   : > { %v3778_v0 = vor.u32 %v4804_v59, %v3777_v58  ;;  %v4771_v7 = vld [vmem:[%s5264_s22 + $0x50] sm:$0xf0]  ;;  %v4789_v9 = vld [vmem:[%s5264_s22 + $0xe0] sm:$0xf0]  ;;  %v3861_v12 = vld [vmem:[%s5264_s22 + $0x1f8] sm:$0xf] }
  0x3f   : > { %1159 = vmatpush.bf16.msra.mxu0 %v4981_v3  ;;  %5058 = vmatpush.bf16.msra.mxu1 %v4981_v3  ;;  %v4807_v11 = vld [vmem:[%s5264_s22 + $0x170] sm:$0xf0]  ;;  %v4825_v13 = vld [vmem:[%s5264_s22 + $0x200] sm:$0xf0]  ;;  %v3718_v15 = vor.u32 %v4789_v9, %v3717_v8  ;;  %v5032_v36 = vld [vmem:[%s5278_s26 + $0x1b8] sm:$0xff] }
  0x40   : > { %5059 = vmatpush.bf16.msra.mxu2 %v4981_v3  ;;  %5060 = vmatpush.bf16.msra.mxu3 %v4981_v3  ;;  %v5011_v3 = vld [vmem:[%s5278_s26 + $0x110] sm:$0xff]  ;;  %v5040_v37 = vld [vmem:[%s5278_s26 + $0x1f8] sm:$0xff]  ;;  %v4777_v41 = vld [vmem:[%s5264_s22 + $0x80] sm:$0xf0] }
  0x41   : > { %v5024_v38 = vld [vmem:[%s5278_s26 + $0x178] sm:$0xff]  ;;  %v3617_v54 = vld [vmem:[%s5264_s22 + $0x8] sm:$0xf]  ;;  %v4833_v55 = vld [vmem:[%s5264_s22 + $0x244] sm:$0xf] }
  0x42   : > { %v5048_v39 = vld [vmem:[%s5278_s26 + $0x238] sm:$0xff]  ;;  %v3995_v56 = vld [vmem:[%s5264_s22 + $0x24c] sm:$0xf0]  ;;  %v4763_v57 = vld [vmem:[%s5264_s22 + $0x10] sm:$0xf0] }
  0x43   : > { %1160 = vmatpush.bf16.msra.mxu0 %v4980_v4  ;;  %5061 = vmatpush.bf16.msra.mxu1 %v4980_v4  ;;  %v3669_v40 = vld [vmem:[%s5264_s22 + $0x78] sm:$0xf]  ;;  %v3993_v58 = vld [vmem:[%s5264_s22 + $0x240] sm:$0xf]  ;;  %v4834_v59 = vld [vmem:[%s5264_s22 + $0x248] sm:$0xf0]  ;;  %v3998_v61 = vor.u32 %v4833_v55, %v3995_v56 }
  0x44   : > { %5062 = vmatpush.bf16.msra.mxu2 %v4980_v4  ;;  %5063 = vmatpush.bf16.msra.mxu3 %v4980_v4  ;;  %v4994_v4 = vld [vmem:[%s5278_s26 + $0x88] sm:$0xff]  ;;  %v3659_v55 = vld [vmem:[%s5264_s22 + $0x6c] sm:$0xf0] }
  0x45   : > { %v3665_v56 = vld [vmem:[%s5264_s22 + $0x68] sm:$0xf] }
  0x47   : > { %1161 = vmatpush.bf16.msra.mxu0 %v4979_v5  ;;  %5064 = vmatpush.bf16.msra.mxu1 %v4979_v5 }
  0x48   : > { %5065 = vmatpush.bf16.msra.mxu2 %v4979_v5  ;;  %5066 = vmatpush.bf16.msra.mxu3 %v4979_v5  ;;  %v5002_v5 = vld [vmem:[%s5278_s26 + $0xc8] sm:$0xff] }
  0x4b   : > { %1162 = vmatpush.bf16.msra.mxu0 %v4978_v6  ;;  %5067 = vmatpush.bf16.msra.mxu1 %v4978_v6 }
  0x4c   : > { %5068 = vmatpush.bf16.msra.mxu2 %v4978_v6  ;;  %5069 = vmatpush.bf16.msra.mxu3 %v4978_v6  ;;  %v3645_v6 = vld [vmem:[%s5264_s22 + $0x48] sm:$0xf] }
  0x4d   : > { %v3646_v14 = vor.u32 %v4771_v7, %v3645_v6  ;;  %v4005_v6 = vld [vmem:[%s5264_s22 + $0x258] sm:$0xf]  ;;  %v4837_v7 = vld [vmem:[%s5264_s22 + $0x260] sm:$0xf0] }
  0x4f   : > { %1163 = vmatpush.bf16.msra.mxu0 %v4977_v10  ;;  %5070 = vmatpush.bf16.msra.mxu1 %v4977_v10 }
  0x50   : > { %5071 = vmatpush.bf16.msra.mxu2 %v4977_v10  ;;  %5072 = vmatpush.bf16.msra.mxu3 %v4977_v10  ;;  %v3789_v10 = vld [vmem:[%s5264_s22 + $0x168] sm:$0xf] }
  0x52   : > { %1164 = vmatmul.bf16.vlgmr.msra.gmra.mxu0 %v3610_v18  ;;  %1194 = vmatmul.bf16.vlgmr.msra.gmra.mxu1 %v3682_v19  ;;  %v4986_v18 = vld [vmem:[%s5278_s26 + $0x48] sm:$0xff] }
  0x53   : > { %1224 = vmatmul.bf16.vlgmr.msra.gmra.mxu2 %v3754_v20  ;;  %1254 = vmatmul.bf16.vlgmr.msra.gmra.mxu3 %v3826_v21  ;;  %v5010_v19 = vld [vmem:[%s5278_s26 + $0x108] sm:$0xff]  ;;  %v4993_v20 = vld [vmem:[%s5278_s26 + $0x80] sm:$0xff] }
  0x54   : > { %1414 = vmatpush.bf16.msrb.mxu2 %v5000_v16  ;;  %2071 = vmatpush.bf16.msrb.mxu3 %v5008_v17  ;;  %v3790_v16 = vor.u32 %v4807_v11, %v3789_v10  ;;  %v3862_v17 = vor.u32 %v4825_v13, %v3861_v12  ;;  %v5001_v21 = vld [vmem:[%s5278_s26 + $0xc0] sm:$0xff]  ;;  %v4006_v11 = vor.u32 %v4837_v7, %v4005_v6  ;;  %v5031_v12 = vld [vmem:[%s5278_s26 + $0x1b0] sm:$0xff]  ;;  %v5030_v6 = vld [vmem:[%s5278_s26 + $0x1a8] sm:$0xff] }
  0x55   : > { %1285 = vmatpush.bf16.msrb.mxu1 %v4992_v22  ;;  %2200 = vmatpush.bf16.msrb.mxu0 %v5016_v23  ;;  %v4985_v22 = vld [vmem:[%s5278_s26 + $0x40] sm:$0xff]  ;;  %v5039_v13 = vld [vmem:[%s5278_s26 + $0x1f0] sm:$0xff]  ;;  %v5038_v7 = vld [vmem:[%s5278_s26 + $0x1e8] sm:$0xff] }
  0x56   : > { %v5009_v23 = vld [vmem:[%s5278_s26 + $0x100] sm:$0xff] }
  0x58   : > { %1415 = vmatpush.bf16.msrb.mxu2 %v4999_v24  ;;  %2072 = vmatpush.bf16.msrb.mxu3 %v5007_v25  ;;  %v3657_v24 = vld [vmem:[%s5264_s22 + $0x60] sm:$0xf]  ;;  %v4774_v25 = vld [vmem:[%s5264_s22 + $0x68] sm:$0xf0] }
  0x59   : > { %1286 = vmatpush.bf16.msrb.mxu1 %v4991_v26  ;;  %2201 = vmatpush.bf16.msrb.mxu0 %v5015_v27  ;;  %v3729_v26 = vld [vmem:[%s5264_s22 + $0xf0] sm:$0xf]  ;;  %v4792_v27 = vld [vmem:[%s5264_s22 + $0xf8] sm:$0xf0]  ;;  %v3658_v32 = vor.u32 %v4774_v25, %v3657_v24 }
  0x5c   : > { %1416 = vmatpush.bf16.msrb.mxu2 %v4998_v28  ;;  %2073 = vmatpush.bf16.msrb.mxu3 %v5006_v29  ;;  %v3801_v28 = vld [vmem:[%s5264_s22 + $0x180] sm:$0xf]  ;;  %v4810_v29 = vld [vmem:[%s5264_s22 + $0x188] sm:$0xf0] }
  0x5d   : > { %1287 = vmatpush.bf16.msrb.mxu1 %v4990_v30  ;;  %2202 = vmatpush.bf16.msrb.mxu0 %v5014_v31  ;;  %v3873_v30 = vld [vmem:[%s5264_s22 + $0x210] sm:$0xf]  ;;  %v4828_v31 = vld [vmem:[%s5264_s22 + $0x218] sm:$0xf0] }
  0x5e   : > { %v3874_v35 = vor.u32 %v4828_v31, %v3873_v30 }
  0x60   : > { %1417 = vmatpush.bf16.msrb.mxu2 %v4997_v33  ;;  %2074 = vmatpush.bf16.msrb.mxu3 %v5005_v34  ;;  %v3730_v33 = vor.u32 %v4792_v27, %v3729_v26  ;;  %v3802_v34 = vor.u32 %v4810_v29, %v3801_v28 }
  0x61   : > { %1288 = vmatpush.bf16.msrb.mxu1 %v4989_v42  ;;  %2203 = vmatpush.bf16.msrb.mxu0 %v5013_v43  ;;  %v3741_v42 = vld [vmem:[%s5264_s22 + $0x108] sm:$0xf]  ;;  %v4795_v43 = vld [vmem:[%s5264_s22 + $0x110] sm:$0xf0] }
  0x62   : > { %1169 = vmatmul.bf16.gmra.mxu0 %v3622_v44  ;;  %1199 = vmatmul.bf16.gmra.mxu1 %v3694_v45  ;;  %v3813_v44 = vld [vmem:[%s5264_s22 + $0x198] sm:$0xf]  ;;  %v4813_v45 = vld [vmem:[%s5264_s22 + $0x1a0] sm:$0xf0] }
  0x63   : > { %1229 = vmatmul.bf16.gmra.mxu2 %v3766_v46  ;;  %1259 = vmatmul.bf16.gmra.mxu3 %v3838_v47  ;;  %v3885_v46 = vld [vmem:[%s5264_s22 + $0x228] sm:$0xf]  ;;  %v4831_v47 = vld [vmem:[%s5264_s22 + $0x230] sm:$0xf0] }
  0x64   : > { %1418 = vmatpush.bf16.msrb.mxu2 %v4996_v48  ;;  %2075 = vmatpush.bf16.msrb.mxu3 %v5004_v49  ;;  %v3670_v48 = vor.u32 %v4777_v41, %v3669_v40  ;;  %v3742_v49 = vor.u32 %v4795_v43, %v3741_v42  ;;  %v4029_v40 = vld [vmem:[%s5264_s22 + $0x288] sm:$0xf]  ;;  %v4843_v41 = vld [vmem:[%s5264_s22 + $0x290] sm:$0xf0] }
  0x65   : > { %1289 = vmatpush.bf16.msrb.mxu1 %v4988_v50  ;;  %2204 = vmatpush.bf16.msrb.mxu0 %v5012_v51  ;;  %v3814_v50 = vor.u32 %v4813_v45, %v3813_v44  ;;  %v3886_v51 = vor.u32 %v4831_v47, %v3885_v46 }
  0x68   : > { %1419 = vmatpush.bf16.msrb.mxu2 %v4995_v52  ;;  %2076 = vmatpush.bf16.msrb.mxu3 %v5003_v53  ;;  %v4761_v52 = vld [vmem:[%s5264_s22 + $0x4] sm:$0xf]  ;;  %v3611_v53 = vld [vmem:[%s5264_s22 + $0xc] sm:$0xf0] }
  0x69   : > { %1290 = vmatpush.bf16.msrb.mxu1 %v4987_v2  ;;  %2205 = vmatpush.bf16.msrb.mxu0 %v5011_v3  ;;  %v3614_v60 = vor.u32 %v4761_v52, %v3611_v53  ;;  %v3629_v2 = vld [vmem:[%s5264_s22 + $0x20] sm:$0xf]  ;;  %v4836_v3 = vld [vmem:[%s5264_s22 + $0x25c] sm:$0xf] }
  0x6c   : > { %1420 = vmatpush.bf16.msrb.mxu2 %v4994_v4  ;;  %2077 = vmatpush.bf16.msrb.mxu3 %v5002_v5  ;;  %v4007_v4 = vld [vmem:[%s5264_s22 + $0x264] sm:$0xf0]  ;;  %v4766_v5 = vld [vmem:[%s5264_s22 + $0x28] sm:$0xf0] }
  0x6d   : > { %1291 = vmatpush.bf16.msrb.mxu1 %v4986_v18  ;;  %2206 = vmatpush.bf16.msrb.mxu0 %v5010_v19  ;;  %v4010_v9 = vor.u32 %v4836_v3, %v4007_v4  ;;  %v3630_v10 = vor.u32 %v4766_v5, %v3629_v2  ;;  %v3641_v18 = vld [vmem:[%s5264_s22 + $0x38] sm:$0xf]  ;;  %v4839_v19 = vld [vmem:[%s5264_s22 + $0x274] sm:$0xf] }
  0x70   : > { %1421 = vmatpush.bf16.msrb.mxu2 %v4993_v20  ;;  %2078 = vmatpush.bf16.msrb.mxu3 %v5001_v21  ;;  %v4019_v20 = vld [vmem:[%s5264_s22 + $0x27c] sm:$0xf0]  ;;  %v4769_v21 = vld [vmem:[%s5264_s22 + $0x40] sm:$0xf0] }
  0x71   : > { %1292 = vmatpush.bf16.msrb.mxu1 %v4985_v22  ;;  %2207 = vmatpush.bf16.msrb.mxu0 %v5009_v23  ;;  %v4017_v22 = vld [vmem:[%s5264_s22 + $0x270] sm:$0xf]  ;;  %v4840_v23 = vld [vmem:[%s5264_s22 + $0x278] sm:$0xf0]  ;;  %v4022_v25 = vor.u32 %v4839_v19, %v4019_v20  ;;  %v3642_v28 = vor.u32 %v4769_v21, %v3641_v18  ;;  %v4055_v18 = vld [vmem:[%s5264_s22 + $0x2c4] sm:$0xf0] }
  0x72   : > { %1174 = vmatmul.bf16.gmra.mxu0 %v3634_v62  ;;  %1204 = vmatmul.bf16.gmra.mxu1 %v3706_v63  ;;  %v3618_v62 = vor.u32 %v4763_v57, %v3617_v54  ;;  %v3994_v63 = vor.u32 %v4834_v59, %v3993_v58  ;;  %v4018_v29 = vor.u32 %v4840_v23, %v4017_v22  ;;  %v4773_v54 = vld [vmem:[%s5264_s22 + $0x64] sm:$0xf]  ;;  %v4043_v58 = vld [vmem:[%s5264_s22 + $0x2ac] sm:$0xf0]  ;;  %v4775_v59 = vld [vmem:[%s5264_s22 + $0x70] sm:$0xf0] }
  0x73   : > { %1234 = vmatmul.bf16.gmra.mxu2 %v3778_v0  ;;  %1264 = vmatmul.bf16.gmra.mxu3 %v3850_v1  ;;  %v4764_v0 = vld [vmem:[%s5264_s22 + $0x1c] sm:$0xf]  ;;  %v3623_v1 = vld [vmem:[%s5264_s22 + $0x24] sm:$0xf0]  ;;  %v4845_v57 = vld [vmem:[%s5264_s22 + $0x2a4] sm:$0xf]  ;;  %v3666_v4 = vor.u32 %v4775_v59, %v3665_v56 }
  0x74   : > { %2986 = vmatpush.bf16.msra.mxu2 %v5032_v36  ;;  %3115 = vmatpush.bf16.msra.mxu3 %v5040_v37  ;;  %v3626_v8 = vor.u32 %v4764_v0, %v3623_v1  ;;  %v3653_v36 = vld [vmem:[%s5264_s22 + $0x50] sm:$0xf]  ;;  %v4842_v37 = vld [vmem:[%s5264_s22 + $0x28c] sm:$0xf]  ;;  %v3662_v0 = vor.u32 %v4773_v54, %v3659_v55  ;;  %v4046_v1 = vor.u32 %v4845_v57, %v4043_v58  ;;  %v4053_v20 = vld [vmem:[%s5264_s22 + $0x2b8] sm:$0xf] }
  0x75   : > { %2329 = vmatpush.bf16.msra.mxu1 %v5024_v38  ;;  %3244 = vmatpush.bf16.msra.mxu0 %v5048_v39  ;;  %v4031_v38 = vld [vmem:[%s5264_s22 + $0x294] sm:$0xf0]  ;;  %v4772_v39 = vld [vmem:[%s5264_s22 + $0x58] sm:$0xf0]  ;;  %v4778_v19 = vld [vmem:[%s5264_s22 + $0x88] sm:$0xf0] }
  0x76   : > { %v4034_v45 = vor.u32 %v4842_v37, %v4031_v38  ;;  %v4849_v21 = vld [vmem:[%s5264_s22 + $0x2c0] sm:$0xf0]  ;;  %v4065_v54 = vld [vmem:[%s5264_s22 + $0x2d0] sm:$0xf]  ;;  %v4852_v55 = vld [vmem:[%s5264_s22 + $0x2d8] sm:$0xf0] }
  0x78   : > { %2987 = vmatpush.bf16.msra.mxu2 %v5031_v12  ;;  %3116 = vmatpush.bf16.msra.mxu3 %v5039_v13  ;;  %v5022_v12 = vld [vmem:[%s5278_s26 + $0x168] sm:$0xff] }
  0x79   : > { %v5046_v13 = vld [vmem:[%s5278_s26 + $0x228] sm:$0xff] }
  0x7c   : > { %2988 = vmatpush.bf16.msra.mxu2 %v5030_v6  ;;  %3117 = vmatpush.bf16.msra.mxu3 %v5038_v7 }
  0x82   : > { %1179 = vmatmul.bf16.gmra.mxu0 %v3646_v14  ;;  %1209 = vmatmul.bf16.gmra.mxu1 %v3718_v15  ;;  %v5023_v14 = vld [vmem:[%s5278_s26 + $0x170] sm:$0xff] }
  0x83   : > { %1239 = vmatmul.bf16.gmra.mxu2 %v3790_v16  ;;  %1269 = vmatmul.bf16.gmra.mxu3 %v3862_v17  ;;  %v5047_v15 = vld [vmem:[%s5278_s26 + $0x230] sm:$0xff]  ;;  %v3635_v17 = vld [vmem:[%s5264_s22 + $0x3c] sm:$0xf0] }
  0x84   : > { %2330 = vmatpush.bf16.msra.mxu1 %v5023_v14  ;;  %3245 = vmatpush.bf16.msra.mxu0 %v5047_v15  ;;  %v4767_v16 = vld [vmem:[%s5264_s22 + $0x34] sm:$0xf]  ;;  %v4776_v14 = vld [vmem:[%s5264_s22 + $0x7c] sm:$0xf]  ;;  %v3671_v15 = vld [vmem:[%s5264_s22 + $0x84] sm:$0xf0] }
  0x85   : > { %v3638_v24 = vor.u32 %v4767_v16, %v3635_v17  ;;  %v3677_v16 = vld [vmem:[%s5264_s22 + $0x80] sm:$0xf]  ;;  %v4848_v17 = vld [vmem:[%s5264_s22 + $0x2bc] sm:$0xf] }
  0x88   : > { %2331 = vmatpush.bf16.msra.mxu1 %v5022_v12  ;;  %3246 = vmatpush.bf16.msra.mxu0 %v5046_v13  ;;  %v4782_v12 = vld [vmem:[%s5264_s22 + $0xac] sm:$0xf]  ;;  %v3695_v13 = vld [vmem:[%s5264_s22 + $0xb4] sm:$0xf0] }
  0x92   : > { %1184 = vmatmul.bf16.gmra.mxu0 %v3658_v32  ;;  %1214 = vmatmul.bf16.gmra.mxu1 %v3730_v33 }
  0x93   : > { %1244 = vmatmul.bf16.gmra.mxu2 %v3802_v34  ;;  %1274 = vmatmul.bf16.gmra.mxu3 %v3874_v35  ;;  %v4770_v34 = vld [vmem:[%s5264_s22 + $0x4c] sm:$0xf]  ;;  %v3647_v35 = vld [vmem:[%s5264_s22 + $0x54] sm:$0xf0] }
  0x94   : > { %v3650_v44 = vor.u32 %v4770_v34, %v3647_v35  ;;  %v3678_v34 = vor.u32 %v4778_v19, %v3677_v16  ;;  %v4054_v35 = vor.u32 %v4849_v21, %v4053_v20  ;;  %v4079_v16 = vld [vmem:[%s5264_s22 + $0x2f4] sm:$0xf0]  ;;  %v4855_v19 = vld [vmem:[%s5264_s22 + $0x2f0] sm:$0xf0] }
  0xa2   : > { %1189 = vmatmul.bf16.gmra.mxu0 %v3670_v48  ;;  %1219 = vmatmul.bf16.gmra.mxu1 %v3742_v49  ;;  %v3654_v48 = vor.u32 %v4772_v39, %v3653_v36  ;;  %v4030_v49 = vor.u32 %v4843_v41, %v4029_v40  ;;  %v4779_v40 = vld [vmem:[%s5264_s22 + $0x94] sm:$0xf]  ;;  %v3683_v41 = vld [vmem:[%s5264_s22 + $0x9c] sm:$0xf0] }
  0xa3   : > { %1249 = vmatmul.bf16.gmra.mxu2 %v3814_v50  ;;  %1279 = vmatmul.bf16.gmra.mxu3 %v3886_v51  ;;  %v3686_v58 = vor.u32 %v4779_v40, %v3683_v41 }
  0xb2   : > { %1293 = vmatmul.bf16.vlgmr.msrb.gmra.mxu1 %v3614_v60  ;;  %2208 = vmatmul.bf16.vlgmr.msrb.gmra.mxu0 %v3998_v61  ;;  %v4041_v60 = vld [vmem:[%s5264_s22 + $0x2a0] sm:$0xf]  ;;  %v4846_v61 = vld [vmem:[%s5264_s22 + $0x2a8] sm:$0xf0] }
  0xb3   : > { %1422 = vmatmul.bf16.vlgmr.msrb.gmra.mxu2 %v3618_v62  ;;  %2079 = vmatmul.bf16.vlgmr.msrb.gmra.mxu3 %v3994_v63  ;;  %v4042_v5 = vor.u32 %v4846_v61, %v4041_v60 }
  0xc2   : > { %1298 = vmatmul.bf16.gmra.mxu1 %v3626_v8  ;;  %2213 = vmatmul.bf16.gmra.mxu0 %v4010_v9 }
  0xc3   : > { %1427 = vmatmul.bf16.gmra.mxu2 %v3630_v10  ;;  %2084 = vmatmul.bf16.gmra.mxu3 %v4006_v11 }
  0xcf   : > { %v5400_v26 = vpop.f32.mrf.mxu0  ;;  %v5402_v27 = vpop.f32.mrf.mxu1 }
  0xd2   : > { %1303 = vmatmul.bf16.gmra.mxu1 %v3638_v24  ;;  %2218 = vmatmul.bf16.gmra.mxu0 %v4022_v25  ;;  %v3674_v24 = vor.u32 %v4776_v14, %v3671_v15  ;;  %v4058_v25 = vor.u32 %v4848_v17, %v4055_v18  ;;  %v3701_v14 = vld [vmem:[%s5264_s22 + $0xb0] sm:$0xf]  ;;  %v4854_v15 = vld [vmem:[%s5264_s22 + $0x2ec] sm:$0xf]  ;;  %v4784_v17 = vld [vmem:[%s5264_s22 + $0xb8] sm:$0xf0] }
  0xd3   : > { %1432 = vmatmul.bf16.gmra.mxu2 %v3642_v28  ;;  %2089 = vmatmul.bf16.gmra.mxu3 %v4018_v29  ;;  %v4077_v18 = vld [vmem:[%s5264_s22 + $0x2e8] sm:$0xf]  ;;  %v3702_v40 = vor.u32 %v4784_v17, %v3701_v14  ;;  %v4091_v14 = vld [vmem:[%s5264_s22 + $0x30c] sm:$0xf0]  ;;  %v4858_v17 = vld [vmem:[%s5264_s22 + $0x308] sm:$0xf0] }
  0xd4   : > { %v4078_v41 = vor.u32 %v4855_v19, %v4077_v18 }
  0xd6   : > { %v5404_v30 = vpop.f32.mrf.mxu2  ;;  %v5406_v31 = vpop.f32.mrf.mxu3 }
  0xd7   : > { %v5408_v32 = vpop.f32.mrf.mxu0  ;;  %v5410_v33 = vpop.f32.mrf.mxu1 }
  0xde   : > { %v5420_v42 = vpop.f32.mrf.mxu2  ;;  %v5422_v43 = vpop.f32.mrf.mxu3 }
  0xdf   : > { %v5424_v46 = vpop.f32.mrf.mxu0  ;;  %v5426_v47 = vpop.f32.mrf.mxu1 }
  0xe2   : > { %1308 = vmatmul.bf16.gmra.mxu1 %v3650_v44  ;;  %2223 = vmatmul.bf16.gmra.mxu0 %v4034_v45  ;;  %v3689_v44 = vld [vmem:[%s5264_s22 + $0x98] sm:$0xf]  ;;  %v4851_v45 = vld [vmem:[%s5264_s22 + $0x2d4] sm:$0xf] }
  0xe3   : > { %1437 = vmatmul.bf16.gmra.mxu2 %v3654_v48  ;;  %2094 = vmatmul.bf16.gmra.mxu3 %v4030_v49  ;;  %v4067_v48 = vld [vmem:[%s5264_s22 + $0x2dc] sm:$0xf0]  ;;  %v4781_v49 = vld [vmem:[%s5264_s22 + $0xa0] sm:$0xf0] }
  0xe4   : > { %v4070_v59 = vor.u32 %v4851_v45, %v4067_v48  ;;  %v5037_v45 = vld [vmem:[%s5278_s26 + $0x1e0] sm:$0xff] }
  0xe5   : > { %3118 = vmatpush.bf16.msra.mxu3 %v5037_v45 }
  0xe6   : > { %v5428_v50 = vpop.f32.mrf.mxu2  ;;  %v5430_v51 = vpop.f32.mrf.mxu3 }
  0xe7   : > { %v5432_v52 = vpop.f32.mrf.mxu0  ;;  %v5434_v53 = vpop.f32.mrf.mxu1 }
  0xee   : > { %v5444_v62 = vpop.f32.mrf.mxu2  ;;  %v5446_v63 = vpop.f32.mrf.mxu3 }
  0xef   : > { %v5448_v2 = vpop.f32.mrf.mxu0  ;;  %v5450_v3 = vpop.f32.mrf.mxu1 }
  0xf2   : > { %1313 = vmatmul.bf16.gmra.mxu1 %v3662_v0  ;;  %2228 = vmatmul.bf16.gmra.mxu0 %v4046_v1  ;;  %v3690_v0 = vor.u32 %v4781_v49, %v3689_v44  ;;  %v4066_v1 = vor.u32 %v4852_v55, %v4065_v54  ;;  %v5029_v44 = vld [vmem:[%s5278_s26 + $0x1a0] sm:$0xff] }
  0xf3   : > { %1442 = vmatmul.bf16.gmra.mxu2 %v3666_v4  ;;  %2099 = vmatmul.bf16.gmra.mxu3 %v4042_v5 }
  0xf4   : > { %2989 = vmatpush.bf16.msra.mxu2 %v5029_v44 }
  0xf6   : > { %v5454_v8 = vpop.f32.mrf.mxu2  ;;  %v5456_v9 = vpop.f32.mrf.mxu3 }
  0xf7   : > { %v5458_v10 = vpop.f32.mrf.mxu0  ;;  %v5460_v11 = vpop.f32.mrf.mxu1 }
  0xfe   : > { %v5472_v22 = vpop.f32.mrf.mxu2  ;;  %v5474_v23 = vpop.f32.mrf.mxu3 }
  0xff   : > { %v5476_v28 = vpop.f32.mrf.mxu0  ;;  %v5478_v29 = vpop.f32.mrf.mxu1 }
 0x102   : > { %1318 = vmatmul.bf16.gmra.mxu1 %v3674_v24  ;;  %2233 = vmatmul.bf16.gmra.mxu0 %v4058_v25  ;;  %v3698_v24 = vor.u32 %v4782_v12, %v3695_v13  ;;  %v4082_v25 = vor.u32 %v4854_v15, %v4079_v16  ;;  %v3713_v12 = vld [vmem:[%s5264_s22 + $0xc8] sm:$0xf]  ;;  %v4857_v13 = vld [vmem:[%s5264_s22 + $0x304] sm:$0xf]  ;;  %v4787_v15 = vld [vmem:[%s5264_s22 + $0xd0] sm:$0xf0] }
 0x103   : > { %1447 = vmatmul.bf16.gmra.mxu2 %v3678_v34  ;;  %2104 = vmatmul.bf16.gmra.mxu3 %v4054_v35  ;;  %v4089_v16 = vld [vmem:[%s5264_s22 + $0x300] sm:$0xf]  ;;  %v3714_v44 = vor.u32 %v4787_v15, %v3713_v12  ;;  %v4788_v15 = vld [vmem:[%s5264_s22 + $0xdc] sm:$0xf] }
 0x104   : > { %v4090_v45 = vor.u32 %v4858_v17, %v4089_v16  ;;  %v3725_v16 = vld [vmem:[%s5264_s22 + $0xe0] sm:$0xf]  ;;  %v4860_v17 = vld [vmem:[%s5264_s22 + $0x31c] sm:$0xf] }
 0x106   : > { %v5480_v36 = vpop.f32.mrf.mxu2  ;;  %v5482_v37 = vpop.f32.mrf.mxu3 }
 0x107   : > { %v5484_v38 = vpop.f32.mrf.mxu0  ;;  %v5486_v39 = vpop.f32.mrf.mxu1 }
 0x10e   : > { %v5496_v56 = vpop.f32.mrf.mxu2  ;;  %v5498_v57 = vpop.f32.mrf.mxu3 }
 0x10f   : > { %v5500_v60 = vpop.f32.mrf.mxu0  ;;  %v5502_v61 = vpop.f32.mrf.mxu1 }
 0x112   : > { %1323 = vmatmul.bf16.gmra.mxu1 %v3686_v58  ;;  %2238 = vmatmul.bf16.gmra.mxu0 %v4070_v59  ;;  %v5021_v58 = vld [vmem:[%s5278_s26 + $0x160] sm:$0xff] }
 0x113   : > { %1452 = vmatmul.bf16.gmra.mxu2 %v3690_v0  ;;  %2109 = vmatmul.bf16.gmra.mxu3 %v4066_v1  ;;  %v5045_v59 = vld [vmem:[%s5278_s26 + $0x220] sm:$0xff]  ;;  %v3707_v1 = vld [vmem:[%s5264_s22 + $0xcc] sm:$0xf0] }
 0x114   : > { %v4785_v0 = vld [vmem:[%s5264_s22 + $0xc4] sm:$0xf]  ;;  %2332 = vmatpush.bf16.msra.mxu1 %v5021_v58  ;;  %3247 = vmatpush.bf16.msra.mxu0 %v5045_v59 }
 0x116   : > { %v5504_v4 = vpop.f32.mrf.mxu2  ;;  %v5506_v5 = vpop.f32.mrf.mxu3 }
 0x117   : > { %6384 = vst [vmem:[#allocation5_spill] sm:$0xff] %v5506_v5  ;;  %v5508_v6 = vpop.f32.mrf.mxu0  ;;  %v5510_v7 = vpop.f32.mrf.mxu1 }
 0x11e   : > { %v5520_v20 = vpop.f32.mrf.mxu2  ;;  %v5522_v21 = vpop.f32.mrf.mxu3 }
 0x11f   : > { %6385 = vst [vmem:[#allocation6_spill] sm:$0xff] %v5522_v21  ;;  %v5524_v34 = vpop.f32.mrf.mxu0  ;;  %v5526_v35 = vpop.f32.mrf.mxu1 }
 0x122   : > { %1328 = vmatmul.bf16.gmra.mxu1 %v3698_v24  ;;  %2243 = vmatmul.bf16.gmra.mxu0 %v4082_v25  ;;  %v3710_v24 = vor.u32 %v4785_v0, %v3707_v1  ;;  %v4094_v25 = vor.u32 %v4857_v13, %v4091_v14 }
 0x123   : > { %1457 = vmatmul.bf16.gmra.mxu2 %v3702_v40  ;;  %2114 = vmatmul.bf16.gmra.mxu3 %v4078_v41 }
 0x126   : > { %v5530_v48 = vpop.f32.mrf.mxu2  ;;  %v5532_v49 = vpop.f32.mrf.mxu3 }
 0x127   : > { %6386 = vst [vmem:[#allocation7_spill] sm:$0xff] %v5532_v49  ;;  %v5534_v54 = vpop.f32.mrf.mxu0  ;;  %v5536_v55 = vpop.f32.mrf.mxu1 }
 0x12e   : > { %v5548_v18 = vpop.f32.mrf.mxu2  ;;  %v5550_v19 = vpop.f32.mrf.mxu3 }
 0x12f   : > { %6387 = vst [vmem:[#allocation8_spill] sm:$0xff] %v5550_v19  ;;  %v1294_v40 = vpop.f32.mrf.mxu1  ;;  %v2209_v41 = vpop.f32.mrf.mxu0 }
 0x130   : > { %v1295_v58 = vadd.f32 %v1294_v40, %v5400_v26  ;;  %v3719_v26 = vld [vmem:[%s5264_s22 + $0xe4] sm:$0xf0]  ;;  %v4101_v40 = vld [vmem:[%s5264_s22 + $0x318] sm:$0xf] }
 0x132   : > { %1333 = vmatmul.bf16.gmra.mxu1 %v3710_v24  ;;  %2248 = vmatmul.bf16.gmra.mxu0 %v4094_v25  ;;  %v4103_v24 = vld [vmem:[%s5264_s22 + $0x324] sm:$0xf0]  ;;  %v4790_v25 = vld [vmem:[%s5264_s22 + $0xe8] sm:$0xf0] }
 0x133   : > { %1462 = vmatmul.bf16.gmra.mxu2 %v3714_v44  ;;  %2119 = vmatmul.bf16.gmra.mxu3 %v4090_v45  ;;  %v4861_v44 = vld [vmem:[%s5264_s22 + $0x320] sm:$0xf0]  ;;  %v3726_v21 = vor.u32 %v4790_v25, %v3725_v16  ;;  %v4791_v16 = vld [vmem:[%s5264_s22 + $0xf4] sm:$0xf] }
 0x134   : > { %v4102_v5 = vor.u32 %v4861_v44, %v4101_v40  ;;  %v4863_v25 = vld [vmem:[%s5264_s22 + $0x334] sm:$0xf]  ;;  %v4793_v40 = vld [vmem:[%s5264_s22 + $0x100] sm:$0xf0]  ;;  %v4864_v44 = vld [vmem:[%s5264_s22 + $0x338] sm:$0xf0] }
 0x136   : > { %v1423_v59 = vpop.f32.mrf.mxu2  ;;  %v2080_v0 = vpop.f32.mrf.mxu3 }
 0x137   : > { %v1424_v1 = vadd.f32 %v1423_v59, %v1295_v58  ;;  %v5559_v12 = vadd.f32 %v2209_v41, %v2080_v0  ;;  %v1296_v13 = vpop.f32.mrf.mxu1  ;;  %v2211_v14 = vpop.f32.mrf.mxu0  ;;  %v3722_v58 = vor.u32 %v4788_v15, %v3719_v26  ;;  %v4106_v41 = vor.u32 %v4860_v17, %v4103_v24  ;;  %v3731_v17 = vld [vmem:[%s5264_s22 + $0xfc] sm:$0xf0]  ;;  %v3737_v24 = vld [vmem:[%s5264_s22 + $0xf8] sm:$0xf] }
 0x138   : > { %v1297_v45 = vadd.f32 %v1296_v13, %v5408_v32 }
 0x139   : > { %6388 = vst [vmem:[#allocation9_spill] sm:$0xff] %v5559_v12 }
 0x13a   : > { %3374 = vst.msk [vmem:[%s5557_s27] sm:$0xff] %vm3373_vm0, %v1424_v1 }
 0x13e   : > { %v1425_v19 = vpop.f32.mrf.mxu2  ;;  %v2082_v49 = vpop.f32.mrf.mxu3 }
 0x13f   : > { %v1426_v59 = vadd.f32 %v1425_v19, %v1297_v45  ;;  %v5572_v0 = vadd.f32 %v2211_v14, %v2082_v49  ;;  %v1299_v12 = vpop.f32.mrf.mxu1  ;;  %v2214_v1 = vpop.f32.mrf.mxu0 }
 0x140   : > { %v1300_v32 = vadd.f32 %v1299_v12, %v5424_v46 }
 0x141   : > { %3375 = vst.msk [vmem:[%s5557_s27 + $0x8] sm:$0xff] %vm3373_vm0, %v1426_v59 }
 0x142   : > { %1338 = vmatmul.bf16.gmra.mxu1 %v3722_v58  ;;  %2253 = vmatmul.bf16.gmra.mxu0 %v4106_v41  ;;  %v3734_v58 = vor.u32 %v4791_v16, %v3731_v17 }
 0x143   : > { %1467 = vmatmul.bf16.gmra.mxu2 %v3726_v21  ;;  %2124 = vmatmul.bf16.gmra.mxu3 %v4102_v5  ;;  %v4115_v21 = vld [vmem:[%s5264_s22 + $0x33c] sm:$0xf0]  ;;  %v4113_v5 = vld [vmem:[%s5264_s22 + $0x330] sm:$0xf] }
 0x144   : > { %v4118_v41 = vor.u32 %v4863_v25, %v4115_v21 }
 0x146   : > { %v1428_v49 = vpop.f32.mrf.mxu2  ;;  %v2085_v19 = vpop.f32.mrf.mxu3 }
 0x147   : > { %v1429_v13 = vadd.f32 %v1428_v49, %v1300_v32  ;;  %v5577_v14 = vadd.f32 %v2214_v1, %v2085_v19  ;;  %v1301_v15 = vpop.f32.mrf.mxu1  ;;  %v2216_v26 = vpop.f32.mrf.mxu0  ;;  %v3738_v19 = vor.u32 %v4793_v40, %v3737_v24 }
 0x148   : > { %v1302_v46 = vadd.f32 %v1301_v15, %v5432_v52  ;;  %v5028_v52 = vld [vmem:[%s5278_s26 + $0x198] sm:$0xff] }
 0x149   : > { %3376 = vst.msk [vmem:[%s5557_s27 + $0x10] sm:$0xff] %vm3373_vm0, %v1429_v13  ;;  %v4114_v13 = vor.u32 %v4864_v44, %v4113_v5  ;;  %v5036_v15 = vld [vmem:[%s5278_s26 + $0x1d8] sm:$0xff]  ;;  %2990 = vmatpush.bf16.msra.mxu2 %v5028_v52 }
 0x14a   : > { %3119 = vmatpush.bf16.msra.mxu3 %v5036_v15  ;;  %v5020_v5 = vld [vmem:[%s5278_s26 + $0x158] sm:$0xff] }
 0x14b   : > { %v5044_v44 = vld [vmem:[%s5278_s26 + $0x218] sm:$0xff]  ;;  %2333 = vmatpush.bf16.msra.mxu1 %v5020_v5 }
 0x14c   : > { %3248 = vmatpush.bf16.msra.mxu0 %v5044_v44 }
 0x14e   : > { %v1430_v12 = vpop.f32.mrf.mxu2  ;;  %v2087_v45 = vpop.f32.mrf.mxu3 }
 0x14f   : > { %v1431_v59 = vadd.f32 %v1430_v12, %v1302_v46  ;;  %v5590_v1 = vadd.f32 %v2216_v26, %v2087_v45  ;;  %v1304_v32 = vpop.f32.mrf.mxu1  ;;  %v2219_v49 = vpop.f32.mrf.mxu0  ;;  %v4794_v46 = vld [vmem:[%s5264_s22 + $0x10c] sm:$0xf]  ;;  %v3743_v12 = vld [vmem:[%s5264_s22 + $0x114] sm:$0xf0] }
 0x150   : > { %v1305_v26 = vadd.f32 %v1304_v32, %v5448_v2  ;;  %v3749_v2 = vld [vmem:[%s5264_s22 + $0x110] sm:$0xf]  ;;  %v4866_v45 = vld [vmem:[%s5264_s22 + $0x34c] sm:$0xf]  ;;  %v4867_v32 = vld [vmem:[%s5264_s22 + $0x350] sm:$0xf0]  ;;  %v3746_v52 = vor.u32 %v4794_v46, %v3743_v12 }
 0x151   : > { %3377 = vst.msk [vmem:[%s5557_s27 + $0x18] sm:$0xff] %vm3373_vm0, %v1431_v59  ;;  %v4125_v59 = vld [vmem:[%s5264_s22 + $0x348] sm:$0xf] }
 0x152   : > { %1343 = vmatmul.bf16.gmra.mxu1 %v3734_v58  ;;  %2258 = vmatmul.bf16.gmra.mxu0 %v4118_v41  ;;  %v4127_v58 = vld [vmem:[%s5264_s22 + $0x354] sm:$0xf0]  ;;  %v4796_v41 = vld [vmem:[%s5264_s22 + $0x118] sm:$0xf0]  ;;  %v4126_v5 = vor.u32 %v4867_v32, %v4125_v59  ;;  %v4869_v59 = vld [vmem:[%s5264_s22 + $0x364] sm:$0xf] }
 0x153   : > { %1472 = vmatmul.bf16.gmra.mxu2 %v3738_v19  ;;  %2129 = vmatmul.bf16.gmra.mxu3 %v4114_v13  ;;  %v4130_v15 = vor.u32 %v4866_v45, %v4127_v58  ;;  %v4797_v45 = vld [vmem:[%s5264_s22 + $0x124] sm:$0xf]  ;;  %v3755_v58 = vld [vmem:[%s5264_s22 + $0x12c] sm:$0xf0]  ;;  %v4799_v32 = vld [vmem:[%s5264_s22 + $0x130] sm:$0xf0] }
 0x156   : > { %v1433_v16 = vpop.f32.mrf.mxu2  ;;  %v2090_v17 = vpop.f32.mrf.mxu3 }
 0x157   : > { %v1434_v24 = vadd.f32 %v1433_v16, %v1305_v26  ;;  %v5597_v25 = vadd.f32 %v2219_v49, %v2090_v17  ;;  %v1306_v21 = vpop.f32.mrf.mxu1  ;;  %v2221_v40 = vpop.f32.mrf.mxu0 }
 0x158   : > { %v1307_v49 = vadd.f32 %v1306_v21, %v5458_v10 }
 0x159   : > { %6389 = vst [vmem:[#allocation10_spill] sm:$0xff] %v5597_v25  ;;  %v3750_v25 = vor.u32 %v4796_v41, %v3749_v2  ;;  %v3761_v41 = vld [vmem:[%s5264_s22 + $0x128] sm:$0xf] }
 0x15a   : > { %3378 = vst.msk [vmem:[%s5557_s27 + $0x20] sm:$0xff] %vm3373_vm0, %v1434_v24 }
 0x15e   : > { %v1435_v19 = vpop.f32.mrf.mxu2  ;;  %v2092_v13 = vpop.f32.mrf.mxu3 }
 0x15f   : > { %v1436_v26 = vadd.f32 %v1435_v19, %v1307_v49  ;;  %v5612_v16 = vadd.f32 %v2221_v40, %v2092_v13  ;;  %v1309_v17 = vpop.f32.mrf.mxu1  ;;  %v2224_v24 = vpop.f32.mrf.mxu0  ;;  %v4137_v49 = vld [vmem:[%s5264_s22 + $0x360] sm:$0xf]  ;;  %v4870_v19 = vld [vmem:[%s5264_s22 + $0x368] sm:$0xf0] }
 0x160   : > { %v1310_v10 = vadd.f32 %v1309_v17, %v5476_v28 }
 0x161   : > { %3379 = vst.msk [vmem:[%s5557_s27 + $0x28] sm:$0xff] %vm3373_vm0, %v1436_v26 }
 0x162   : > { %1348 = vmatmul.bf16.gmra.mxu1 %v3746_v52  ;;  %2263 = vmatmul.bf16.gmra.mxu0 %v4130_v15  ;;  %v3758_v15 = vor.u32 %v4797_v45, %v3755_v58 }
 0x163   : > { %1477 = vmatmul.bf16.gmra.mxu2 %v3750_v25  ;;  %2134 = vmatmul.bf16.gmra.mxu3 %v4126_v5  ;;  %v4139_v25 = vld [vmem:[%s5264_s22 + $0x36c] sm:$0xf0] }
 0x164   : > { %v4142_v26 = vor.u32 %v4869_v59, %v4139_v25  ;;  %v4800_v59 = vld [vmem:[%s5264_s22 + $0x13c] sm:$0xf]  ;;  %v3767_v25 = vld [vmem:[%s5264_s22 + $0x144] sm:$0xf0] }
 0x166   : > { %v1438_v21 = vpop.f32.mrf.mxu2  ;;  %v2095_v40 = vpop.f32.mrf.mxu3 }
 0x167   : > { %v1439_v44 = vadd.f32 %v1438_v21, %v1310_v10  ;;  %v5617_v46 = vadd.f32 %v2224_v24, %v2095_v40  ;;  %v1311_v12 = vpop.f32.mrf.mxu1  ;;  %v2226_v2 = vpop.f32.mrf.mxu0  ;;  %v3762_v21 = vor.u32 %v4799_v32, %v3761_v41  ;;  %v4138_v40 = vor.u32 %v4870_v19, %v4137_v49  ;;  %v3773_v32 = vld [vmem:[%s5264_s22 + $0x140] sm:$0xf]  ;;  %v4872_v49 = vld [vmem:[%s5264_s22 + $0x37c] sm:$0xf]  ;;  %v4151_v19 = vld [vmem:[%s5264_s22 + $0x384] sm:$0xf0] }
 0x168   : > { %v1312_v28 = vadd.f32 %v1311_v12, %v5484_v38 }
 0x169   : > { %3380 = vst.msk [vmem:[%s5557_s27 + $0x30] sm:$0xff] %vm3373_vm0, %v1439_v44 }
 0x16e   : > { %v1440_v13 = vpop.f32.mrf.mxu2  ;;  %v2097_v52 = vpop.f32.mrf.mxu3 }
 0x16f   : > { %v1441_v17 = vadd.f32 %v1440_v13, %v1312_v28  ;;  %v5630_v24 = vadd.f32 %v2226_v2, %v2097_v52  ;;  %v1314_v5 = vpop.f32.mrf.mxu1  ;;  %v2229_v10 = vpop.f32.mrf.mxu0  ;;  %v4802_v28 = vld [vmem:[%s5264_s22 + $0x148] sm:$0xf0]  ;;  %v4149_v13 = vld [vmem:[%s5264_s22 + $0x378] sm:$0xf]  ;;  %v4873_v52 = vld [vmem:[%s5264_s22 + $0x380] sm:$0xf0] }
 0x170   : > { %v1315_v38 = vadd.f32 %v1314_v5, %v5500_v60  ;;  %v4154_v5 = vor.u32 %v4872_v49, %v4151_v19 }
 0x171   : > { %3381 = vst.msk [vmem:[%s5557_s27 + $0x38] sm:$0xff] %vm3373_vm0, %v1441_v17  ;;  %v3770_v17 = vor.u32 %v4800_v59, %v3767_v25 }
 0x172   : > { %1353 = vmatmul.bf16.gmra.mxu1 %v3758_v15  ;;  %2268 = vmatmul.bf16.gmra.mxu0 %v4142_v26 }
 0x173   : > { %1482 = vmatmul.bf16.gmra.mxu2 %v3762_v21  ;;  %2139 = vmatmul.bf16.gmra.mxu3 %v4138_v40 }
 0x176   : > { %v1443_v44 = vpop.f32.mrf.mxu2  ;;  %v2100_v12 = vpop.f32.mrf.mxu3 }
 0x177   : > { %v1444_v2 = vadd.f32 %v1443_v44, %v1315_v38  ;;  %v5635_v45 = vadd.f32 %v2229_v10, %v2100_v12  ;;  %v1316_v58 = vpop.f32.mrf.mxu1  ;;  %v2231_v41 = vpop.f32.mrf.mxu0  ;;  %v3774_v44 = vor.u32 %v4802_v28, %v3773_v32  ;;  %v4150_v12 = vor.u32 %v4873_v52, %v4149_v13  ;;  %v5019_v28 = vld [vmem:[%s5278_s26 + $0x150] sm:$0xff] }
 0x178   : > { %v1317_v60 = vadd.f32 %v1316_v58, %v5508_v6  ;;  %v5027_v6 = vld [vmem:[%s5278_s26 + $0x190] sm:$0xff]  ;;  %2334 = vmatpush.bf16.msra.mxu1 %v5019_v28 }
 0x179   : > { %3382 = vst.msk [vmem:[%s5557_s27 + $0x40] sm:$0xff] %vm3373_vm0, %v1444_v2  ;;  %v5035_v2 = vld [vmem:[%s5278_s26 + $0x1d0] sm:$0xff]  ;;  %2991 = vmatpush.bf16.msra.mxu2 %v5027_v6 }
 0x17a   : > { %3120 = vmatpush.bf16.msra.mxu3 %v5035_v2  ;;  %v5043_v13 = vld [vmem:[%s5278_s26 + $0x210] sm:$0xff] }
 0x17b   : > { %v4803_v52 = vld [vmem:[%s5264_s22 + $0x154] sm:$0xf]  ;;  %3249 = vmatpush.bf16.msra.mxu0 %v5043_v13 }
 0x17e   : > { %v1445_v15 = vpop.f32.mrf.mxu2  ;;  %v2102_v26 = vpop.f32.mrf.mxu3 }
 0x17f   : > { %v1446_v10 = vadd.f32 %v1445_v15, %v1317_v60  ;;  %v5648_v21 = vadd.f32 %v2231_v41, %v2102_v26  ;;  %v1319_v40 = vpop.f32.mrf.mxu1  ;;  %v2234_v38 = vpop.f32.mrf.mxu0  ;;  %v3779_v60 = vld [vmem:[%s5264_s22 + $0x15c] sm:$0xf0]  ;;  %v4875_v15 = vld [vmem:[%s5264_s22 + $0x394] sm:$0xf] }
 0x180   : > { %v1320_v58 = vadd.f32 %v1319_v40, %v5524_v34  ;;  %v3785_v34 = vld [vmem:[%s5264_s22 + $0x158] sm:$0xf]  ;;  %v4163_v26 = vld [vmem:[%s5264_s22 + $0x39c] sm:$0xf0] }
 0x181   : > { %3383 = vst.msk [vmem:[%s5557_s27 + $0x48] sm:$0xff] %vm3373_vm0, %v1446_v10  ;;  %v4876_v10 = vld [vmem:[%s5264_s22 + $0x398] sm:$0xf0]  ;;  %v4166_v6 = vor.u32 %v4875_v15, %v4163_v26  ;;  %v4806_v15 = vld [vmem:[%s5264_s22 + $0x16c] sm:$0xf] }
 0x182   : > { %1358 = vmatmul.bf16.gmra.mxu1 %v3770_v17  ;;  %2273 = vmatmul.bf16.gmra.mxu0 %v4154_v5  ;;  %v4805_v17 = vld [vmem:[%s5264_s22 + $0x160] sm:$0xf0]  ;;  %v4161_v5 = vld [vmem:[%s5264_s22 + $0x390] sm:$0xf]  ;;  %v3791_v26 = vld [vmem:[%s5264_s22 + $0x174] sm:$0xf0] }
 0x183   : > { %1487 = vmatmul.bf16.gmra.mxu2 %v3774_v44  ;;  %2144 = vmatmul.bf16.gmra.mxu3 %v4150_v12  ;;  %v3782_v12 = vor.u32 %v4803_v52, %v3779_v60  ;;  %v4162_v28 = vor.u32 %v4876_v10, %v4161_v5  ;;  %v4878_v5 = vld [vmem:[%s5264_s22 + $0x3ac] sm:$0xf]  ;;  %v4175_v10 = vld [vmem:[%s5264_s22 + $0x3b4] sm:$0xf0] }
 0x186   : > { %v1448_v41 = vpop.f32.mrf.mxu2  ;;  %v2105_v59 = vpop.f32.mrf.mxu3 }
 0x187   : > { %v1449_v25 = vadd.f32 %v1448_v41, %v1320_v58  ;;  %v5655_v32 = vadd.f32 %v2234_v38, %v2105_v59  ;;  %v1321_v49 = vpop.f32.mrf.mxu1  ;;  %v2236_v19 = vpop.f32.mrf.mxu0 }
 0x188   : > { %v1322_v40 = vadd.f32 %v1321_v49, %v5534_v54 }
 0x189   : > { %3384 = vst.msk [vmem:[%s5557_s27 + $0x50] sm:$0xff] %vm3373_vm0, %v1449_v25  ;;  %v3786_v25 = vor.u32 %v4805_v17, %v3785_v34  ;;  %v3797_v17 = vld [vmem:[%s5264_s22 + $0x170] sm:$0xf] }
 0x18e   : > { %v1450_v38 = vpop.f32.mrf.mxu2  ;;  %v2107_v44 = vpop.f32.mrf.mxu3 }
 0x18f   : > { %v1451_v2 = vadd.f32 %v1450_v38, %v1322_v40  ;;  %v5670_v58 = vadd.f32 %v2236_v19, %v2107_v44  ;;  %v1324_v41 = vpop.f32.mrf.mxu1  ;;  %v2239_v59 = vpop.f32.mrf.mxu0  ;;  %v4808_v40 = vld [vmem:[%s5264_s22 + $0x178] sm:$0xf0]  ;;  %v4173_v38 = vld [vmem:[%s5264_s22 + $0x3a8] sm:$0xf]  ;;  %v4879_v44 = vld [vmem:[%s5264_s22 + $0x3b0] sm:$0xf0] }
 0x190   : > { %v1325_v54 = vadd.f32 %v1324_v41, %v5402_v27  ;;  %v4178_v41 = vor.u32 %v4878_v5, %v4175_v10  ;;  %v4809_v5 = vld [vmem:[%s5264_s22 + $0x184] sm:$0xf]  ;;  %v3803_v10 = vld [vmem:[%s5264_s22 + $0x18c] sm:$0xf0] }
 0x191   : > { %3385 = vst.msk [vmem:[%s5557_s27 + $0x58] sm:$0xff] %vm3373_vm0, %v1451_v2  ;;  %v3794_v2 = vor.u32 %v4806_v15, %v3791_v26 }
 0x192   : > { %1363 = vmatmul.bf16.gmra.mxu1 %v3782_v12  ;;  %2278 = vmatmul.bf16.gmra.mxu0 %v4166_v6 }
 0x193   : > { %1492 = vmatmul.bf16.gmra.mxu2 %v3786_v25  ;;  %2149 = vmatmul.bf16.gmra.mxu3 %v4162_v28 }
 0x196   : > { %v1453_v49 = vpop.f32.mrf.mxu2  ;;  %v2110_v19 = vpop.f32.mrf.mxu3 }
 0x197   : > { %v1454_v13 = vadd.f32 %v1453_v49, %v1325_v54  ;;  %v5675_v52 = vadd.f32 %v2239_v59, %v2110_v19  ;;  %v1326_v60 = vpop.f32.mrf.mxu1  ;;  %v2241_v34 = vpop.f32.mrf.mxu0  ;;  %v3798_v49 = vor.u32 %v4808_v40, %v3797_v17  ;;  %v4174_v19 = vor.u32 %v4879_v44, %v4173_v38  ;;  %v3809_v40 = vld [vmem:[%s5264_s22 + $0x188] sm:$0xf]  ;;  %v4881_v38 = vld [vmem:[%s5264_s22 + $0x3c4] sm:$0xf]  ;;  %v4187_v44 = vld [vmem:[%s5264_s22 + $0x3cc] sm:$0xf0] }
 0x198   : > { %v1327_v27 = vadd.f32 %v1326_v60, %v5410_v33 }
 0x199   : > { %3386 = vst.msk [vmem:[%s5557_s27 + $0x60] sm:$0xff] %vm3373_vm0, %v1454_v13 }
 0x19e   : > { %v1455_v12 = vpop.f32.mrf.mxu2  ;;  %v2112_v6 = vpop.f32.mrf.mxu3 }
 0x19f   : > { %v1456_v59 = vadd.f32 %v1455_v12, %v1327_v27  ;;  %v5688_v25 = vadd.f32 %v2241_v34, %v2112_v6  ;;  %v1329_v28 = vpop.f32.mrf.mxu1  ;;  %v2244_v54 = vpop.f32.mrf.mxu0  ;;  %v4811_v27 = vld [vmem:[%s5264_s22 + $0x190] sm:$0xf0]  ;;  %v4185_v12 = vld [vmem:[%s5264_s22 + $0x3c0] sm:$0xf]  ;;  %v4882_v6 = vld [vmem:[%s5264_s22 + $0x3c8] sm:$0xf0] }
 0x1a0   : > { %v1330_v33 = vadd.f32 %v1329_v28, %v5426_v47  ;;  %v4190_v28 = vor.u32 %v4881_v38, %v4187_v44 }
 0x1a1   : > { %3387 = vst.msk [vmem:[%s5557_s27 + $0x68] sm:$0xff] %vm3373_vm0, %v1456_v59  ;;  %v3806_v59 = vor.u32 %v4809_v5, %v3803_v10 }
 0x1a2   : > { %1368 = vmatmul.bf16.gmra.mxu1 %v3794_v2  ;;  %2283 = vmatmul.bf16.gmra.mxu0 %v4178_v41 }
 0x1a3   : > { %1497 = vmatmul.bf16.gmra.mxu2 %v3798_v49  ;;  %2154 = vmatmul.bf16.gmra.mxu3 %v4174_v19 }
 0x1a6   : > { %v1458_v13 = vpop.f32.mrf.mxu2  ;;  %v2115_v60 = vpop.f32.mrf.mxu3 }
 0x1a7   : > { %v1459_v34 = vadd.f32 %v1458_v13, %v1330_v33  ;;  %v5693_v15 = vadd.f32 %v2244_v54, %v2115_v60  ;;  %v1331_v26 = vpop.f32.mrf.mxu1  ;;  %v2246_v17 = vpop.f32.mrf.mxu0  ;;  %v3810_v13 = vor.u32 %v4811_v27, %v3809_v40  ;;  %v4186_v60 = vor.u32 %v4882_v6, %v4185_v12  ;;  %v5018_v27 = vld [vmem:[%s5278_s26 + $0x148] sm:$0xff]  ;;  %v4812_v6 = vld [vmem:[%s5264_s22 + $0x19c] sm:$0xf] }
 0x1a8   : > { %v1332_v47 = vadd.f32 %v1331_v26, %v5434_v53  ;;  %v5026_v53 = vld [vmem:[%s5278_s26 + $0x188] sm:$0xff]  ;;  %2335 = vmatpush.bf16.msra.mxu1 %v5018_v27 }
 0x1a9   : > { %3388 = vst.msk [vmem:[%s5557_s27 + $0x70] sm:$0xff] %vm3373_vm0, %v1459_v34  ;;  %v5034_v34 = vld [vmem:[%s5278_s26 + $0x1c8] sm:$0xff]  ;;  %2992 = vmatpush.bf16.msra.mxu2 %v5026_v53 }
 0x1aa   : > { %3121 = vmatpush.bf16.msra.mxu3 %v5034_v34  ;;  %v5042_v12 = vld [vmem:[%s5278_s26 + $0x208] sm:$0xff] }
 0x1ab   : > { %3250 = vmatpush.bf16.msra.mxu0 %v5042_v12 }
 0x1ae   : > { %v1460_v2 = vpop.f32.mrf.mxu2  ;;  %v2117_v41 = vpop.f32.mrf.mxu3 }
 0x1af   : > { %v1461_v54 = vadd.f32 %v1460_v2, %v1332_v47  ;;  %v5706_v49 = vadd.f32 %v2246_v17, %v2117_v41  ;;  %v1334_v19 = vpop.f32.mrf.mxu1  ;;  %v2249_v33 = vpop.f32.mrf.mxu0  ;;  %v3815_v47 = vld [vmem:[%s5264_s22 + $0x1a4] sm:$0xf0]  ;;  %v4884_v2 = vld [vmem:[%s5264_s22 + $0x3dc] sm:$0xf] }
 0x1b0   : > { %v1335_v26 = vadd.f32 %v1334_v19, %v5450_v3  ;;  %v3821_v3 = vld [vmem:[%s5264_s22 + $0x1a0] sm:$0xf]  ;;  %v4199_v41 = vld [vmem:[%s5264_s22 + $0x3e4] sm:$0xf0] }
 0x1b1   : > { %3389 = vst.msk [vmem:[%s5557_s27 + $0x78] sm:$0xff] %vm3373_vm0, %v1461_v54  ;;  %v4885_v54 = vld [vmem:[%s5264_s22 + $0x3e0] sm:$0xf0]  ;;  %v4202_v53 = vor.u32 %v4884_v2, %v4199_v41  ;;  %v4815_v2 = vld [vmem:[%s5264_s22 + $0x1b4] sm:$0xf] }
 0x1b2   : > { %1373 = vmatmul.bf16.gmra.mxu1 %v3806_v59  ;;  %2288 = vmatmul.bf16.gmra.mxu0 %v4190_v28  ;;  %v4814_v59 = vld [vmem:[%s5264_s22 + $0x1a8] sm:$0xf0]  ;;  %v4197_v28 = vld [vmem:[%s5264_s22 + $0x3d8] sm:$0xf]  ;;  %v3827_v41 = vld [vmem:[%s5264_s22 + $0x1bc] sm:$0xf0] }
 0x1b3   : > { %1502 = vmatmul.bf16.gmra.mxu2 %v3810_v13  ;;  %2159 = vmatmul.bf16.gmra.mxu3 %v4186_v60  ;;  %v3818_v60 = vor.u32 %v4812_v6, %v3815_v47  ;;  %v4198_v27 = vor.u32 %v4885_v54, %v4197_v28  ;;  %v4887_v28 = vld [vmem:[%s5264_s22 + $0x3f4] sm:$0xf]  ;;  %v4211_v54 = vld [vmem:[%s5264_s22 + $0x3fc] sm:$0xf0] }
 0x1b6   : > { %v1463_v17 = vpop.f32.mrf.mxu2  ;;  %v2120_v5 = vpop.f32.mrf.mxu3 }
 0x1b7   : > { %v1464_v10 = vadd.f32 %v1463_v17, %v1335_v26  ;;  %v5713_v40 = vadd.f32 %v2249_v33, %v2120_v5  ;;  %v1336_v38 = vpop.f32.mrf.mxu1  ;;  %v2251_v44 = vpop.f32.mrf.mxu0 }
 0x1b8   : > { %v1337_v19 = vadd.f32 %v1336_v38, %v5460_v11 }
 0x1b9   : > { %3390 = vst.msk [vmem:[%s5557_s27 + $0x80] sm:$0xff] %vm3373_vm0, %v1464_v10  ;;  %v3822_v10 = vor.u32 %v4814_v59, %v3821_v3  ;;  %v3833_v59 = vld [vmem:[%s5264_s22 + $0x1b8] sm:$0xf] }
 0x1be   : > { %v1465_v33 = vpop.f32.mrf.mxu2  ;;  %v2122_v13 = vpop.f32.mrf.mxu3 }
 0x1bf   : > { %v1466_v34 = vadd.f32 %v1465_v33, %v1337_v19  ;;  %v5728_v26 = vadd.f32 %v2251_v44, %v2122_v13  ;;  %v1339_v17 = vpop.f32.mrf.mxu1  ;;  %v2254_v5 = vpop.f32.mrf.mxu0  ;;  %v4817_v19 = vld [vmem:[%s5264_s22 + $0x1c0] sm:$0xf0]  ;;  %v4209_v33 = vld [vmem:[%s5264_s22 + $0x3f0] sm:$0xf]  ;;  %v4888_v13 = vld [vmem:[%s5264_s22 + $0x3f8] sm:$0xf0] }
 0x1c0   : > { %v1340_v11 = vadd.f32 %v1339_v17, %v5478_v29  ;;  %v4214_v17 = vor.u32 %v4887_v28, %v4211_v54  ;;  %v4818_v28 = vld [vmem:[%s5264_s22 + $0x1cc] sm:$0xf]  ;;  %v3839_v54 = vld [vmem:[%s5264_s22 + $0x1d4] sm:$0xf0] }
 0x1c1   : > { %3391 = vst.msk [vmem:[%s5557_s27 + $0x88] sm:$0xff] %vm3373_vm0, %v1466_v34  ;;  %v3830_v34 = vor.u32 %v4815_v2, %v3827_v41 }
 0x1c2   : > { %1378 = vmatmul.bf16.gmra.mxu1 %v3818_v60  ;;  %2293 = vmatmul.bf16.gmra.mxu0 %v4202_v53 }
 0x1c3   : > { %1507 = vmatmul.bf16.gmra.mxu2 %v3822_v10  ;;  %2164 = vmatmul.bf16.gmra.mxu3 %v4198_v27 }
 0x1c6   : > { %v1468_v38 = vpop.f32.mrf.mxu2  ;;  %v2125_v44 = vpop.f32.mrf.mxu3 }
 0x1c7   : > { %v1469_v12 = vadd.f32 %v1468_v38, %v1340_v11  ;;  %v5733_v6 = vadd.f32 %v2254_v5, %v2125_v44  ;;  %v1341_v47 = vpop.f32.mrf.mxu1  ;;  %v2256_v3 = vpop.f32.mrf.mxu0  ;;  %v3834_v38 = vor.u32 %v4817_v19, %v3833_v59  ;;  %v4210_v44 = vor.u32 %v4888_v13, %v4209_v33  ;;  %v3845_v19 = vld [vmem:[%s5264_s22 + $0x1d0] sm:$0xf]  ;;  %v4890_v33 = vld [vmem:[%s5264_s22 + $0x40c] sm:$0xf]  ;;  %v4223_v13 = vld [vmem:[%s5264_s22 + $0x414] sm:$0xf0] }
 0x1c8   : > { %v1342_v29 = vadd.f32 %v1341_v47, %v5486_v39 }
 0x1c9   : > { %3392 = vst.msk [vmem:[%s5557_s27 + $0x90] sm:$0xff] %vm3373_vm0, %v1469_v12 }
 0x1ce   : > { %v1470_v60 = vpop.f32.mrf.mxu2  ;;  %v2127_v53 = vpop.f32.mrf.mxu3 }
 0x1cf   : > { %v1471_v5 = vadd.f32 %v1470_v60, %v1342_v29  ;;  %v5746_v10 = vadd.f32 %v2256_v3, %v2127_v53  ;;  %v1344_v27 = vpop.f32.mrf.mxu1  ;;  %v2259_v11 = vpop.f32.mrf.mxu0  ;;  %v4820_v29 = vld [vmem:[%s5264_s22 + $0x1d8] sm:$0xf0]  ;;  %v4221_v60 = vld [vmem:[%s5264_s22 + $0x408] sm:$0xf]  ;;  %v4891_v53 = vld [vmem:[%s5264_s22 + $0x410] sm:$0xf0] }
 0x1d0   : > { %v1345_v39 = vadd.f32 %v1344_v27, %v5502_v61  ;;  %v4226_v27 = vor.u32 %v4890_v33, %v4223_v13 }
 0x1d1   : > { %3393 = vst.msk [vmem:[%s5557_s27 + $0x98] sm:$0xff] %vm3373_vm0, %v1471_v5  ;;  %v3842_v5 = vor.u32 %v4818_v28, %v3839_v54 }
 0x1d2   : > { %1383 = vmatmul.bf16.gmra.mxu1 %v3830_v34  ;;  %2298 = vmatmul.bf16.gmra.mxu0 %v4214_v17 }
 0x1d3   : > { %1512 = vmatmul.bf16.gmra.mxu2 %v3834_v38  ;;  %2169 = vmatmul.bf16.gmra.mxu3 %v4210_v44 }
 0x1d6   : > { %v1473_v12 = vpop.f32.mrf.mxu2  ;;  %v2130_v47 = vpop.f32.mrf.mxu3 }
 0x1d7   : > { %v1474_v3 = vadd.f32 %v1473_v12, %v1345_v39  ;;  %v5751_v2 = vadd.f32 %v2259_v11, %v2130_v47  ;;  %v1346_v41 = vpop.f32.mrf.mxu1  ;;  %v2261_v59 = vpop.f32.mrf.mxu0  ;;  %v3846_v12 = vor.u32 %v4820_v29, %v3845_v19  ;;  %v4222_v47 = vor.u32 %v4891_v53, %v4221_v60  ;;  %v5017_v29 = vld [vmem:[%s5278_s26 + $0x140] sm:$0xff] }
 0x1d8   : > { %v1347_v61 = vadd.f32 %v1346_v41, %v5510_v7  ;;  %v5025_v7 = vld [vmem:[%s5278_s26 + $0x180] sm:$0xff]  ;;  %2336 = vmatpush.bf16.msra.mxu1 %v5017_v29 }
 0x1d9   : > { %3394 = vst.msk [vmem:[%s5557_s27 + $0xa0] sm:$0xff] %vm3373_vm0, %v1474_v3  ;;  %v5033_v3 = vld [vmem:[%s5278_s26 + $0x1c0] sm:$0xff]  ;;  %2993 = vmatpush.bf16.msra.mxu2 %v5025_v7 }
 0x1da   : > { %3122 = vmatpush.bf16.msra.mxu3 %v5033_v3  ;;  %v5041_v60 = vld [vmem:[%s5278_s26 + $0x200] sm:$0xff] }
 0x1db   : > { %v4821_v53 = vld [vmem:[%s5264_s22 + $0x1e4] sm:$0xf]  ;;  %3251 = vmatpush.bf16.msra.mxu0 %v5041_v60 }
 0x1de   : > { %v1475_v34 = vpop.f32.mrf.mxu2  ;;  %v2132_v17 = vpop.f32.mrf.mxu3 }
 0x1df   : > { %v1476_v11 = vadd.f32 %v1475_v34, %v1347_v61  ;;  %v5764_v38 = vadd.f32 %v2261_v59, %v2132_v17  ;;  %v1349_v44 = vpop.f32.mrf.mxu1  ;;  %v2264_v39 = vpop.f32.mrf.mxu0  ;;  %v3851_v61 = vld [vmem:[%s5264_s22 + $0x1ec] sm:$0xf0]  ;;  %v4893_v34 = vld [vmem:[%s5264_s22 + $0x424] sm:$0xf] }
 0x1e0   : > { %v1350_v41 = vadd.f32 %v1349_v44, %v5526_v35  ;;  %v3857_v35 = vld [vmem:[%s5264_s22 + $0x1e8] sm:$0xf]  ;;  %v4235_v17 = vld [vmem:[%s5264_s22 + $0x42c] sm:$0xf0] }
 0x1e1   : > { %3395 = vst.msk [vmem:[%s5557_s27 + $0xa8] sm:$0xff] %vm3373_vm0, %v1476_v11  ;;  %v4894_v11 = vld [vmem:[%s5264_s22 + $0x428] sm:$0xf0]  ;;  %v4238_v7 = vor.u32 %v4893_v34, %v4235_v17  ;;  %v4824_v34 = vld [vmem:[%s5264_s22 + $0x1fc] sm:$0xf] }
 0x1e2   : > { %1388 = vmatmul.bf16.gmra.mxu1 %v3842_v5  ;;  %2303 = vmatmul.bf16.gmra.mxu0 %v4226_v27  ;;  %v4823_v5 = vld [vmem:[%s5264_s22 + $0x1f0] sm:$0xf0]  ;;  %v4233_v27 = vld [vmem:[%s5264_s22 + $0x420] sm:$0xf]  ;;  %v3863_v17 = vld [vmem:[%s5264_s22 + $0x204] sm:$0xf0] }
 0x1e3   : > { %1517 = vmatmul.bf16.gmra.mxu2 %v3846_v12  ;;  %2174 = vmatmul.bf16.gmra.mxu3 %v4222_v47  ;;  %v3854_v47 = vor.u32 %v4821_v53, %v3851_v61  ;;  %v4234_v29 = vor.u32 %v4894_v11, %v4233_v27  ;;  %v4896_v27 = vld [vmem:[%s5264_s22 + $0x43c] sm:$0xf]  ;;  %v4247_v11 = vld [vmem:[%s5264_s22 + $0x444] sm:$0xf0] }
 0x1e6   : > { %v1478_v59 = vpop.f32.mrf.mxu2  ;;  %v2135_v28 = vpop.f32.mrf.mxu3 }
 0x1e7   : > { %v1479_v54 = vadd.f32 %v1478_v59, %v1350_v41  ;;  %v5771_v19 = vadd.f32 %v2264_v39, %v2135_v28  ;;  %v1351_v33 = vpop.f32.mrf.mxu1  ;;  %v2266_v13 = vpop.f32.mrf.mxu0 }
 0x1e8   : > { %v1352_v44 = vadd.f32 %v1351_v33, %v5536_v55 }
 0x1e9   : > { %3396 = vst.msk [vmem:[%s5557_s27 + $0xb0] sm:$0xff] %vm3373_vm0, %v1479_v54  ;;  %v3858_v54 = vor.u32 %v4823_v5, %v3857_v35  ;;  %v3869_v5 = vld [vmem:[%s5264_s22 + $0x200] sm:$0xf] }
 0x1ee   : > { %v1480_v39 = vpop.f32.mrf.mxu2  ;;  %v2137_v12 = vpop.f32.mrf.mxu3 }
 0x1ef   : > { %v1481_v3 = vadd.f32 %v1480_v39, %v1352_v44  ;;  %v5786_v41 = vadd.f32 %v2266_v13, %v2137_v12  ;;  %v1354_v59 = vpop.f32.mrf.mxu1  ;;  %v2269_v28 = vpop.f32.mrf.mxu0  ;;  %v4826_v44 = vld [vmem:[%s5264_s22 + $0x208] sm:$0xf0]  ;;  %v4245_v39 = vld [vmem:[%s5264_s22 + $0x438] sm:$0xf]  ;;  %v4897_v12 = vld [vmem:[%s5264_s22 + $0x440] sm:$0xf0] }
 0x1f0   : > { %v1355_v55 = vadd.f32 %v1354_v59, %v5404_v30  ;;  %v4250_v59 = vor.u32 %v4896_v27, %v4247_v11  ;;  %v4827_v27 = vld [vmem:[%s5264_s22 + $0x214] sm:$0xf]  ;;  %v3875_v11 = vld [vmem:[%s5264_s22 + $0x21c] sm:$0xf0] }
 0x1f1   : > { %3397 = vst.msk [vmem:[%s5557_s27 + $0xb8] sm:$0xff] %vm3373_vm0, %v1481_v3  ;;  %v3866_v3 = vor.u32 %v4824_v34, %v3863_v17 }
 0x1f2   : > { %1393 = vmatmul.bf16.gmra.mxu1 %v3854_v47  ;;  %2308 = vmatmul.bf16.gmra.mxu0 %v4238_v7 }
 0x1f3   : > { %1522 = vmatmul.bf16.gmra.mxu2 %v3858_v54  ;;  %2179 = vmatmul.bf16.gmra.mxu3 %v4234_v29 }
 0x1f6   : > { %v1483_v33 = vpop.f32.mrf.mxu2  ;;  %v2140_v13 = vpop.f32.mrf.mxu3 }
 0x1f7   : > { %v1484_v60 = vadd.f32 %v1483_v33, %v1355_v55  ;;  %v5791_v53 = vadd.f32 %v2269_v28, %v2140_v13  ;;  %v1356_v61 = vpop.f32.mrf.mxu1  ;;  %v2271_v35 = vpop.f32.mrf.mxu0  ;;  %v3870_v33 = vor.u32 %v4826_v44, %v3869_v5  ;;  %v4246_v13 = vor.u32 %v4897_v12, %v4245_v39  ;;  %v3881_v44 = vld [vmem:[%s5264_s22 + $0x218] sm:$0xf]  ;;  %v4899_v39 = vld [vmem:[%s5264_s22 + $0x454] sm:$0xf]  ;;  %v4259_v12 = vld [vmem:[%s5264_s22 + $0x45c] sm:$0xf0] }
 0x1f8   : > { %v1357_v30 = vadd.f32 %v1356_v61, %v5420_v42 }
 0x1f9   : > { %3398 = vst.msk [vmem:[%s5557_s27 + $0xc0] sm:$0xff] %vm3373_vm0, %v1484_v60 }
 0x1fe   : > { %v1485_v47 = vpop.f32.mrf.mxu2  ;;  %v2142_v7 = vpop.f32.mrf.mxu3 }
 0x1ff   : > { %v1486_v28 = vadd.f32 %v1485_v47, %v1357_v30  ;;  %v5804_v54 = vadd.f32 %v2271_v35, %v2142_v7  ;;  %v1359_v29 = vpop.f32.mrf.mxu1  ;;  %v2274_v55 = vpop.f32.mrf.mxu0  ;;  %v4829_v30 = vld [vmem:[%s5264_s22 + $0x220] sm:$0xf0]  ;;  %v4257_v47 = vld [vmem:[%s5264_s22 + $0x450] sm:$0xf]  ;;  %v4900_v7 = vld [vmem:[%s5264_s22 + $0x458] sm:$0xf0] }
 0x200   : > { %v1360_v42 = vadd.f32 %v1359_v29, %v5428_v50  ;;  %v4262_v29 = vor.u32 %v4899_v39, %v4259_v12  ;;  %v4830_v39 = vld [vmem:[%s5264_s22 + $0x22c] sm:$0xf]  ;;  %v3887_v12 = vld [vmem:[%s5264_s22 + $0x234] sm:$0xf0] }
 0x201   : > { %3399 = vst.msk [vmem:[%s5557_s27 + $0xc8] sm:$0xff] %vm3373_vm0, %v1486_v28  ;;  %v3878_v28 = vor.u32 %v4827_v27, %v3875_v11 }
 0x202   : > { %1398 = vmatmul.bf16.gmra.mxu1 %v3866_v3  ;;  %2313 = vmatmul.bf16.gmra.mxu0 %v4250_v59 }
 0x203   : > { %1527 = vmatmul.bf16.gmra.mxu2 %v3870_v33  ;;  %2184 = vmatmul.bf16.gmra.mxu3 %v4246_v13 }
 0x206   : > { %v1488_v60 = vpop.f32.mrf.mxu2  ;;  %v2145_v61 = vpop.f32.mrf.mxu3 }
 0x207   : > { %v1489_v35 = vadd.f32 %v1488_v60, %v1360_v42  ;;  %v5809_v34 = vadd.f32 %v2274_v55, %v2145_v61  ;;  %v1361_v17 = vpop.f32.mrf.mxu1  ;;  %v2276_v5 = vpop.f32.mrf.mxu0  ;;  %v3882_v60 = vor.u32 %v4829_v30, %v3881_v44  ;;  %v4258_v61 = vor.u32 %v4900_v7, %v4257_v47  ;;  %v3893_v30 = vld [vmem:[%s5264_s22 + $0x230] sm:$0xf]  ;;  %v4902_v47 = vld [vmem:[%s5264_s22 + $0x46c] sm:$0xf]  ;;  %v4271_v7 = vld [vmem:[%s5264_s22 + $0x474] sm:$0xf0] }
 0x208   : > { %v1362_v50 = vadd.f32 %v1361_v17, %v5444_v62 }
 0x209   : > { %3400 = vst.msk [vmem:[%s5557_s27 + $0xd0] sm:$0xff] %vm3373_vm0, %v1489_v35 }
 0x20e   : > { %v1490_v3 = vpop.f32.mrf.mxu2  ;;  %v2147_v59 = vpop.f32.mrf.mxu3 }
 0x20f   : > { %v1491_v55 = vadd.f32 %v1490_v3, %v1362_v50  ;;  %v5822_v33 = vadd.f32 %v2276_v5, %v2147_v59  ;;  %v1364_v13 = vpop.f32.mrf.mxu1  ;;  %v2279_v42 = vpop.f32.mrf.mxu0  ;;  %v4832_v50 = vld [vmem:[%s5264_s22 + $0x238] sm:$0xf0]  ;;  %v4269_v3 = vld [vmem:[%s5264_s22 + $0x468] sm:$0xf]  ;;  %v4903_v59 = vld [vmem:[%s5264_s22 + $0x470] sm:$0xf0] }
 0x210   : > { %v1365_v62 = vadd.f32 %v1364_v13, %v5454_v8  ;;  %v4274_v13 = vor.u32 %v4902_v47, %v4271_v7  ;;  %v4001_v47 = vld [vmem:[%s5264_s22 + $0x248] sm:$0xf]  ;;  %v4835_v7 = vld [vmem:[%s5264_s22 + $0x250] sm:$0xf0] }
 0x211   : > { %3401 = vst.msk [vmem:[%s5557_s27 + $0xd8] sm:$0xff] %vm3373_vm0, %v1491_v55  ;;  %v3890_v55 = vor.u32 %v4830_v39, %v3887_v12 }
 0x212   : > { %1403 = vmatmul.bf16.gmra.mxu1 %v3878_v28  ;;  %2318 = vmatmul.bf16.gmra.mxu0 %v4262_v29 }
 0x213   : > { %1532 = vmatmul.bf16.gmra.mxu2 %v3882_v60  ;;  %2189 = vmatmul.bf16.gmra.mxu3 %v4258_v61 }
 0x216   : > { %v1493_v35 = vpop.f32.mrf.mxu2  ;;  %v2150_v17 = vpop.f32.mrf.mxu3 }
 0x217   : > { %v1494_v5 = vadd.f32 %v1493_v35, %v1365_v62  ;;  %v5827_v27 = vadd.f32 %v2279_v42, %v2150_v17  ;;  %v1366_v11 = vpop.f32.mrf.mxu1  ;;  %v2281_v44 = vpop.f32.mrf.mxu0  ;;  %v3894_v35 = vor.u32 %v4832_v50, %v3893_v30  ;;  %v4270_v17 = vor.u32 %v4903_v59, %v4269_v3  ;;  %v4377_v50 = vld [vmem:[%s5264_s22 + $0x480] sm:$0xf]  ;;  %v4385_v3 = vld [vmem:[%s5264_s22 + $0x488] sm:$0xf]  ;;  %v4907_v59 = vld [vmem:[%s5264_s22 + $0x490] sm:$0xf0] }
 0x218   : > { %v1367_v8 = vadd.f32 %v1366_v11, %v5472_v22 }
 0x219   : > { %3402 = vst.msk [vmem:[%s5557_s27 + $0xe0] sm:$0xff] %vm3373_vm0, %v1494_v5 }
 0x21e   : > { %v1495_v28 = vpop.f32.mrf.mxu2  ;;  %v2152_v29 = vpop.f32.mrf.mxu3 }
 0x21f   : > { %v1496_v42 = vadd.f32 %v1495_v28, %v1367_v8  ;;  %v5840_v60 = vadd.f32 %v2281_v44, %v2152_v29  ;;  %v1369_v61 = vpop.f32.mrf.mxu1  ;;  %v2284_v62 = vpop.f32.mrf.mxu0  ;;  %v4906_v8 = vld [vmem:[%s5264_s22 + $0x488] sm:$0xf0]  ;;  %v4905_v28 = vld [vmem:[%s5264_s22 + $0x484] sm:$0xf]  ;;  %v4379_v29 = vld [vmem:[%s5264_s22 + $0x48c] sm:$0xf0] }
 0x220   : > { %v1370_v22 = vadd.f32 %v1369_v61, %v5480_v36  ;;  %v4386_v61 = vor.u32 %v4907_v59, %v4385_v3  ;;  %v4013_v3 = vld [vmem:[%s5264_s22 + $0x260] sm:$0xf]  ;;  %v4838_v59 = vld [vmem:[%s5264_s22 + $0x268] sm:$0xf0] }
 0x221   : > { %3403 = vst.msk [vmem:[%s5557_s27 + $0xe8] sm:$0xff] %vm3373_vm0, %v1496_v42  ;;  %v4002_v42 = vor.u32 %v4835_v7, %v4001_v47 }
 0x222   : > { %1408 = vmatmul.bf16.gmra.mxu1 %v3890_v55  ;;  %2323 = vmatmul.bf16.gmra.mxu0 %v4274_v13 }
 0x223   : > { %1537 = vmatmul.bf16.gmra.mxu2 %v3894_v35  ;;  %2194 = vmatmul.bf16.gmra.mxu3 %v4270_v17 }
 0x226   : > { %v1498_v5 = vpop.f32.mrf.mxu2  ;;  %v2155_v11 = vpop.f32.mrf.mxu3 }
 0x227   : > { %v1499_v44 = vadd.f32 %v1498_v5, %v1370_v22  ;;  %v5845_v39 = vadd.f32 %v2284_v62, %v2155_v11  ;;  %v1371_v12 = vpop.f32.mrf.mxu1  ;;  %v2286_v30 = vpop.f32.mrf.mxu0  ;;  %v4378_v5 = vor.u32 %v4906_v8, %v4377_v50  ;;  %v4382_v11 = vor.u32 %v4905_v28, %v4379_v29  ;;  %v4389_v8 = vld [vmem:[%s5264_s22 + $0x498] sm:$0xf]  ;;  %v4397_v28 = vld [vmem:[%s5264_s22 + $0x4a0] sm:$0xf]  ;;  %v4910_v29 = vld [vmem:[%s5264_s22 + $0x4a8] sm:$0xf0] }
 0x228   : > { %v1372_v36 = vadd.f32 %v1371_v12, %v5496_v56 }
 0x229   : > { %3404 = vst.msk [vmem:[%s5557_s27 + $0xf0] sm:$0xff] %vm3373_vm0, %v1499_v44 }
 0x22e   : > { %v1500_v55 = vpop.f32.mrf.mxu2  ;;  %v2157_v13 = vpop.f32.mrf.mxu3 }
 0x22f   : > { %v1501_v62 = vadd.f32 %v1500_v55, %v1372_v36  ;;  %v5858_v35 = vadd.f32 %v2286_v30, %v2157_v13  ;;  %v1374_v17 = vpop.f32.mrf.mxu1  ;;  %v2289_v22 = vpop.f32.mrf.mxu0  ;;  %v4909_v36 = vld [vmem:[%s5264_s22 + $0x4a0] sm:$0xf0]  ;;  %v4908_v55 = vld [vmem:[%s5264_s22 + $0x49c] sm:$0xf]  ;;  %v4391_v13 = vld [vmem:[%s5264_s22 + $0x4a4] sm:$0xf0] }
 0x230   : > { %v1375_v56 = vadd.f32 %v1374_v17, %v5504_v4  ;;  %v4398_v17 = vor.u32 %v4910_v29, %v4397_v28  ;;  %v4025_v28 = vld [vmem:[%s5264_s22 + $0x278] sm:$0xf]  ;;  %v4841_v29 = vld [vmem:[%s5264_s22 + $0x280] sm:$0xf0] }
 0x231   : > { %3405 = vst.msk [vmem:[%s5557_s27 + $0xf8] sm:$0xff] %vm3373_vm0, %v1501_v62  ;;  %v4014_v62 = vor.u32 %v4838_v59, %v4013_v3 }
 0x232   : > { %2337 = vmatmul.bf16.vlgmr.msra.gmra.mxu1 %v4002_v42  ;;  %3252 = vmatmul.bf16.vlgmr.msra.gmra.mxu0 %v4386_v61 }
 0x233   : > { %2994 = vmatmul.bf16.vlgmr.msra.gmra.mxu2 %v4378_v5  ;;  %3123 = vmatmul.bf16.vlgmr.msra.gmra.mxu3 %v4382_v11 }
 0x236   : > { %v1503_v44 = vpop.f32.mrf.mxu2  ;;  %v2160_v12 = vpop.f32.mrf.mxu3 }
 0x237   : > { %v1504_v30 = vadd.f32 %v1503_v44, %v1375_v56  ;;  %v5863_v47 = vadd.f32 %v2289_v22, %v2160_v12  ;;  %v1376_v7 = vpop.f32.mrf.mxu1  ;;  %v2291_v50 = vpop.f32.mrf.mxu0  ;;  %v4390_v44 = vor.u32 %v4909_v36, %v4389_v8  ;;  %v4394_v12 = vor.u32 %v4908_v55, %v4391_v13  ;;  %v4401_v36 = vld [vmem:[%s5264_s22 + $0x4b0] sm:$0xf]  ;;  %v4409_v55 = vld [vmem:[%s5264_s22 + $0x4b8] sm:$0xf]  ;;  %v4913_v13 = vld [vmem:[%s5264_s22 + $0x4c0] sm:$0xf0] }
 0x238   : > { %v1377_v4 = vadd.f32 %v1376_v7, %v5520_v20 }
 0x239   : > { %3406 = vst.msk [vmem:[%s5557_s27 + $0x100] sm:$0xff] %vm3373_vm0, %v1504_v30 }
 0x23e   : > { %v1505_v42 = vpop.f32.mrf.mxu2  ;;  %v2162_v61 = vpop.f32.mrf.mxu3 }
 0x23f   : > { %v1506_v22 = vadd.f32 %v1505_v42, %v1377_v4  ;;  %v5876_v5 = vadd.f32 %v2291_v50, %v2162_v61  ;;  %v1379_v11 = vpop.f32.mrf.mxu1  ;;  %v2294_v56 = vpop.f32.mrf.mxu0  ;;  %v4912_v4 = vld [vmem:[%s5264_s22 + $0x4b8] sm:$0xf0]  ;;  %v4911_v42 = vld [vmem:[%s5264_s22 + $0x4b4] sm:$0xf]  ;;  %v4403_v61 = vld [vmem:[%s5264_s22 + $0x4bc] sm:$0xf0] }
 0x240   : > { %v1380_v20 = vadd.f32 %v1379_v11, %v5530_v48  ;;  %v4410_v11 = vor.u32 %v4913_v13, %v4409_v55  ;;  %v4037_v55 = vld [vmem:[%s5264_s22 + $0x290] sm:$0xf]  ;;  %v4844_v13 = vld [vmem:[%s5264_s22 + $0x298] sm:$0xf0] }
 0x241   : > { %3407 = vst.msk [vmem:[%s5557_s27 + $0x108] sm:$0xff] %vm3373_vm0, %v1506_v22  ;;  %v4026_v22 = vor.u32 %v4841_v29, %v4025_v28 }
 0x242   : > { %2342 = vmatmul.bf16.gmra.mxu1 %v4014_v62  ;;  %3257 = vmatmul.bf16.gmra.mxu0 %v4398_v17 }
 0x243   : > { %2999 = vmatmul.bf16.gmra.mxu2 %v4390_v44  ;;  %3128 = vmatmul.bf16.gmra.mxu3 %v4394_v12 }
 0x246   : > { %v1508_v30 = vpop.f32.mrf.mxu2  ;;  %v2165_v7 = vpop.f32.mrf.mxu3 }
 0x247   : > { %v1509_v50 = vadd.f32 %v1508_v30, %v1380_v20  ;;  %v5881_v3 = vadd.f32 %v2294_v56, %v2165_v7  ;;  %v1381_v59 = vpop.f32.mrf.mxu1  ;;  %v2296_v8 = vpop.f32.mrf.mxu0  ;;  %v4402_v30 = vor.u32 %v4912_v4, %v4401_v36  ;;  %v4406_v7 = vor.u32 %v4911_v42, %v4403_v61  ;;  %v4413_v4 = vld [vmem:[%s5264_s22 + $0x4c8] sm:$0xf]  ;;  %v4421_v42 = vld [vmem:[%s5264_s22 + $0x4d0] sm:$0xf]  ;;  %v4916_v61 = vld [vmem:[%s5264_s22 + $0x4d8] sm:$0xf0] }
 0x248   : > { %v1382_v48 = vadd.f32 %v1381_v59, %v5548_v18 }
 0x249   : > { %3408 = vst.msk [vmem:[%s5557_s27 + $0x110] sm:$0xff] %vm3373_vm0, %v1509_v50 }
 0x24e   : > { %v1510_v62 = vpop.f32.mrf.mxu2  ;;  %v2167_v17 = vpop.f32.mrf.mxu3 }
 0x24f   : > { %v1511_v56 = vadd.f32 %v1510_v62, %v1382_v48  ;;  %v5894_v44 = vadd.f32 %v2296_v8, %v2167_v17  ;;  %v1384_v12 = vpop.f32.mrf.mxu1  ;;  %v2299_v20 = vpop.f32.mrf.mxu0  ;;  %v4915_v48 = vld [vmem:[%s5264_s22 + $0x4d0] sm:$0xf0]  ;;  %v4914_v62 = vld [vmem:[%s5264_s22 + $0x4cc] sm:$0xf]  ;;  %v4415_v17 = vld [vmem:[%s5264_s22 + $0x4d4] sm:$0xf0] }
 0x250   : > { %v1385_v18 = vadd.f32 %v1384_v12, %v5406_v31  ;;  %v4422_v12 = vor.u32 %v4916_v61, %v4421_v42  ;;  %v4049_v42 = vld [vmem:[%s5264_s22 + $0x2a8] sm:$0xf]  ;;  %v4847_v61 = vld [vmem:[%s5264_s22 + $0x2b0] sm:$0xf0] }
 0x251   : > { %3409 = vst.msk [vmem:[%s5557_s27 + $0x118] sm:$0xff] %vm3373_vm0, %v1511_v56  ;;  %v4038_v56 = vor.u32 %v4844_v13, %v4037_v55 }
 0x252   : > { %2347 = vmatmul.bf16.gmra.mxu1 %v4026_v22  ;;  %3262 = vmatmul.bf16.gmra.mxu0 %v4410_v11 }
 0x253   : > { %3004 = vmatmul.bf16.gmra.mxu2 %v4402_v30  ;;  %3133 = vmatmul.bf16.gmra.mxu3 %v4406_v7 }
 0x256   : > { %v1513_v50 = vpop.f32.mrf.mxu2  ;;  %v2170_v59 = vpop.f32.mrf.mxu3 }
 0x257   : > { %v1514_v8 = vadd.f32 %v1513_v50, %v1385_v18  ;;  %v5899_v28 = vadd.f32 %v2299_v20, %v2170_v59  ;;  %v1386_v29 = vpop.f32.mrf.mxu1  ;;  %v2301_v36 = vpop.f32.mrf.mxu0  ;;  %v4414_v50 = vor.u32 %v4915_v48, %v4413_v4  ;;  %v4418_v59 = vor.u32 %v4914_v62, %v4415_v17  ;;  %v4425_v48 = vld [vmem:[%s5264_s22 + $0x4e0] sm:$0xf]  ;;  %v4433_v62 = vld [vmem:[%s5264_s22 + $0x4e8] sm:$0xf]  ;;  %v4919_v17 = vld [vmem:[%s5264_s22 + $0x4f0] sm:$0xf0] }
 0x258   : > { %v1387_v31 = vadd.f32 %v1386_v29, %v5422_v43 }
 0x259   : > { %3410 = vst.msk [vmem:[%s5557_s27 + $0x120] sm:$0xff] %vm3373_vm0, %v1514_v8 }
 0x25e   : > { %v1515_v22 = vpop.f32.mrf.mxu2  ;;  %v2172_v11 = vpop.f32.mrf.mxu3 }
 0x25f   : > { %v1516_v20 = vadd.f32 %v1515_v22, %v1387_v31  ;;  %v5912_v30 = vadd.f32 %v2301_v36, %v2172_v11  ;;  %v1389_v7 = vpop.f32.mrf.mxu1  ;;  %v2304_v18 = vpop.f32.mrf.mxu0  ;;  %v4918_v31 = vld [vmem:[%s5264_s22 + $0x4e8] sm:$0xf0]  ;;  %v4917_v22 = vld [vmem:[%s5264_s22 + $0x4e4] sm:$0xf]  ;;  %v4427_v11 = vld [vmem:[%s5264_s22 + $0x4ec] sm:$0xf0] }
 0x260   : > { %v1390_v43 = vadd.f32 %v1389_v7, %v5430_v51  ;;  %v4434_v7 = vor.u32 %v4919_v17, %v4433_v62  ;;  %v4061_v62 = vld [vmem:[%s5264_s22 + $0x2c0] sm:$0xf]  ;;  %v4850_v17 = vld [vmem:[%s5264_s22 + $0x2c8] sm:$0xf0] }
 0x261   : > { %3411 = vst.msk [vmem:[%s5557_s27 + $0x128] sm:$0xff] %vm3373_vm0, %v1516_v20  ;;  %v4050_v20 = vor.u32 %v4847_v61, %v4049_v42 }
 0x262   : > { %2352 = vmatmul.bf16.gmra.mxu1 %v4038_v56  ;;  %3267 = vmatmul.bf16.gmra.mxu0 %v4422_v12 }
 0x263   : > { %3009 = vmatmul.bf16.gmra.mxu2 %v4414_v50  ;;  %3138 = vmatmul.bf16.gmra.mxu3 %v4418_v59 }
 0x266   : > { %v1518_v8 = vpop.f32.mrf.mxu2  ;;  %v2175_v29 = vpop.f32.mrf.mxu3 }
 0x267   : > { %v1519_v36 = vadd.f32 %v1518_v8, %v1390_v43  ;;  %v5917_v55 = vadd.f32 %v2304_v18, %v2175_v29  ;;  %v1391_v13 = vpop.f32.mrf.mxu1  ;;  %v2306_v4 = vpop.f32.mrf.mxu0  ;;  %v4426_v8 = vor.u32 %v4918_v31, %v4425_v48  ;;  %v4430_v29 = vor.u32 %v4917_v22, %v4427_v11  ;;  %v4437_v31 = vld [vmem:[%s5264_s22 + $0x4f8] sm:$0xf]  ;;  %v4445_v22 = vld [vmem:[%s5264_s22 + $0x500] sm:$0xf]  ;;  %v4922_v11 = vld [vmem:[%s5264_s22 + $0x508] sm:$0xf0] }
 0x268   : > { %v1392_v51 = vadd.f32 %v1391_v13, %v5446_v63 }
 0x269   : > { %3412 = vst.msk [vmem:[%s5557_s27 + $0x130] sm:$0xff] %vm3373_vm0, %v1519_v36 }
 0x26e   : > { %v1520_v56 = vpop.f32.mrf.mxu2  ;;  %v2177_v12 = vpop.f32.mrf.mxu3 }
 0x26f   : > { %v1521_v18 = vadd.f32 %v1520_v56, %v1392_v51  ;;  %v5930_v50 = vadd.f32 %v2306_v4, %v2177_v12  ;;  %v1394_v59 = vpop.f32.mrf.mxu1  ;;  %v2309_v43 = vpop.f32.mrf.mxu0  ;;  %v4921_v51 = vld [vmem:[%s5264_s22 + $0x500] sm:$0xf0]  ;;  %v4920_v56 = vld [vmem:[%s5264_s22 + $0x4fc] sm:$0xf]  ;;  %v4439_v12 = vld [vmem:[%s5264_s22 + $0x504] sm:$0xf0] }
 0x270   : > { %v1395_v63 = vadd.f32 %v1394_v59, %v5456_v9  ;;  %v4446_v59 = vor.u32 %v4922_v11, %v4445_v22  ;;  %v4073_v22 = vld [vmem:[%s5264_s22 + $0x2d8] sm:$0xf]  ;;  %v4853_v11 = vld [vmem:[%s5264_s22 + $0x2e0] sm:$0xf0] }
 0x271   : > { %3413 = vst.msk [vmem:[%s5557_s27 + $0x138] sm:$0xff] %vm3373_vm0, %v1521_v18  ;;  %v4062_v18 = vor.u32 %v4850_v17, %v4061_v62 }
 0x272   : > { %2357 = vmatmul.bf16.gmra.mxu1 %v4050_v20  ;;  %3272 = vmatmul.bf16.gmra.mxu0 %v4434_v7 }
 0x273   : > { %3014 = vmatmul.bf16.gmra.mxu2 %v4426_v8  ;;  %3143 = vmatmul.bf16.gmra.mxu3 %v4430_v29 }
 0x276   : > { %v1523_v36 = vpop.f32.mrf.mxu2  ;;  %v2180_v13 = vpop.f32.mrf.mxu3 }
 0x277   : > { %v1524_v4 = vadd.f32 %v1523_v36, %v1395_v63  ;;  %v5935_v42 = vadd.f32 %v2309_v43, %v2180_v13  ;;  %v1396_v61 = vpop.f32.mrf.mxu1  ;;  %v2311_v48 = vpop.f32.mrf.mxu0  ;;  %v4438_v36 = vor.u32 %v4921_v51, %v4437_v31  ;;  %v4442_v13 = vor.u32 %v4920_v56, %v4439_v12  ;;  %v4449_v51 = vld [vmem:[%s5264_s22 + $0x510] sm:$0xf]  ;;  %v4457_v56 = vld [vmem:[%s5264_s22 + $0x518] sm:$0xf]  ;;  %v4925_v12 = vld [vmem:[%s5264_s22 + $0x520] sm:$0xf0] }
 0x278   : > { %v1397_v9 = vadd.f32 %v1396_v61, %v5474_v23 }
 0x279   : > { %3414 = vst.msk [vmem:[%s5557_s27 + $0x140] sm:$0xff] %vm3373_vm0, %v1524_v4 }
 0x27e   : > { %v1525_v20 = vpop.f32.mrf.mxu2  ;;  %v2182_v7 = vpop.f32.mrf.mxu3 }
 0x27f   : > { %v1526_v43 = vadd.f32 %v1525_v20, %v1397_v9  ;;  %v5948_v8 = vadd.f32 %v2311_v48, %v2182_v7  ;;  %v1399_v29 = vpop.f32.mrf.mxu1  ;;  %v2314_v63 = vpop.f32.mrf.mxu0  ;;  %v4924_v9 = vld [vmem:[%s5264_s22 + $0x518] sm:$0xf0]  ;;  %v4923_v20 = vld [vmem:[%s5264_s22 + $0x514] sm:$0xf]  ;;  %v4451_v7 = vld [vmem:[%s5264_s22 + $0x51c] sm:$0xf0] }
 0x280   : > { %v1400_v23 = vadd.f32 %v1399_v29, %v5482_v37  ;;  %v4458_v29 = vor.u32 %v4925_v12, %v4457_v56  ;;  %v4085_v12 = vld [vmem:[%s5264_s22 + $0x2f0] sm:$0xf] }
 0x281   : > { %3415 = vst.msk [vmem:[%s5557_s27 + $0x148] sm:$0xff] %vm3373_vm0, %v1526_v43  ;;  %v4074_v43 = vor.u32 %v4853_v11, %v4073_v22 }
 0x282   : > { %2362 = vmatmul.bf16.gmra.mxu1 %v4062_v18  ;;  %3277 = vmatmul.bf16.gmra.mxu0 %v4446_v59 }
 0x283   : > { %3019 = vmatmul.bf16.gmra.mxu2 %v4438_v36  ;;  %3148 = vmatmul.bf16.gmra.mxu3 %v4442_v13 }
 0x286   : > { %v1528_v4 = vpop.f32.mrf.mxu2  ;;  %v2185_v61 = vpop.f32.mrf.mxu3 }
 0x287   : > { %v1529_v48 = vadd.f32 %v1528_v4, %v1400_v23  ;;  %v5953_v62 = vadd.f32 %v2314_v63, %v2185_v61  ;;  %v1401_v17 = vpop.f32.mrf.mxu1  ;;  %v2316_v31 = vpop.f32.mrf.mxu0  ;;  %v4450_v4 = vor.u32 %v4924_v9, %v4449_v51  ;;  %v4454_v61 = vor.u32 %v4923_v20, %v4451_v7  ;;  %v4856_v9 = vld [vmem:[%s5264_s22 + $0x2f8] sm:$0xf0]  ;;  %v4461_v20 = vld [vmem:[%s5264_s22 + $0x528] sm:$0xf]  ;;  %v4469_v7 = vld [vmem:[%s5264_s22 + $0x530] sm:$0xf] }
 0x288   : > { %v1402_v37 = vadd.f32 %v1401_v17, %v5498_v57  ;;  %v6392_v57 = vld [vmem:[#allocation5_spill] sm:$0xff] }
 0x289   : > { %6390 = vst [vmem:[#allocation11_spill] sm:$0xff] %v5953_v62 }
 0x28a   : > { %3416 = vst.msk [vmem:[%s5557_s27 + $0x150] sm:$0xff] %vm3373_vm0, %v1529_v48 }
 0x28e   : > { %v1530_v18 = vpop.f32.mrf.mxu2  ;;  %v2187_v59 = vpop.f32.mrf.mxu3 }
 0x28f   : > { %v1531_v63 = vadd.f32 %v1530_v18, %v1402_v37  ;;  %v5966_v36 = vadd.f32 %v2316_v31, %v2187_v59  ;;  %v1404_v13 = vpop.f32.mrf.mxu1  ;;  %v2319_v23 = vpop.f32.mrf.mxu0  ;;  %v4928_v37 = vld [vmem:[%s5264_s22 + $0x538] sm:$0xf0]  ;;  %v4927_v18 = vld [vmem:[%s5264_s22 + $0x530] sm:$0xf0]  ;;  %v4926_v59 = vld [vmem:[%s5264_s22 + $0x52c] sm:$0xf] }
 0x290   : > { %v1405_v48 = vadd.f32 %v1404_v13, %v6392_v57 }
 0x291   : > { %6391 = vst [vmem:[#allocation12_spill] sm:$0xff] %v5966_v36  ;;  %v6399_v36 = vld [vmem:[#allocation9_spill] sm:$0xff] }
 0x292   : > { %3417 = vst.msk [vmem:[%s5557_s27 + $0x158] sm:$0xff] %vm3373_vm0, %v1531_v63  ;;  %2367 = vmatmul.bf16.gmra.mxu1 %v4074_v43  ;;  %3282 = vmatmul.bf16.gmra.mxu0 %v4458_v29  ;;  %v4463_v43 = vld [vmem:[%s5264_s22 + $0x534] sm:$0xf0]  ;;  %v6394_v29 = vld [vmem:[#allocation6_spill] sm:$0xff] }
 0x293   : > { %3024 = vmatmul.bf16.gmra.mxu2 %v4450_v4  ;;  %3153 = vmatmul.bf16.gmra.mxu3 %v4454_v61  ;;  %v4086_v61 = vor.u32 %v4856_v9, %v4085_v12 }
 0x296   : > { %v1533_v17 = vpop.f32.mrf.mxu2  ;;  %v2190_v31 = vpop.f32.mrf.mxu3 }
 0x297   : > { %v1534_v22 = vadd.f32 %v1533_v17, %v1405_v48  ;;  %v5971_v11 = vadd.f32 %v2319_v23, %v2190_v31  ;;  %v1406_v51 = vpop.f32.mrf.mxu1  ;;  %v2321_v56 = vpop.f32.mrf.mxu0  ;;  %v4470_v23 = vor.u32 %v4928_v37, %v4469_v7 }
 0x298   : > { %v1407_v63 = vadd.f32 %v1406_v51, %v6394_v29  ;;  %v6396_v51 = vld [vmem:[#allocation7_spill] sm:$0xff]  ;;  %v4473_v29 = vld [vmem:[%s5264_s22 + $0x540] sm:$0xf] }
 0x299   : > { %6393 = vst [vmem:[#allocation5_spill] sm:$0xff] %v5971_v11  ;;  %v4466_v11 = vor.u32 %v4926_v59, %v4463_v43  ;;  %v4097_v59 = vld [vmem:[%s5264_s22 + $0x308] sm:$0xf]  ;;  %v4859_v43 = vld [vmem:[%s5264_s22 + $0x310] sm:$0xf0] }
 0x29a   : > { %3418 = vst.msk [vmem:[%s5557_s27 + $0x160] sm:$0xff] %vm3373_vm0, %v1534_v22  ;;  %v4462_v22 = vor.u32 %v4927_v18, %v4461_v20 }
 0x29e   : > { %v1535_v13 = vpop.f32.mrf.mxu2  ;;  %v2192_v4 = vpop.f32.mrf.mxu3 }
 0x29f   : > { %v1536_v57 = vadd.f32 %v1535_v13, %v1407_v63  ;;  %v5984_v48 = vadd.f32 %v2321_v56, %v2192_v4  ;;  %v1409_v17 = vpop.f32.mrf.mxu1  ;;  %v2324_v31 = vpop.f32.mrf.mxu0  ;;  %v4481_v63 = vld [vmem:[%s5264_s22 + $0x548] sm:$0xf]  ;;  %v4931_v13 = vld [vmem:[%s5264_s22 + $0x550] sm:$0xf0]  ;;  %v4930_v4 = vld [vmem:[%s5264_s22 + $0x548] sm:$0xf0] }
 0x2a0   : > { %v1410_v56 = vadd.f32 %v1409_v17, %v6396_v51  ;;  %v4482_v51 = vor.u32 %v4931_v13, %v4481_v63  ;;  %v4109_v13 = vld [vmem:[%s5264_s22 + $0x320] sm:$0xf] }
 0x2a1   : > { %6395 = vst [vmem:[#allocation6_spill] sm:$0xff] %v5984_v48 }
 0x2a2   : > { %3419 = vst.msk [vmem:[%s5557_s27 + $0x168] sm:$0xff] %vm3373_vm0, %v1536_v57  ;;  %2372 = vmatmul.bf16.gmra.mxu1 %v4086_v61  ;;  %3287 = vmatmul.bf16.gmra.mxu0 %v4470_v23  ;;  %v4475_v61 = vld [vmem:[%s5264_s22 + $0x54c] sm:$0xf0]  ;;  %v6398_v23 = vld [vmem:[#allocation8_spill] sm:$0xff] }
 0x2a3   : > { %3029 = vmatmul.bf16.gmra.mxu2 %v4462_v22  ;;  %3158 = vmatmul.bf16.gmra.mxu3 %v4466_v11  ;;  %v4929_v11 = vld [vmem:[%s5264_s22 + $0x544] sm:$0xf] }
 0x2a4   : > { %v4478_v48 = vor.u32 %v4929_v11, %v4475_v61  ;;  %v4933_v11 = vld [vmem:[%s5264_s22 + $0x560] sm:$0xf0]  ;;  %v4932_v61 = vld [vmem:[%s5264_s22 + $0x55c] sm:$0xf] }
 0x2a6   : > { %v1538_v12 = vpop.f32.mrf.mxu2  ;;  %v2195_v9 = vpop.f32.mrf.mxu3 }
 0x2a7   : > { %v1539_v7 = vadd.f32 %v1538_v12, %v1410_v56  ;;  %v5989_v20 = vadd.f32 %v2324_v31, %v2195_v9  ;;  %v1411_v37 = vpop.f32.mrf.mxu1  ;;  %v2326_v18 = vpop.f32.mrf.mxu0  ;;  %v4098_v31 = vor.u32 %v4859_v43, %v4097_v59 }
 0x2a8   : > { %v1412_v57 = vadd.f32 %v1411_v37, %v6398_v23  ;;  %v4487_v23 = vld [vmem:[%s5264_s22 + $0x564] sm:$0xf0] }
 0x2a9   : > { %6397 = vst [vmem:[#allocation7_spill] sm:$0xff] %v5989_v20  ;;  %v4474_v20 = vor.u32 %v4930_v4, %v4473_v29  ;;  %v4485_v4 = vld [vmem:[%s5264_s22 + $0x558] sm:$0xf] }
 0x2aa   : > { %3420 = vst.msk [vmem:[%s5557_s27 + $0x170] sm:$0xff] %vm3373_vm0, %v1539_v7 }
 0x2ae   : > { %v1540_v17 = vpop.f32.mrf.mxu2  ;;  %v2197_v22 = vpop.f32.mrf.mxu3 }
 0x2af   : > { %v1541_v56 = vadd.f32 %v1540_v17, %v1412_v57  ;;  %v6002_v12 = vadd.f32 %v2326_v18, %v2197_v22  ;;  %v2338_v9 = vpop.f32.mrf.mxu1  ;;  %v3253_v7 = vpop.f32.mrf.mxu0 }
 0x2b0   : > { %v2339_v62 = vadd.f32 %v2338_v9, %v6399_v36  ;;  %v4486_v9 = vor.u32 %v4933_v11, %v4485_v4  ;;  %v4865_v4 = vld [vmem:[%s5264_s22 + $0x340] sm:$0xf0] }
 0x2b1   : > { %3421 = vst.msk [vmem:[%s5557_s27 + $0x178] sm:$0xff] %vm3373_vm0, %v1541_v56  ;;  %v4937_v11 = vld [vmem:[%s5264_s22 + $0x580] sm:$0xf0] }
 0x2b2   : > { %3422 = vst.msk [vmem:[%s5557_s27 + $0x180] sm:$0xff] %vm3373_vm0, %v2339_v62  ;;  %2377 = vmatmul.bf16.gmra.mxu1 %v4098_v31  ;;  %3292 = vmatmul.bf16.gmra.mxu0 %v4482_v51  ;;  %v4862_v62 = vld [vmem:[%s5264_s22 + $0x328] sm:$0xf0] }
 0x2b3   : > { %3034 = vmatmul.bf16.gmra.mxu2 %v4474_v20  ;;  %3163 = vmatmul.bf16.gmra.mxu3 %v4478_v48  ;;  %v4493_v20 = vld [vmem:[%s5264_s22 + $0x560] sm:$0xf]  ;;  %v4934_v48 = vld [vmem:[%s5264_s22 + $0x568] sm:$0xf0]  ;;  %v4110_v22 = vor.u32 %v4862_v62, %v4109_v13  ;;  %v4121_v62 = vld [vmem:[%s5264_s22 + $0x338] sm:$0xf] }
 0x2b4   : > { %v4494_v31 = vor.u32 %v4934_v48, %v4493_v20  ;;  %v4497_v20 = vld [vmem:[%s5264_s22 + $0x570] sm:$0xf]  ;;  %v4505_v48 = vld [vmem:[%s5264_s22 + $0x578] sm:$0xf] }
 0x2b6   : > { %v2995_v37 = vpop.f32.mrf.mxu2  ;;  %v3124_v18 = vpop.f32.mrf.mxu3 }
 0x2b7   : > { %v3125_v59 = vadd.f32 %v3124_v18, %v2995_v37  ;;  %v2340_v36 = vpop.f32.mrf.mxu1  ;;  %v3255_v43 = vpop.f32.mrf.mxu0 }
 0x2b8   : > { %v2341_v29 = vadd.f32 %v2340_v36, %v5572_v0 }
 0x2b9   : > { %v3254_v63 = vadd.f32 %v3253_v7, %v3125_v59  ;;  %v4490_v7 = vor.u32 %v4932_v61, %v4487_v23  ;;  %v4936_v61 = vld [vmem:[%s5264_s22 + $0x578] sm:$0xf0]  ;;  %v4935_v23 = vld [vmem:[%s5264_s22 + $0x574] sm:$0xf] }
 0x2ba   : > { %3423 = vst.msk [vmem:[%s5557_s27 + $0x188] sm:$0xff] %vm3373_vm0, %v2341_v29 }
 0x2bb   : > { %3470 = vst.msk [vmem:[%s5557_s27 + $0x300] sm:$0xff] %vm3373_vm0, %v3254_v63 }
 0x2be   : > { %v2997_v57 = vpop.f32.mrf.mxu2  ;;  %v3126_v17 = vpop.f32.mrf.mxu3 }
 0x2bf   : > { %v3127_v0 = vadd.f32 %v3126_v17, %v2997_v57  ;;  %v2343_v51 = vpop.f32.mrf.mxu1  ;;  %v3258_v56 = vpop.f32.mrf.mxu0  ;;  %v4499_v57 = vld [vmem:[%s5264_s22 + $0x57c] sm:$0xf0] }
 0x2c0   : > { %v2344_v37 = vadd.f32 %v2343_v51, %v5577_v14 }
 0x2c1   : > { %v3256_v18 = vadd.f32 %v3255_v43, %v3127_v0  ;;  %v4506_v0 = vor.u32 %v4937_v11, %v4505_v48  ;;  %v4509_v48 = vld [vmem:[%s5264_s22 + $0x588] sm:$0xf]  ;;  %v4517_v11 = vld [vmem:[%s5264_s22 + $0x590] sm:$0xf] }
 0x2c2   : > { %3424 = vst.msk [vmem:[%s5557_s27 + $0x190] sm:$0xff] %vm3373_vm0, %v2344_v37  ;;  %2382 = vmatmul.bf16.gmra.mxu1 %v4110_v22  ;;  %3297 = vmatmul.bf16.gmra.mxu0 %v4494_v31  ;;  %v4122_v31 = vor.u32 %v4865_v4, %v4121_v62  ;;  %v6400_v37 = vld [vmem:[#allocation10_spill] sm:$0xff]  ;;  %v4133_v4 = vld [vmem:[%s5264_s22 + $0x350] sm:$0xf] }
 0x2c3   : > { %3471 = vst.msk [vmem:[%s5557_s27 + $0x308] sm:$0xff] %vm3373_vm0, %v3256_v18  ;;  %3039 = vmatmul.bf16.gmra.mxu2 %v4486_v9  ;;  %3168 = vmatmul.bf16.gmra.mxu3 %v4490_v7  ;;  %v4498_v9 = vor.u32 %v4936_v61, %v4497_v20  ;;  %v4502_v7 = vor.u32 %v4935_v23, %v4499_v57  ;;  %v4868_v20 = vld [vmem:[%s5264_s22 + $0x358] sm:$0xf0]  ;;  %v4939_v23 = vld [vmem:[%s5264_s22 + $0x590] sm:$0xf0] }
 0x2c4   : > { %v4940_v61 = vld [vmem:[%s5264_s22 + $0x598] sm:$0xf0]  ;;  %v4938_v57 = vld [vmem:[%s5264_s22 + $0x58c] sm:$0xf] }
 0x2c6   : > { %v3000_v59 = vpop.f32.mrf.mxu2  ;;  %v3129_v14 = vpop.f32.mrf.mxu3 }
 0x2c7   : > { %v3130_v36 = vadd.f32 %v3129_v14, %v3000_v59  ;;  %v2345_v43 = vpop.f32.mrf.mxu1  ;;  %v3260_v29 = vpop.f32.mrf.mxu0 }
 0x2c8   : > { %v2346_v63 = vadd.f32 %v2345_v43, %v5590_v1 }
 0x2c9   : > { %v3259_v13 = vadd.f32 %v3258_v56, %v3130_v36 }
 0x2ca   : > { %3425 = vst.msk [vmem:[%s5557_s27 + $0x198] sm:$0xff] %vm3373_vm0, %v2346_v63 }
 0x2cb   : > { %3472 = vst.msk [vmem:[%s5557_s27 + $0x310] sm:$0xff] %vm3373_vm0, %v3259_v13 }
 0x2ce   : > { %v3002_v17 = vpop.f32.mrf.mxu2  ;;  %v3131_v22 = vpop.f32.mrf.mxu3 }
 0x2cf   : > { %v3132_v1 = vadd.f32 %v3131_v22, %v3002_v17  ;;  %v2348_v51 = vpop.f32.mrf.mxu1  ;;  %v3263_v56 = vpop.f32.mrf.mxu0  ;;  %v4511_v17 = vld [vmem:[%s5264_s22 + $0x594] sm:$0xf0] }
 0x2d0   : > { %v2349_v18 = vadd.f32 %v2348_v51, %v6400_v37 }
 0x2d1   : > { %v3261_v59 = vadd.f32 %v3260_v29, %v3132_v1  ;;  %v4518_v1 = vor.u32 %v4940_v61, %v4517_v11  ;;  %v4942_v11 = vld [vmem:[%s5264_s22 + $0x5a8] sm:$0xf0]  ;;  %v4941_v61 = vld [vmem:[%s5264_s22 + $0x5a4] sm:$0xf] }
 0x2d2   : > { %3426 = vst.msk [vmem:[%s5557_s27 + $0x1a0] sm:$0xff] %vm3373_vm0, %v2349_v18  ;;  %2387 = vmatmul.bf16.gmra.mxu1 %v4122_v31  ;;  %3302 = vmatmul.bf16.gmra.mxu0 %v4506_v0  ;;  %v4134_v0 = vor.u32 %v4868_v20, %v4133_v4  ;;  %v4521_v4 = vld [vmem:[%s5264_s22 + $0x5a0] sm:$0xf]  ;;  %v4529_v20 = vld [vmem:[%s5264_s22 + $0x5a8] sm:$0xf] }
 0x2d3   : > { %3473 = vst.msk [vmem:[%s5557_s27 + $0x318] sm:$0xff] %vm3373_vm0, %v3261_v59  ;;  %3044 = vmatmul.bf16.gmra.mxu2 %v4498_v9  ;;  %3173 = vmatmul.bf16.gmra.mxu3 %v4502_v7  ;;  %v4510_v9 = vor.u32 %v4939_v23, %v4509_v48  ;;  %v4514_v7 = vor.u32 %v4938_v57, %v4511_v17  ;;  %v4943_v48 = vld [vmem:[%s5264_s22 + $0x5b0] sm:$0xf0]  ;;  %v4523_v23 = vld [vmem:[%s5264_s22 + $0x5ac] sm:$0xf0] }
 0x2d6   : > { %v3005_v14 = vpop.f32.mrf.mxu2  ;;  %v3134_v36 = vpop.f32.mrf.mxu3 }
 0x2d7   : > { %v3135_v43 = vadd.f32 %v3134_v36, %v3005_v14  ;;  %v2350_v29 = vpop.f32.mrf.mxu1  ;;  %v3265_v63 = vpop.f32.mrf.mxu0 }
 0x2d8   : > { %v2351_v13 = vadd.f32 %v2350_v29, %v5612_v16 }
 0x2d9   : > { %v3264_v62 = vadd.f32 %v3263_v56, %v3135_v43 }
 0x2da   : > { %3427 = vst.msk [vmem:[%s5557_s27 + $0x1a8] sm:$0xff] %vm3373_vm0, %v2351_v13  ;;  %v4145_v13 = vld [vmem:[%s5264_s22 + $0x368] sm:$0xf] }
 0x2db   : > { %3474 = vst.msk [vmem:[%s5557_s27 + $0x320] sm:$0xff] %vm3373_vm0, %v3264_v62  ;;  %v4871_v62 = vld [vmem:[%s5264_s22 + $0x370] sm:$0xf0] }
 0x2de   : > { %v3007_v22 = vpop.f32.mrf.mxu2  ;;  %v3136_v31 = vpop.f32.mrf.mxu3 }
 0x2df   : > { %v3137_v16 = vadd.f32 %v3136_v31, %v3007_v22  ;;  %v2353_v51 = vpop.f32.mrf.mxu1  ;;  %v3268_v56 = vpop.f32.mrf.mxu0  ;;  %v4146_v22 = vor.u32 %v4871_v62, %v4145_v13  ;;  %v4530_v31 = vor.u32 %v4943_v48, %v4529_v20  ;;  %v4946_v13 = vld [vmem:[%s5264_s22 + $0x5c8] sm:$0xf0]  ;;  %v4945_v62 = vld [vmem:[%s5264_s22 + $0x5c0] sm:$0xf0]  ;;  %v4535_v20 = vld [vmem:[%s5264_s22 + $0x5c4] sm:$0xf0] }
 0x2e0   : > { %v2354_v37 = vadd.f32 %v2353_v51, %v5617_v46  ;;  %v4526_v51 = vor.u32 %v4941_v61, %v4523_v23 }
 0x2e1   : > { %v3266_v18 = vadd.f32 %v3265_v63, %v3137_v16  ;;  %v4522_v16 = vor.u32 %v4942_v11, %v4521_v4  ;;  %v4944_v4 = vld [vmem:[%s5264_s22 + $0x5bc] sm:$0xf] }
 0x2e2   : > { %3428 = vst.msk [vmem:[%s5557_s27 + $0x1b0] sm:$0xff] %vm3373_vm0, %v2354_v37  ;;  %2392 = vmatmul.bf16.gmra.mxu1 %v4134_v0  ;;  %3307 = vmatmul.bf16.gmra.mxu0 %v4518_v1 }
 0x2e3   : > { %3475 = vst.msk [vmem:[%s5557_s27 + $0x328] sm:$0xff] %vm3373_vm0, %v3266_v18  ;;  %3049 = vmatmul.bf16.gmra.mxu2 %v4510_v9  ;;  %3178 = vmatmul.bf16.gmra.mxu3 %v4514_v7 }
 0x2e6   : > { %v3010_v59 = vpop.f32.mrf.mxu2  ;;  %v3139_v46 = vpop.f32.mrf.mxu3 }
 0x2e7   : > { %v3140_v14 = vadd.f32 %v3139_v46, %v3010_v59  ;;  %v2355_v36 = vpop.f32.mrf.mxu1  ;;  %v3270_v43 = vpop.f32.mrf.mxu0 }
 0x2e8   : > { %v2356_v29 = vadd.f32 %v2355_v36, %v5630_v24  ;;  %v4157_v36 = vld [vmem:[%s5264_s22 + $0x380] sm:$0xf] }
 0x2e9   : > { %v3269_v63 = vadd.f32 %v3268_v56, %v3140_v14 }
 0x2ea   : > { %3429 = vst.msk [vmem:[%s5557_s27 + $0x1b8] sm:$0xff] %vm3373_vm0, %v2356_v29  ;;  %v4533_v29 = vld [vmem:[%s5264_s22 + $0x5b8] sm:$0xf] }
 0x2eb   : > { %3476 = vst.msk [vmem:[%s5557_s27 + $0x330] sm:$0xff] %vm3373_vm0, %v3269_v63  ;;  %v4541_v63 = vld [vmem:[%s5264_s22 + $0x5c0] sm:$0xf] }
 0x2ec   : > { %v4542_v23 = vor.u32 %v4946_v13, %v4541_v63 }
 0x2ee   : > { %v3012_v57 = vpop.f32.mrf.mxu2  ;;  %v3141_v17 = vpop.f32.mrf.mxu3 }
 0x2ef   : > { %v3142_v24 = vadd.f32 %v3141_v17, %v3012_v57  ;;  %v2358_v0 = vpop.f32.mrf.mxu1  ;;  %v3273_v1 = vpop.f32.mrf.mxu0 }
 0x2f0   : > { %v2359_v56 = vadd.f32 %v2358_v0, %v5635_v45 }
 0x2f1   : > { %v3271_v9 = vadd.f32 %v3270_v43, %v3142_v24  ;;  %v4874_v43 = vld [vmem:[%s5264_s22 + $0x388] sm:$0xf0] }
 0x2f2   : > { %3430 = vst.msk [vmem:[%s5557_s27 + $0x1c0] sm:$0xff] %vm3373_vm0, %v2359_v56  ;;  %2397 = vmatmul.bf16.gmra.mxu1 %v4146_v22  ;;  %3312 = vmatmul.bf16.gmra.mxu0 %v4530_v31  ;;  %v4158_v61 = vor.u32 %v4874_v43, %v4157_v36  ;;  %v4534_v22 = vor.u32 %v4945_v62, %v4533_v29  ;;  %v4947_v36 = vld [vmem:[%s5264_s22 + $0x5d4] sm:$0xf]  ;;  %v4547_v43 = vld [vmem:[%s5264_s22 + $0x5dc] sm:$0xf0] }
 0x2f3   : > { %3477 = vst.msk [vmem:[%s5557_s27 + $0x338] sm:$0xff] %vm3373_vm0, %v3271_v9  ;;  %3054 = vmatmul.bf16.gmra.mxu2 %v4522_v16  ;;  %3183 = vmatmul.bf16.gmra.mxu3 %v4526_v51  ;;  %v4538_v31 = vor.u32 %v4944_v4, %v4535_v20 }
 0x2f6   : > { %v3015_v7 = vpop.f32.mrf.mxu2  ;;  %v3144_v45 = vpop.f32.mrf.mxu3 }
 0x2f7   : > { %v3145_v37 = vadd.f32 %v3144_v45, %v3015_v7  ;;  %v2360_v18 = vpop.f32.mrf.mxu1  ;;  %v3275_v59 = vpop.f32.mrf.mxu0  ;;  %v4169_v45 = vld [vmem:[%s5264_s22 + $0x398] sm:$0xf] }
 0x2f8   : > { %v2361_v46 = vadd.f32 %v2360_v18, %v5648_v21  ;;  %v4545_v18 = vld [vmem:[%s5264_s22 + $0x5d0] sm:$0xf] }
 0x2f9   : > { %v3274_v14 = vadd.f32 %v3273_v1, %v3145_v37  ;;  %v4877_v37 = vld [vmem:[%s5264_s22 + $0x3a0] sm:$0xf0] }
 0x2fa   : > { %3431 = vst.msk [vmem:[%s5557_s27 + $0x1c8] sm:$0xff] %vm3373_vm0, %v2361_v46  ;;  %v4949_v46 = vld [vmem:[%s5264_s22 + $0x5e0] sm:$0xf0]  ;;  %v4170_v13 = vor.u32 %v4877_v37, %v4169_v45 }
 0x2fb   : > { %3478 = vst.msk [vmem:[%s5557_s27 + $0x340] sm:$0xff] %vm3373_vm0, %v3274_v14  ;;  %v4948_v14 = vld [vmem:[%s5264_s22 + $0x5d8] sm:$0xf0] }
 0x2fe   : > { %v3017_v48 = vpop.f32.mrf.mxu2  ;;  %v3146_v11 = vpop.f32.mrf.mxu3 }
 0x2ff   : > { %v3147_v21 = vadd.f32 %v3146_v11, %v3017_v48  ;;  %v2363_v57 = vpop.f32.mrf.mxu1  ;;  %v3278_v17 = vpop.f32.mrf.mxu0  ;;  %v4546_v48 = vor.u32 %v4948_v14, %v4545_v18  ;;  %v4550_v11 = vor.u32 %v4947_v36, %v4547_v43 }
 0x300   : > { %v2364_v24 = vadd.f32 %v2363_v57, %v5655_v32 }
 0x301   : > { %v3276_v0 = vadd.f32 %v3275_v59, %v3147_v21  ;;  %v4553_v59 = vld [vmem:[%s5264_s22 + $0x5d8] sm:$0xf] }
 0x302   : > { %3432 = vst.msk [vmem:[%s5557_s27 + $0x1d0] sm:$0xff] %vm3373_vm0, %v2364_v24  ;;  %2402 = vmatmul.bf16.gmra.mxu1 %v4158_v61  ;;  %3317 = vmatmul.bf16.gmra.mxu0 %v4542_v23  ;;  %v4554_v62 = vor.u32 %v4949_v46, %v4553_v59 }
 0x303   : > { %3479 = vst.msk [vmem:[%s5557_s27 + $0x348] sm:$0xff] %vm3373_vm0, %v3276_v0  ;;  %3059 = vmatmul.bf16.gmra.mxu2 %v4534_v22  ;;  %3188 = vmatmul.bf16.gmra.mxu3 %v4538_v31  ;;  %v4181_v0 = vld [vmem:[%s5264_s22 + $0x3b0] sm:$0xf] }
 0x306   : > { %v3020_v1 = vpop.f32.mrf.mxu2  ;;  %v3149_v32 = vpop.f32.mrf.mxu3 }
 0x307   : > { %v3150_v16 = vadd.f32 %v3149_v32, %v3020_v1  ;;  %v2365_v51 = vpop.f32.mrf.mxu1  ;;  %v3280_v56 = vpop.f32.mrf.mxu0  ;;  %v4880_v1 = vld [vmem:[%s5264_s22 + $0x3b8] sm:$0xf0]  ;;  %v4557_v32 = vld [vmem:[%s5264_s22 + $0x5e8] sm:$0xf] }
 0x308   : > { %v2366_v9 = vadd.f32 %v2365_v51, %v5670_v58  ;;  %v4952_v51 = vld [vmem:[%s5264_s22 + $0x5f8] sm:$0xf0]  ;;  %v4182_v18 = vor.u32 %v4880_v1, %v4181_v0 }
 0x309   : > { %v3279_v7 = vadd.f32 %v3278_v17, %v3150_v16  ;;  %v4565_v16 = vld [vmem:[%s5264_s22 + $0x5f0] sm:$0xf] }
 0x30a   : > { %3433 = vst.msk [vmem:[%s5557_s27 + $0x1d8] sm:$0xff] %vm3373_vm0, %v2366_v9  ;;  %v4950_v9 = vld [vmem:[%s5264_s22 + $0x5ec] sm:$0xf]  ;;  %v4566_v59 = vor.u32 %v4952_v51, %v4565_v16 }
 0x30b   : > { %3480 = vst.msk [vmem:[%s5557_s27 + $0x350] sm:$0xff] %vm3373_vm0, %v3279_v7  ;;  %v4559_v7 = vld [vmem:[%s5264_s22 + $0x5f4] sm:$0xf0] }
 0x30c   : > { %v4562_v43 = vor.u32 %v4950_v9, %v4559_v7 }
 0x30e   : > { %v3022_v29 = vpop.f32.mrf.mxu2  ;;  %v3151_v63 = vpop.f32.mrf.mxu3 }
 0x30f   : > { %v3152_v58 = vadd.f32 %v3151_v63, %v3022_v29  ;;  %v2368_v4 = vpop.f32.mrf.mxu1  ;;  %v3283_v20 = vpop.f32.mrf.mxu0 }
 0x310   : > { %v2369_v61 = vadd.f32 %v2368_v4, %v5675_v52 }
 0x311   : > { %v3281_v23 = vadd.f32 %v3280_v56, %v3152_v58  ;;  %v4951_v56 = vld [vmem:[%s5264_s22 + $0x5f0] sm:$0xf0] }
 0x312   : > { %3434 = vst.msk [vmem:[%s5557_s27 + $0x1e0] sm:$0xff] %vm3373_vm0, %v2369_v61  ;;  %2407 = vmatmul.bf16.gmra.mxu1 %v4170_v13  ;;  %3322 = vmatmul.bf16.gmra.mxu0 %v4554_v62  ;;  %v4558_v36 = vor.u32 %v4951_v56, %v4557_v32  ;;  %v4883_v61 = vld [vmem:[%s5264_s22 + $0x3d0] sm:$0xf0] }
 0x313   : > { %3481 = vst.msk [vmem:[%s5557_s27 + $0x358] sm:$0xff] %vm3373_vm0, %v3281_v23  ;;  %3064 = vmatmul.bf16.gmra.mxu2 %v4546_v48  ;;  %3193 = vmatmul.bf16.gmra.mxu3 %v4550_v11  ;;  %v4193_v11 = vld [vmem:[%s5264_s22 + $0x3c8] sm:$0xf]  ;;  %v4569_v23 = vld [vmem:[%s5264_s22 + $0x600] sm:$0xf] }
 0x314   : > { %v4194_v0 = vor.u32 %v4883_v61, %v4193_v11 }
 0x316   : > { %v3025_v21 = vpop.f32.mrf.mxu2  ;;  %v3154_v52 = vpop.f32.mrf.mxu3 }
 0x317   : > { %v3155_v57 = vadd.f32 %v3154_v52, %v3025_v21  ;;  %v2370_v17 = vpop.f32.mrf.mxu1  ;;  %v3285_v22 = vpop.f32.mrf.mxu0  ;;  %v4577_v21 = vld [vmem:[%s5264_s22 + $0x608] sm:$0xf]  ;;  %v4955_v52 = vld [vmem:[%s5264_s22 + $0x610] sm:$0xf0] }
 0x318   : > { %v2371_v31 = vadd.f32 %v2370_v17, %v5688_v25  ;;  %v4953_v17 = vld [vmem:[%s5264_s22 + $0x604] sm:$0xf]  ;;  %v4578_v1 = vor.u32 %v4955_v52, %v4577_v21 }
 0x319   : > { %v3284_v24 = vadd.f32 %v3283_v20, %v3155_v57  ;;  %v4954_v57 = vld [vmem:[%s5264_s22 + $0x608] sm:$0xf0] }
 0x31a   : > { %3435 = vst.msk [vmem:[%s5557_s27 + $0x1e8] sm:$0xff] %vm3373_vm0, %v2371_v31  ;;  %v4570_v51 = vor.u32 %v4954_v57, %v4569_v23 }
 0x31b   : > { %3482 = vst.msk [vmem:[%s5557_s27 + $0x360] sm:$0xff] %vm3373_vm0, %v3284_v24 }
 0x31e   : > { %v3027_v45 = vpop.f32.mrf.mxu2  ;;  %v3156_v37 = vpop.f32.mrf.mxu3 }
 0x31f   : > { %v3157_v25 = vadd.f32 %v3156_v37, %v3027_v45  ;;  %v2373_v46 = vpop.f32.mrf.mxu1  ;;  %v3288_v14 = vpop.f32.mrf.mxu0 }
 0x320   : > { %v2374_v29 = vadd.f32 %v2373_v46, %v5693_v15 }
 0x321   : > { %v3286_v63 = vadd.f32 %v3285_v22, %v3157_v25  ;;  %v4571_v22 = vld [vmem:[%s5264_s22 + $0x60c] sm:$0xf0] }
 0x322   : > { %3436 = vst.msk [vmem:[%s5557_s27 + $0x1f0] sm:$0xff] %vm3373_vm0, %v2374_v29  ;;  %2412 = vmatmul.bf16.gmra.mxu1 %v4182_v18  ;;  %3327 = vmatmul.bf16.gmra.mxu0 %v4566_v59  ;;  %v4574_v56 = vor.u32 %v4953_v17, %v4571_v22  ;;  %v4589_v29 = vld [vmem:[%s5264_s22 + $0x620] sm:$0xf] }
 0x323   : > { %3483 = vst.msk [vmem:[%s5557_s27 + $0x368] sm:$0xff] %vm3373_vm0, %v3286_v63  ;;  %3069 = vmatmul.bf16.gmra.mxu2 %v4558_v36  ;;  %3198 = vmatmul.bf16.gmra.mxu3 %v4562_v43  ;;  %v4886_v36 = vld [vmem:[%s5264_s22 + $0x3e8] sm:$0xf0]  ;;  %v4581_v43 = vld [vmem:[%s5264_s22 + $0x618] sm:$0xf] }
 0x324   : > { %v4958_v63 = vld [vmem:[%s5264_s22 + $0x628] sm:$0xf0] }
 0x326   : > { %v3030_v13 = vpop.f32.mrf.mxu2  ;;  %v3159_v15 = vpop.f32.mrf.mxu3 }
 0x327   : > { %v3160_v62 = vadd.f32 %v3159_v15, %v3030_v13  ;;  %v2375_v58 = vpop.f32.mrf.mxu1  ;;  %v3290_v4 = vpop.f32.mrf.mxu0  ;;  %v4957_v13 = vld [vmem:[%s5264_s22 + $0x620] sm:$0xf0]  ;;  %v4956_v15 = vld [vmem:[%s5264_s22 + $0x61c] sm:$0xf] }
 0x328   : > { %v2376_v20 = vadd.f32 %v2375_v58, %v5706_v49  ;;  %v4582_v23 = vor.u32 %v4957_v13, %v4581_v43 }
 0x329   : > { %v3289_v48 = vadd.f32 %v3288_v14, %v3160_v62  ;;  %v4205_v14 = vld [vmem:[%s5264_s22 + $0x3e0] sm:$0xf]  ;;  %v4583_v62 = vld [vmem:[%s5264_s22 + $0x624] sm:$0xf0] }
 0x32a   : > { %3437 = vst.msk [vmem:[%s5557_s27 + $0x1f8] sm:$0xff] %vm3373_vm0, %v2376_v20  ;;  %v4206_v20 = vor.u32 %v4886_v36, %v4205_v14  ;;  %v4586_v21 = vor.u32 %v4956_v15, %v4583_v62 }
 0x32b   : > { %3484 = vst.msk [vmem:[%s5557_s27 + $0x370] sm:$0xff] %vm3373_vm0, %v3289_v48  ;;  %v4590_v48 = vor.u32 %v4958_v63, %v4589_v29 }
 0x32e   : > { %v3032_v31 = vpop.f32.mrf.mxu2  ;;  %v3161_v24 = vpop.f32.mrf.mxu3 }
 0x32f   : > { %v3162_v49 = vadd.f32 %v3161_v24, %v3032_v31  ;;  %v2378_v32 = vpop.f32.mrf.mxu1  ;;  %v3293_v16 = vpop.f32.mrf.mxu0 }
 0x330   : > { %v2379_v9 = vadd.f32 %v2378_v32, %v5713_v40  ;;  %v4889_v32 = vld [vmem:[%s5264_s22 + $0x400] sm:$0xf0] }
 0x331   : > { %v3291_v7 = vadd.f32 %v3290_v4, %v3162_v49  ;;  %v4217_v49 = vld [vmem:[%s5264_s22 + $0x3f8] sm:$0xf] }
 0x332   : > { %3438 = vst.msk [vmem:[%s5557_s27 + $0x200] sm:$0xff] %vm3373_vm0, %v2379_v9  ;;  %2417 = vmatmul.bf16.gmra.mxu1 %v4194_v0  ;;  %3332 = vmatmul.bf16.gmra.mxu0 %v4578_v1  ;;  %v4960_v9 = vld [vmem:[%s5264_s22 + $0x638] sm:$0xf0] }
 0x333   : > { %3485 = vst.msk [vmem:[%s5557_s27 + $0x378] sm:$0xff] %vm3373_vm0, %v3291_v7  ;;  %3074 = vmatmul.bf16.gmra.mxu2 %v4570_v51  ;;  %3203 = vmatmul.bf16.gmra.mxu3 %v4574_v56  ;;  %v4601_v51 = vld [vmem:[%s5264_s22 + $0x638] sm:$0xf]  ;;  %v4961_v56 = vld [vmem:[%s5264_s22 + $0x640] sm:$0xf0] }
 0x334   : > { %v4959_v7 = vld [vmem:[%s5264_s22 + $0x634] sm:$0xf] }
 0x336   : > { %v3035_v45 = vpop.f32.mrf.mxu2  ;;  %v3164_v40 = vpop.f32.mrf.mxu3 }
 0x337   : > { %v3165_v37 = vadd.f32 %v3164_v40, %v3035_v45  ;;  %v2380_v18 = vpop.f32.mrf.mxu1  ;;  %v3295_v59 = vpop.f32.mrf.mxu0  ;;  %v4595_v45 = vld [vmem:[%s5264_s22 + $0x63c] sm:$0xf0] }
 0x338   : > { %v2381_v25 = vadd.f32 %v2380_v18, %v5728_v26  ;;  %v4218_v18 = vor.u32 %v4889_v32, %v4217_v49  ;;  %v4598_v36 = vor.u32 %v4959_v7, %v4595_v45 }
 0x339   : > { %v3294_v46 = vadd.f32 %v3293_v16, %v3165_v37  ;;  %v4593_v16 = vld [vmem:[%s5264_s22 + $0x630] sm:$0xf] }
 0x33a   : > { %3439 = vst.msk [vmem:[%s5557_s27 + $0x208] sm:$0xff] %vm3373_vm0, %v2381_v25  ;;  %v4594_v14 = vor.u32 %v4960_v9, %v4593_v16 }
 0x33b   : > { %3486 = vst.msk [vmem:[%s5557_s27 + $0x380] sm:$0xff] %vm3373_vm0, %v3294_v46 }
 0x33e   : > { %v3037_v58 = vpop.f32.mrf.mxu2  ;;  %v3166_v4 = vpop.f32.mrf.mxu3 }
 0x33f   : > { %v3167_v26 = vadd.f32 %v3166_v4, %v3037_v58  ;;  %v2383_v11 = vpop.f32.mrf.mxu1  ;;  %v3298_v61 = vpop.f32.mrf.mxu0 }
 0x340   : > { %v2384_v52 = vadd.f32 %v2383_v11, %v5733_v6  ;;  %v4613_v11 = vld [vmem:[%s5264_s22 + $0x650] sm:$0xf] }
 0x341   : > { %v3296_v57 = vadd.f32 %v3295_v59, %v3167_v26  ;;  %v4602_v59 = vor.u32 %v4961_v56, %v4601_v51  ;;  %v4605_v26 = vld [vmem:[%s5264_s22 + $0x648] sm:$0xf] }
 0x342   : > { %3440 = vst.msk [vmem:[%s5557_s27 + $0x210] sm:$0xff] %vm3373_vm0, %v2384_v52  ;;  %2422 = vmatmul.bf16.gmra.mxu1 %v4206_v20  ;;  %3337 = vmatmul.bf16.gmra.mxu0 %v4590_v48  ;;  %v4229_v20 = vld [vmem:[%s5264_s22 + $0x410] sm:$0xf]  ;;  %v4892_v48 = vld [vmem:[%s5264_s22 + $0x418] sm:$0xf0] }
 0x343   : > { %3487 = vst.msk [vmem:[%s5557_s27 + $0x388] sm:$0xff] %vm3373_vm0, %v3296_v57  ;;  %3079 = vmatmul.bf16.gmra.mxu2 %v4582_v23  ;;  %3208 = vmatmul.bf16.gmra.mxu3 %v4586_v21  ;;  %v4963_v23 = vld [vmem:[%s5264_s22 + $0x650] sm:$0xf0]  ;;  %v4962_v21 = vld [vmem:[%s5264_s22 + $0x64c] sm:$0xf] }
 0x344   : > { %v4607_v52 = vld [vmem:[%s5264_s22 + $0x654] sm:$0xf0] }
 0x346   : > { %v3040_v17 = vpop.f32.mrf.mxu2  ;;  %v3169_v6 = vpop.f32.mrf.mxu3 }
 0x347   : > { %v3170_v22 = vadd.f32 %v3169_v6, %v3040_v17  ;;  %v2385_v31 = vpop.f32.mrf.mxu1  ;;  %v3300_v24 = vpop.f32.mrf.mxu0  ;;  %v4230_v6 = vor.u32 %v4892_v48, %v4229_v20 }
 0x348   : > { %v2386_v0 = vadd.f32 %v2385_v31, %v5746_v10 }
 0x349   : > { %v3299_v1 = vadd.f32 %v3298_v61, %v3170_v22  ;;  %v4964_v61 = vld [vmem:[%s5264_s22 + $0x658] sm:$0xf0] }
 0x34a   : > { %3441 = vst.msk [vmem:[%s5557_s27 + $0x218] sm:$0xff] %vm3373_vm0, %v2386_v0  ;;  %v4614_v22 = vor.u32 %v4964_v61, %v4613_v11  ;;  %v4606_v0 = vor.u32 %v4963_v23, %v4605_v26 }
 0x34b   : > { %3488 = vst.msk [vmem:[%s5557_s27 + $0x390] sm:$0xff] %vm3373_vm0, %v3299_v1  ;;  %v4610_v1 = vor.u32 %v4962_v21, %v4607_v52  ;;  %v4253_v21 = vld [vmem:[%s5264_s22 + $0x440] sm:$0xf]  ;;  %v4898_v52 = vld [vmem:[%s5264_s22 + $0x448] sm:$0xf0] }
 0x34e   : > { %v3042_v40 = vpop.f32.mrf.mxu2  ;;  %v3171_v37 = vpop.f32.mrf.mxu3 }
 0x34f   : > { %v3172_v10 = vadd.f32 %v3171_v37, %v3042_v40  ;;  %v2388_v25 = vpop.f32.mrf.mxu1  ;;  %v3303_v46 = vpop.f32.mrf.mxu0  ;;  %v4241_v40 = vld [vmem:[%s5264_s22 + $0x428] sm:$0xf]  ;;  %v4895_v37 = vld [vmem:[%s5264_s22 + $0x430] sm:$0xf0] }
 0x350   : > { %v2389_v43 = vadd.f32 %v2388_v25, %v5751_v2  ;;  %v4966_v25 = vld [vmem:[%s5264_s22 + $0x668] sm:$0xf0] }
 0x351   : > { %v3301_v29 = vadd.f32 %v3300_v24, %v3172_v10  ;;  %v4967_v10 = vld [vmem:[%s5264_s22 + $0x670] sm:$0xf0] }
 0x352   : > { %3442 = vst.msk [vmem:[%s5557_s27 + $0x220] sm:$0xff] %vm3373_vm0, %v2389_v43  ;;  %2427 = vmatmul.bf16.gmra.mxu1 %v4218_v18  ;;  %3342 = vmatmul.bf16.gmra.mxu0 %v4602_v59  ;;  %v4617_v18 = vld [vmem:[%s5264_s22 + $0x660] sm:$0xf]  ;;  %v4625_v59 = vld [vmem:[%s5264_s22 + $0x668] sm:$0xf] }
 0x353   : > { %3489 = vst.msk [vmem:[%s5557_s27 + $0x398] sm:$0xff] %vm3373_vm0, %v3301_v29  ;;  %3084 = vmatmul.bf16.gmra.mxu2 %v4594_v14  ;;  %3213 = vmatmul.bf16.gmra.mxu3 %v4598_v36  ;;  %v4619_v14 = vld [vmem:[%s5264_s22 + $0x66c] sm:$0xf0]  ;;  %v4242_v29 = vor.u32 %v4895_v37, %v4241_v40 }
 0x356   : > { %v3045_v63 = vpop.f32.mrf.mxu2  ;;  %v3174_v2 = vpop.f32.mrf.mxu3 }
 0x357   : > { %v3175_v13 = vadd.f32 %v3174_v2, %v3045_v63  ;;  %v2390_v15 = vpop.f32.mrf.mxu1  ;;  %v3305_v62 = vpop.f32.mrf.mxu0  ;;  %v4626_v63 = vor.u32 %v4967_v10, %v4625_v59  ;;  %v4265_v10 = vld [vmem:[%s5264_s22 + $0x458] sm:$0xf] }
 0x358   : > { %v2391_v58 = vadd.f32 %v2390_v15, %v5764_v38  ;;  %v4618_v15 = vor.u32 %v4966_v25, %v4617_v18  ;;  %v4901_v25 = vld [vmem:[%s5264_s22 + $0x460] sm:$0xf0] }
 0x359   : > { %v3304_v4 = vadd.f32 %v3303_v46, %v3175_v13  ;;  %v4965_v46 = vld [vmem:[%s5264_s22 + $0x664] sm:$0xf] }
 0x35a   : > { %3443 = vst.msk [vmem:[%s5557_s27 + $0x228] sm:$0xff] %vm3373_vm0, %v2391_v58 }
 0x35b   : > { %3490 = vst.msk [vmem:[%s5557_s27 + $0x3a0] sm:$0xff] %vm3373_vm0, %v3304_v4 }
 0x35e   : > { %v3047_v57 = vpop.f32.mrf.mxu2  ;;  %v3176_v17 = vpop.f32.mrf.mxu3 }
 0x35f   : > { %v3177_v38 = vadd.f32 %v3176_v17, %v3047_v57  ;;  %v2393_v31 = vpop.f32.mrf.mxu1  ;;  %v3308_v24 = vpop.f32.mrf.mxu0  ;;  %v4629_v57 = vld [vmem:[%s5264_s22 + $0x678] sm:$0xf]  ;;  %v4637_v17 = vld [vmem:[%s5264_s22 + $0x680] sm:$0xf] }
 0x360   : > { %v2394_v49 = vadd.f32 %v2393_v31, %v5771_v19  ;;  %v4631_v31 = vld [vmem:[%s5264_s22 + $0x684] sm:$0xf0] }
 0x361   : > { %v3306_v32 = vadd.f32 %v3305_v62, %v3177_v38  ;;  %v4622_v62 = vor.u32 %v4965_v46, %v4619_v14  ;;  %v4968_v38 = vld [vmem:[%s5264_s22 + $0x67c] sm:$0xf]  ;;  %v4641_v46 = vld [vmem:[%s5264_s22 + $0x690] sm:$0xf]  ;;  %v4649_v14 = vld [vmem:[%s5264_s22 + $0x698] sm:$0xf] }
 0x362   : > { %3444 = vst.msk [vmem:[%s5557_s27 + $0x230] sm:$0xff] %vm3373_vm0, %v2394_v49  ;;  %2432 = vmatmul.bf16.gmra.mxu1 %v4230_v6  ;;  %3347 = vmatmul.bf16.gmra.mxu0 %v4614_v22  ;;  %v4970_v6 = vld [vmem:[%s5264_s22 + $0x688] sm:$0xf0]  ;;  %v4969_v22 = vld [vmem:[%s5264_s22 + $0x680] sm:$0xf0] }
 0x363   : > { %3491 = vst.msk [vmem:[%s5557_s27 + $0x3a8] sm:$0xff] %vm3373_vm0, %v3306_v32  ;;  %3089 = vmatmul.bf16.gmra.mxu2 %v4606_v0  ;;  %3218 = vmatmul.bf16.gmra.mxu3 %v4610_v1  ;;  %v4254_v1 = vor.u32 %v4898_v52, %v4253_v21  ;;  %v4638_v49 = vor.u32 %v4970_v6, %v4637_v17  ;;  %v4904_v17 = vld [vmem:[%s5264_s22 + $0x478] sm:$0xf0]  ;;  %v4653_v6 = vld [vmem:[%s5264_s22 + $0x6a8] sm:$0xf] }
 0x366   : > { %v3050_v16 = vpop.f32.mrf.mxu2  ;;  %v3179_v19 = vpop.f32.mrf.mxu3 }
 0x367   : > { %v3180_v51 = vadd.f32 %v3179_v19, %v3050_v16  ;;  %v2395_v56 = vpop.f32.mrf.mxu1  ;;  %v3310_v9 = vpop.f32.mrf.mxu0  ;;  %v4630_v19 = vor.u32 %v4969_v22, %v4629_v57  ;;  %v4277_v57 = vld [vmem:[%s5264_s22 + $0x470] sm:$0xf] }
 0x368   : > { %v2396_v7 = vadd.f32 %v2395_v56, %v5786_v41  ;;  %v4661_v22 = vld [vmem:[%s5264_s22 + $0x6b0] sm:$0xf] }
 0x369   : > { %v3309_v45 = vadd.f32 %v3308_v24, %v3180_v51  ;;  %v4634_v51 = vor.u32 %v4968_v38, %v4631_v31  ;;  %v4976_v38 = vld [vmem:[%s5264_s22 + $0x6b8] sm:$0xf0]  ;;  %v4975_v31 = vld [vmem:[%s5264_s22 + $0x6b0] sm:$0xf0] }
 0x36a   : > { %3445 = vst.msk [vmem:[%s5557_s27 + $0x238] sm:$0xff] %vm3373_vm0, %v2396_v7 }
 0x36b   : > { %3492 = vst.msk [vmem:[%s5557_s27 + $0x3b0] sm:$0xff] %vm3373_vm0, %v3309_v45 }
 0x36e   : > { %v3052_v36 = vpop.f32.mrf.mxu2  ;;  %v3181_v43 = vpop.f32.mrf.mxu3 }
 0x36f   : > { %v3182_v41 = vadd.f32 %v3181_v43, %v3052_v36  ;;  %v2398_v2 = vpop.f32.mrf.mxu1  ;;  %v3313_v13 = vpop.f32.mrf.mxu0  ;;  %v4973_v36 = vld [vmem:[%s5264_s22 + $0x6a0] sm:$0xf0]  ;;  %v4972_v43 = vld [vmem:[%s5264_s22 + $0x698] sm:$0xf0] }
 0x370   : > { %v2399_v58 = vadd.f32 %v2398_v2, %v5791_v53 }
 0x371   : > { %v3311_v4 = vadd.f32 %v3310_v9, %v3182_v41 }
 0x372   : > { %3446 = vst.msk [vmem:[%s5557_s27 + $0x240] sm:$0xff] %vm3373_vm0, %v2399_v58  ;;  %2437 = vmatmul.bf16.gmra.mxu1 %v4242_v29  ;;  %3352 = vmatmul.bf16.gmra.mxu0 %v4626_v63  ;;  %v4971_v29 = vld [vmem:[%s5264_s22 + $0x694] sm:$0xf]  ;;  %v4643_v63 = vld [vmem:[%s5264_s22 + $0x69c] sm:$0xf0] }
 0x373   : > { %3493 = vst.msk [vmem:[%s5557_s27 + $0x3b8] sm:$0xff] %vm3373_vm0, %v3311_v4  ;;  %3094 = vmatmul.bf16.gmra.mxu2 %v4618_v15  ;;  %3223 = vmatmul.bf16.gmra.mxu3 %v4622_v62  ;;  %v4650_v15 = vor.u32 %v4973_v36, %v4649_v14  ;;  %v4642_v4 = vor.u32 %v4972_v43, %v4641_v46 }
 0x376   : > { %v3055_v20 = vpop.f32.mrf.mxu2  ;;  %v3184_v53 = vpop.f32.mrf.mxu3 }
 0x377   : > { %v3185_v48 = vadd.f32 %v3184_v53, %v3055_v20  ;;  %v2400_v26 = vpop.f32.mrf.mxu1  ;;  %v3315_v11 = vpop.f32.mrf.mxu0  ;;  %v4646_v20 = vor.u32 %v4971_v29, %v4643_v63 }
 0x378   : > { %v2401_v61 = vadd.f32 %v2400_v26, %v5804_v54 }
 0x379   : > { %v3314_v23 = vadd.f32 %v3313_v13, %v3185_v48  ;;  %v4266_v13 = vor.u32 %v4901_v25, %v4265_v10 }
 0x37a   : > { %3447 = vst.msk [vmem:[%s5557_s27 + $0x248] sm:$0xff] %vm3373_vm0, %v2401_v61 }
 0x37b   : > { %3494 = vst.msk [vmem:[%s5557_s27 + $0x3c0] sm:$0xff] %vm3373_vm0, %v3314_v23 }
 0x37e   : > { %v3057_v24 = vpop.f32.mrf.mxu2  ;;  %v3186_v0 = vpop.f32.mrf.mxu3 }
 0x37f   : > { %v3187_v54 = vadd.f32 %v3186_v0, %v3057_v24  ;;  %v2403_v32 = vpop.f32.mrf.mxu1  ;;  %v3318_v16 = vpop.f32.mrf.mxu0  ;;  %v4974_v24 = vld [vmem:[%s5264_s22 + $0x6ac] sm:$0xf]  ;;  %v4655_v0 = vld [vmem:[%s5264_s22 + $0x6b4] sm:$0xf0] }
 0x380   : > { %v2404_v56 = vadd.f32 %v2403_v32, %v5809_v34  ;;  %v4662_v32 = vor.u32 %v4976_v38, %v4661_v22 }
 0x381   : > { %v3316_v9 = vadd.f32 %v3315_v11, %v3187_v54  ;;  %v4278_v54 = vor.u32 %v4904_v17, %v4277_v57 }
 0x382   : > { %3448 = vst.msk [vmem:[%s5557_s27 + $0x250] sm:$0xff] %vm3373_vm0, %v2404_v56  ;;  %2442 = vmatmul.bf16.gmra.mxu1 %v4254_v1  ;;  %3357 = vmatmul.bf16.gmra.mxu0 %v4638_v49  ;;  %v4658_v56 = vor.u32 %v4974_v24, %v4655_v0 }
 0x383   : > { %3495 = vst.msk [vmem:[%s5557_s27 + $0x3c8] sm:$0xff] %vm3373_vm0, %v3316_v9  ;;  %3099 = vmatmul.bf16.gmra.mxu2 %v4630_v19  ;;  %3228 = vmatmul.bf16.gmra.mxu3 %v4634_v51  ;;  %v4654_v51 = vor.u32 %v4975_v31, %v4653_v6 }
 0x386   : > { %v3060_v7 = vpop.f32.mrf.mxu2  ;;  %v3189_v34 = vpop.f32.mrf.mxu3 }
 0x387   : > { %v3190_v45 = vadd.f32 %v3189_v34, %v3060_v7  ;;  %v2405_v40 = vpop.f32.mrf.mxu1  ;;  %v3320_v37 = vpop.f32.mrf.mxu0 }
 0x388   : > { %v2406_v18 = vadd.f32 %v2405_v40, %v5822_v33 }
 0x389   : > { %v3319_v59 = vadd.f32 %v3318_v16, %v3190_v45 }
 0x38a   : > { %3449 = vst.msk [vmem:[%s5557_s27 + $0x258] sm:$0xff] %vm3373_vm0, %v2406_v18 }
 0x38b   : > { %3496 = vst.msk [vmem:[%s5557_s27 + $0x3d0] sm:$0xff] %vm3373_vm0, %v3319_v59 }
 0x38e   : > { %v3062_v41 = vpop.f32.mrf.mxu2  ;;  %v3191_v2 = vpop.f32.mrf.mxu3 }
 0x38f   : > { %v3192_v33 = vadd.f32 %v3191_v2, %v3062_v41  ;;  %v2408_v62 = vpop.f32.mrf.mxu1  ;;  %v3323_v58 = vpop.f32.mrf.mxu0 }
 0x390   : > { %v2409_v53 = vadd.f32 %v2408_v62, %v5827_v27 }
 0x391   : > { %v3321_v48 = vadd.f32 %v3320_v37, %v3192_v33 }
 0x392   : > { %3450 = vst.msk [vmem:[%s5557_s27 + $0x260] sm:$0xff] %vm3373_vm0, %v2409_v53  ;;  %2447 = vmatmul.bf16.gmra.mxu1 %v4266_v13  ;;  %3362 = vmatmul.bf16.gmra.mxu0 %v4650_v15 }
 0x393   : > { %3497 = vst.msk [vmem:[%s5557_s27 + $0x3d8] sm:$0xff] %vm3373_vm0, %v3321_v48  ;;  %3104 = vmatmul.bf16.gmra.mxu2 %v4642_v4  ;;  %3233 = vmatmul.bf16.gmra.mxu3 %v4646_v20 }
 0x396   : > { %v3065_v26 = vpop.f32.mrf.mxu2  ;;  %v3194_v27 = vpop.f32.mrf.mxu3 }
 0x397   : > { %v3195_v11 = vadd.f32 %v3194_v27, %v3065_v26  ;;  %v2410_v61 = vpop.f32.mrf.mxu1  ;;  %v3325_v23 = vpop.f32.mrf.mxu0 }
 0x398   : > { %v2411_v21 = vadd.f32 %v2410_v61, %v5840_v60 }
 0x399   : > { %v3324_v52 = vadd.f32 %v3323_v58, %v3195_v11 }
 0x39a   : > { %3451 = vst.msk [vmem:[%s5557_s27 + $0x268] sm:$0xff] %vm3373_vm0, %v2411_v21 }
 0x39b   : > { %3498 = vst.msk [vmem:[%s5557_s27 + $0x3e0] sm:$0xff] %vm3373_vm0, %v3324_v52 }
 0x39e   : > { %v3067_v1 = vpop.f32.mrf.mxu2  ;;  %v3196_v49 = vpop.f32.mrf.mxu3 }
 0x39f   : > { %v3197_v60 = vadd.f32 %v3196_v49, %v3067_v1  ;;  %v2413_v16 = vpop.f32.mrf.mxu1  ;;  %v3328_v19 = vpop.f32.mrf.mxu0 }
 0x3a0   : > { %v2414_v9 = vadd.f32 %v2413_v16, %v5845_v39 }
 0x3a1   : > { %v3326_v7 = vadd.f32 %v3325_v23, %v3197_v60 }
 0x3a2   : > { %3452 = vst.msk [vmem:[%s5557_s27 + $0x270] sm:$0xff] %vm3373_vm0, %v2414_v9  ;;  %2452 = vmatmul.bf16.gmra.mxu1 %v4278_v54  ;;  %3367 = vmatmul.bf16.gmra.mxu0 %v4662_v32 }
 0x3a3   : > { %3499 = vst.msk [vmem:[%s5557_s27 + $0x3e8] sm:$0xff] %vm3373_vm0, %v3326_v7  ;;  %3109 = vmatmul.bf16.gmra.mxu2 %v4654_v51  ;;  %3238 = vmatmul.bf16.gmra.mxu3 %v4658_v56 }
 0x3a6   : > { %v3070_v34 = vpop.f32.mrf.mxu2  ;;  %v3199_v45 = vpop.f32.mrf.mxu3 }
 0x3a7   : > { %v3200_v40 = vadd.f32 %v3199_v45, %v3070_v34  ;;  %v2415_v37 = vpop.f32.mrf.mxu1  ;;  %v3330_v18 = vpop.f32.mrf.mxu0 }
 0x3a8   : > { %v2416_v59 = vadd.f32 %v2415_v37, %v5858_v35 }
 0x3a9   : > { %v3329_v39 = vadd.f32 %v3328_v19, %v3200_v40 }
 0x3aa   : > { %3453 = vst.msk [vmem:[%s5557_s27 + $0x278] sm:$0xff] %vm3373_vm0, %v2416_v59 }
 0x3ab   : > { %3500 = vst.msk [vmem:[%s5557_s27 + $0x3f0] sm:$0xff] %vm3373_vm0, %v3329_v39 }
 0x3ae   : > { %v3072_v10 = vpop.f32.mrf.mxu2  ;;  %v3201_v25 = vpop.f32.mrf.mxu3 }
 0x3af   : > { %v3202_v46 = vadd.f32 %v3201_v25, %v3072_v10  ;;  %v2418_v14 = vpop.f32.mrf.mxu1  ;;  %v3333_v36 = vpop.f32.mrf.mxu0 }
 0x3b0   : > { %v2419_v43 = vadd.f32 %v2418_v14, %v5863_v47 }
 0x3b1   : > { %v3331_v29 = vadd.f32 %v3330_v18, %v3202_v46 }
 0x3b2   : > { %3454 = vst.msk [vmem:[%s5557_s27 + $0x280] sm:$0xff] %vm3373_vm0, %v2419_v43 }
 0x3b3   : > { %3501 = vst.msk [vmem:[%s5557_s27 + $0x3f8] sm:$0xff] %vm3373_vm0, %v3331_v29 }
 0x3b6   : > { %v3075_v35 = vpop.f32.mrf.mxu2  ;;  %v3204_v63 = vpop.f32.mrf.mxu3 }
 0x3b7   : > { %v3205_v41 = vadd.f32 %v3204_v63, %v3075_v35  ;;  %v2420_v2 = vpop.f32.mrf.mxu1  ;;  %v3335_v13 = vpop.f32.mrf.mxu0 }
 0x3b8   : > { %v2421_v15 = vadd.f32 %v2420_v2, %v5876_v5 }
 0x3b9   : > { %v3334_v33 = vadd.f32 %v3333_v36, %v3205_v41 }
 0x3ba   : > { %3455 = vst.msk [vmem:[%s5557_s27 + $0x288] sm:$0xff] %vm3373_vm0, %v2421_v15 }
 0x3bb   : > { %3502 = vst.msk [vmem:[%s5557_s27 + $0x400] sm:$0xff] %vm3373_vm0, %v3334_v33  ;;  %v6401_v33 = vld [vmem:[#allocation11_spill] sm:$0xff] }
 0x3be   : > { %v3077_v47 = vpop.f32.mrf.mxu2  ;;  %v3206_v62 = vpop.f32.mrf.mxu3 }
 0x3bf   : > { %v3207_v58 = vadd.f32 %v3206_v62, %v3077_v47  ;;  %v2423_v4 = vpop.f32.mrf.mxu1  ;;  %v3338_v20 = vpop.f32.mrf.mxu0 }
 0x3c0   : > { %v2424_v53 = vadd.f32 %v2423_v4, %v5881_v3 }
 0x3c1   : > { %v3336_v48 = vadd.f32 %v3335_v13, %v3207_v58 }
 0x3c2   : > { %3456 = vst.msk [vmem:[%s5557_s27 + $0x290] sm:$0xff] %vm3373_vm0, %v2424_v53 }
 0x3c3   : > { %3503 = vst.msk [vmem:[%s5557_s27 + $0x408] sm:$0xff] %vm3373_vm0, %v3336_v48  ;;  %v6402_v48 = vld [vmem:[#allocation12_spill] sm:$0xff] }
 0x3c6   : > { %v3080_v5 = vpop.f32.mrf.mxu2  ;;  %v3209_v26 = vpop.f32.mrf.mxu3 }
 0x3c7   : > { %v3210_v27 = vadd.f32 %v3209_v26, %v3080_v5  ;;  %v2425_v11 = vpop.f32.mrf.mxu1  ;;  %v3340_v61 = vpop.f32.mrf.mxu0 }
 0x3c8   : > { %v2426_v23 = vadd.f32 %v2425_v11, %v5894_v44 }
 0x3c9   : > { %v3339_v21 = vadd.f32 %v3338_v20, %v3210_v27 }
 0x3ca   : > { %3457 = vst.msk [vmem:[%s5557_s27 + $0x298] sm:$0xff] %vm3373_vm0, %v2426_v23 }
 0x3cb   : > { %3504 = vst.msk [vmem:[%s5557_s27 + $0x410] sm:$0xff] %vm3373_vm0, %v3339_v21  ;;  %v6403_v21 = vld [vmem:[#allocation5_spill] sm:$0xff] }
 0x3ce   : > { %v3082_v3 = vpop.f32.mrf.mxu2  ;;  %v3211_v52 = vpop.f32.mrf.mxu3 }
 0x3cf   : > { %v3212_v57 = vadd.f32 %v3211_v52, %v3082_v3  ;;  %v2428_v17 = vpop.f32.mrf.mxu1  ;;  %v3343_v6 = vpop.f32.mrf.mxu0 }
 0x3d0   : > { %v2429_v22 = vadd.f32 %v2428_v17, %v5899_v28 }
 0x3d1   : > { %v3341_v38 = vadd.f32 %v3340_v61, %v3212_v57 }
 0x3d2   : > { %3458 = vst.msk [vmem:[%s5557_s27 + $0x2a0] sm:$0xff] %vm3373_vm0, %v2429_v22 }
 0x3d3   : > { %3505 = vst.msk [vmem:[%s5557_s27 + $0x418] sm:$0xff] %vm3373_vm0, %v3341_v38 }
 0x3d6   : > { %v3085_v44 = vpop.f32.mrf.mxu2  ;;  %v3214_v31 = vpop.f32.mrf.mxu3 }
 0x3d7   : > { %v3215_v24 = vadd.f32 %v3214_v31, %v3085_v44  ;;  %v2430_v0 = vpop.f32.mrf.mxu1  ;;  %v3345_v1 = vpop.f32.mrf.mxu0  ;;  %v6404_v44 = vld [vmem:[#allocation6_spill] sm:$0xff] }
 0x3d8   : > { %v2431_v49 = vadd.f32 %v2430_v0, %v5912_v30 }
 0x3d9   : > { %v3344_v54 = vadd.f32 %v3343_v6, %v3215_v24 }
 0x3da   : > { %3459 = vst.msk [vmem:[%s5557_s27 + $0x2a8] sm:$0xff] %vm3373_vm0, %v2431_v49 }
 0x3db   : > { %3506 = vst.msk [vmem:[%s5557_s27 + $0x420] sm:$0xff] %vm3373_vm0, %v3344_v54 }
 0x3de   : > { %v3087_v28 = vpop.f32.mrf.mxu2  ;;  %v3216_v32 = vpop.f32.mrf.mxu3 }
 0x3df   : > { %v3217_v60 = vadd.f32 %v3216_v32, %v3087_v28  ;;  %v2433_v16 = vpop.f32.mrf.mxu1  ;;  %v3348_v19 = vpop.f32.mrf.mxu0  ;;  %v6405_v32 = vld [vmem:[#allocation7_spill] sm:$0xff] }
 0x3e0   : > { %v2434_v51 = vadd.f32 %v2433_v16, %v5917_v55 }
 0x3e1   : > { %v3346_v56 = vadd.f32 %v3345_v1, %v3217_v60 }
 0x3e2   : > { %3460 = vst.msk [vmem:[%s5557_s27 + $0x2b0] sm:$0xff] %vm3373_vm0, %v2434_v51 }
 0x3e3   : > { %3507 = vst.msk [vmem:[%s5557_s27 + $0x428] sm:$0xff] %vm3373_vm0, %v3346_v56 }
 0x3e6   : > { %v3090_v30 = vpop.f32.mrf.mxu2  ;;  %v3219_v9 = vpop.f32.mrf.mxu3 }
 0x3e7   : > { %v3220_v7 = vadd.f32 %v3219_v9, %v3090_v30  ;;  %v2435_v34 = vpop.f32.mrf.mxu1  ;;  %v3350_v45 = vpop.f32.mrf.mxu0 }
 0x3e8   : > { %v2436_v40 = vadd.f32 %v2435_v34, %v5930_v50 }
 0x3e9   : > { %v3349_v37 = vadd.f32 %v3348_v19, %v3220_v7 }
 0x3ea   : > { %3461 = vst.msk [vmem:[%s5557_s27 + $0x2b8] sm:$0xff] %vm3373_vm0, %v2436_v40 }
 0x3eb   : > { %3508 = vst.msk [vmem:[%s5557_s27 + $0x430] sm:$0xff] %vm3373_vm0, %v3349_v37 }
 0x3ee   : > { %v3092_v55 = vpop.f32.mrf.mxu2  ;;  %v3221_v18 = vpop.f32.mrf.mxu3 }
 0x3ef   : > { %v3222_v59 = vadd.f32 %v3221_v18, %v3092_v55  ;;  %v2438_v39 = vpop.f32.mrf.mxu1  ;;  %v3353_v10 = vpop.f32.mrf.mxu0 }
 0x3f0   : > { %v2439_v25 = vadd.f32 %v2438_v39, %v5935_v42 }
 0x3f1   : > { %v3351_v46 = vadd.f32 %v3350_v45, %v3222_v59 }
 0x3f2   : > { %3462 = vst.msk [vmem:[%s5557_s27 + $0x2c0] sm:$0xff] %vm3373_vm0, %v2439_v25 }
 0x3f3   : > { %3509 = vst.msk [vmem:[%s5557_s27 + $0x438] sm:$0xff] %vm3373_vm0, %v3351_v46 }
 0x3f6   : > { %v3095_v50 = vpop.f32.mrf.mxu2  ;;  %v3224_v14 = vpop.f32.mrf.mxu3 }
 0x3f7   : > { %v3225_v36 = vadd.f32 %v3224_v14, %v3095_v50  ;;  %v2440_v43 = vpop.f32.mrf.mxu1  ;;  %v3355_v29 = vpop.f32.mrf.mxu0 }
 0x3f8   : > { %v2441_v35 = vadd.f32 %v2440_v43, %v5948_v8 }
 0x3f9   : > { %v3354_v63 = vadd.f32 %v3353_v10, %v3225_v36 }
 0x3fa   : > { %3463 = vst.msk [vmem:[%s5557_s27 + $0x2c8] sm:$0xff] %vm3373_vm0, %v2441_v35 }
 0x3fb   : > { %3510 = vst.msk [vmem:[%s5557_s27 + $0x440] sm:$0xff] %vm3373_vm0, %v3354_v63 }
 0x3fe   : > { %v3097_v42 = vpop.f32.mrf.mxu2  ;;  %v3226_v41 = vpop.f32.mrf.mxu3 }
 0x3ff   : > { %v3227_v2 = vadd.f32 %v3226_v41, %v3097_v42  ;;  %v2443_v13 = vpop.f32.mrf.mxu1  ;;  %v3358_v15 = vpop.f32.mrf.mxu0 }
 0x400   : > { %v2444_v47 = vadd.f32 %v2443_v13, %v6401_v33 }
 0x401   : > { %v3356_v62 = vadd.f32 %v3355_v29, %v3227_v2 }
 0x402   : > { %3464 = vst.msk [vmem:[%s5557_s27 + $0x2d0] sm:$0xff] %vm3373_vm0, %v2444_v47 }
 0x403   : > { %3511 = vst.msk [vmem:[%s5557_s27 + $0x448] sm:$0xff] %vm3373_vm0, %v3356_v62 }
 0x406   : > { %v3100_v8 = vpop.f32.mrf.mxu2  ;;  %v3229_v58 = vpop.f32.mrf.mxu3 }
 0x407   : > { %v3230_v4 = vadd.f32 %v3229_v58, %v3100_v8  ;;  %v2445_v20 = vpop.f32.mrf.mxu1  ;;  %v3360_v53 = vpop.f32.mrf.mxu0 }
 0x408   : > { %v2446_v5 = vadd.f32 %v2445_v20, %v6402_v48 }
 0x409   : > { %v3359_v26 = vadd.f32 %v3358_v15, %v3230_v4 }
 0x40a   : > { %3465 = vst.msk [vmem:[%s5557_s27 + $0x2d8] sm:$0xff] %vm3373_vm0, %v2446_v5 }
 0x40b   : > { %3512 = vst.msk [vmem:[%s5557_s27 + $0x450] sm:$0xff] %vm3373_vm0, %v3359_v26 }
 0x40e   : > { %v3102_v27 = vpop.f32.mrf.mxu2  ;;  %v3231_v11 = vpop.f32.mrf.mxu3 }
 0x40f   : > { %v3232_v61 = vadd.f32 %v3231_v11, %v3102_v27  ;;  %v2448_v23 = vpop.f32.mrf.mxu1  ;;  %v3363_v57 = vpop.f32.mrf.mxu0 }
 0x410   : > { %v2449_v3 = vadd.f32 %v2448_v23, %v6403_v21 }
 0x411   : > { %v3361_v52 = vadd.f32 %v3360_v53, %v3232_v61 }
 0x412   : > { %3466 = vst.msk [vmem:[%s5557_s27 + $0x2e0] sm:$0xff] %vm3373_vm0, %v2449_v3 }
 0x413   : > { %3513 = vst.msk [vmem:[%s5557_s27 + $0x458] sm:$0xff] %vm3373_vm0, %v3361_v52 }
 0x416   : > { %v3105_v17 = vpop.f32.mrf.mxu2  ;;  %v3234_v6 = vpop.f32.mrf.mxu3 }
 0x417   : > { %v3235_v22 = vadd.f32 %v3234_v6, %v3105_v17  ;;  %v2450_v38 = vpop.f32.mrf.mxu1  ;;  %v3365_v0 = vpop.f32.mrf.mxu0 }
 0x418   : > { %v2451_v31 = vadd.f32 %v2450_v38, %v6404_v44 }
 0x419   : > { %v3364_v24 = vadd.f32 %v3363_v57, %v3235_v22 }
 0x41a   : > { %3467 = vst.msk [vmem:[%s5557_s27 + $0x2e8] sm:$0xff] %vm3373_vm0, %v2451_v31 }
 0x41b   : > { %3514 = vst.msk [vmem:[%s5557_s27 + $0x460] sm:$0xff] %vm3373_vm0, %v3364_v24 }
 0x41e   : > { %v3107_v1 = vpop.f32.mrf.mxu2  ;;  %v3236_v49 = vpop.f32.mrf.mxu3 }
 0x41f   : > { %v3237_v54 = vadd.f32 %v3236_v49, %v3107_v1  ;;  %v2453_v28 = vpop.f32.mrf.mxu1  ;;  %v3368_v19 = vpop.f32.mrf.mxu0 }
 0x420   : > { %v2454_v60 = vadd.f32 %v2453_v28, %v6405_v32 }
 0x421   : > { %v3366_v16 = vadd.f32 %v3365_v0, %v3237_v54 }
 0x422   : > { %3468 = vst.msk [vmem:[%s5557_s27 + $0x2f0] sm:$0xff] %vm3373_vm0, %v2454_v60 }
 0x423   : > { %3515 = vst.msk [vmem:[%s5557_s27 + $0x468] sm:$0xff] %vm3373_vm0, %v3366_v16 }
 0x426   : > { %v3110_v51 = vpop.f32.mrf.mxu2  ;;  %v3239_v56 = vpop.f32.mrf.mxu3 }
 0x427   : > { %v3240_v30 = vadd.f32 %v3239_v56, %v3110_v51  ;;  %v2455_v9 = vpop.f32.mrf.mxu1  ;;  %v3370_v55 = vpop.f32.mrf.mxu0 }
 0x428   : > { %v2456_v7 = vadd.f32 %v2455_v9, %v6002_v12 }
 0x429   : > { %v3369_v34 = vadd.f32 %v3368_v19, %v3240_v30 }
 0x42a   : > { %3469 = vst.msk [vmem:[%s5557_s27 + $0x2f8] sm:$0xff] %vm3373_vm0, %v2456_v7 }
 0x42b   : > { %3516 = vst.msk [vmem:[%s5557_s27 + $0x470] sm:$0xff] %vm3373_vm0, %v3369_v34 }
 0x42e   : > { %v3112_v45 = vpop.f32.mrf.mxu2  ;;  %v3241_v40 = vpop.f32.mrf.mxu3 }
 0x42f   : > { %v3242_v37 = vadd.f32 %v3241_v40, %v3112_v45 }
 0x431   : > { %v3371_v18 = vadd.f32 %v3370_v55, %v3242_v37 }
 0x433   : > { %3517 = vst.msk [vmem:[%s5557_s27 + $0x478] sm:$0xff] %vm3373_vm0, %v3371_v18 }
 0x434 PF: > { %p12_p7 = scmp.ge.s32.totalorder %s5223_s14, 6   ;;  %s6406_s9 = smov %s5176_s10 }
 0x435   : > { %s6407_s10 = smov %s5180_s11  ;;  %s6408_s11 = smov %s5233_s17 }
 0x436   : > { %s6409_s12 = smov %s5223_s14  ;;  %14 = sbr.rel (!%p12_p7) target bundleno = 3 (0x3), region = 71 }
 0x43b   :  { %3542 = vsyncpa [#allocation3], 1 }
 0x43c   :  { %3544 = vsyncpa [#allocation3 + $0x1], 1 }

</bundles_post_ra>
